<compile_context>
chip_gen: v7x
topology: tpu7x:2x2x1
jax: 0.10.0
libtpu: 0.0.40
codegen_flags: <defaults>
</compile_context>

<pallas_src>
import math
import functools

import numpy as np
import jax
import jax.numpy as jnp
from jax import lax
from jax.experimental import pallas as pl
from jax.experimental.pallas import tpu as pltpu

EMBED_DIM = 32
HEADS = 4
LAYERS = 3
MAX_FRAMES = 8
LN_EPS = 1e-5
ROW_TILE_CAP = 512


def _ceil_to(x, m):
    return -(-x // m) * m


def _choose_tiling(n, cap=ROW_TILE_CAP):
    """Pick (row_tile, padded_rows): tile is a multiple of 8, capped at `cap`,
    and we keep >=2 grid steps when there is enough work (megacore)."""
    n8 = _ceil_to(n, 8)
    steps = max(1, -(-n8 // cap))
    if n8 >= 16:
        steps = max(steps, 2)
    tile = _ceil_to(-(-n8 // steps), 8)
    return tile, tile * steps


# ----------------------------------------------------------------------------
# Pallas kernel: triple encoder (pos-embed add + 3-layer transformer + residual
# + elementwise head/tail products).  Hot path of the module.
# ----------------------------------------------------------------------------
def _layer_norm(v, w, b):
    mu = jnp.mean(v, axis=-1, keepdims=True)
    var = jnp.mean((v - mu) ** 2, axis=-1, keepdims=True)
    return (v - mu) * lax.rsqrt(var + LN_EPS) * w + b


def _triple_kernel(head_ref, rel1_ref, rel2_ref, tail_ref,
                   ssc_ref, st_ref, pos_ref, noise_ref,
                   ln1w_ref, ln1b_ref, wqkv_ref, bqkv_ref, wo_ref, bo_ref,
                   ln2w_ref, ln2b_ref, w1_ref, b1_ref, w2_ref, b2_ref,
                   out_ref, *, layers):
    Nt, D = head_ref.shape

    # torch.chunk(rel, 2, -1) is done in the wrapper; tokens arrive pre-split.
    orig = [head_ref[...], rel1_ref[...], rel2_ref[...], tail_ref[...]]
    pos = pos_ref[...]                                           # [4, D]
    # Stack the 4 tokens along the sublane axis -> one [4*Nt, D] slab.
    x = jnp.concatenate([orig[i] + pos[i:i + 1, :] for i in range(4)], axis=0)
    orig4 = jnp.concatenate(orig, axis=0)

    ssc = ssc_ref[...]        # [D, H]  head-segment sum matrix, scale folded in
    st = st_ref[...]          # [H, D]  per-head broadcast matrix

    for l in range(layers):
        # ---- multi-head self-attention over the 4 triple tokens -------------
        y = _layer_norm(x, ln1w_ref[l], ln1b_ref[l])
        qkv = (jnp.dot(y, wqkv_ref[l], preferred_element_type=jnp.float32)
               + bqkv_ref[l])                                     # [4Nt, 3D]
        qs = [qkv[i * Nt:(i + 1) * Nt, 0 * D:1 * D] for i in range(4)]
        ks = [qkv[i * Nt:(i + 1) * Nt, 1 * D:2 * D] for i in range(4)]
        vs = [qkv[i * Nt:(i + 1) * Nt, 2 * D:3 * D] for i in range(4)]

        # All 16 (i,j) per-head logits in ONE matmul: stack q_i * k_j products
        # along sublanes, contract with the [D,H] segment matrix.
        qk = jnp.concatenate([qs[i] * ks[j] for i in range(4) for j in range(4)],
                             axis=0)                              # [16Nt, D]
        s_all = jnp.dot(qk, ssc, preferred_element_type=jnp.float32)  # [16Nt, H]
        sij = [[s_all[(i * 4 + j) * Nt:(i * 4 + j + 1) * Nt] for j in range(4)]
               for i in range(4)]

        probs = []
        for i in range(4):
            m = jnp.maximum(jnp.maximum(sij[i][0], sij[i][1]),
                            jnp.maximum(sij[i][2], sij[i][3]))
            e = [jnp.exp(sij[i][j] - m) for j in range(4)]
            inv = pl.reciprocal(e[0] + e[1] + e[2] + e[3], approx=True)
            probs += [e[j] * inv for j in range(4)]

        # Broadcast per-head probabilities back to the feature axis in ONE dot.
        pf = jnp.dot(jnp.concatenate(probs, axis=0), st,
                     preferred_element_type=jnp.float32)          # [16Nt, D]
        attn = jnp.concatenate(
            [sum(pf[(i * 4 + j) * Nt:(i * 4 + j + 1) * Nt] * vs[j]
                 for j in range(4))
             for i in range(4)], axis=0)                          # [4Nt, D]

        x = (x + jnp.dot(attn, wo_ref[l], preferred_element_type=jnp.float32)
             + bo_ref[l])

        # ---- MLP with QuickGELU (CLIP-style) --------------------------------
        z = _layer_norm(x, ln2w_ref[l], ln2b_ref[l])
        h = jnp.dot(z, w1_ref[l], preferred_element_type=jnp.float32) + b1_ref[l]
        h = h * jax.nn.sigmoid(1.702 * h)
        x = x + jnp.dot(h, w2_ref[l], preferred_element_type=jnp.float32) + b2_ref[l]

    # residual with original (pre-positional-embedding) tokens
    x = x + orig4
    xh = x[0 * Nt:1 * Nt] * x[1 * Nt:2 * Nt] - noise_ref[...]
    xt = x[2 * Nt:3 * Nt] * x[3 * Nt:4 * Nt]
    # Single lane-concatenated store (2D-wide) instead of two D-wide stores.
    out_ref[...] = jnp.concatenate([xh, xt], axis=1)


def triple_encoder(params, head, rel, tail):
    n, D = head.shape
    layers = params["ln1_w"].shape[0]
    heads = HEADS
    dh = D // heads

    rel1, rel2 = rel[:, :D], rel[:, D:]

    row_tile, n_pad = _choose_tiling(n)
    if n_pad != n:
        pad = ((0, n_pad - n), (0, 0))
        head = jnp.pad(head, pad)
        rel1 = jnp.pad(rel1, pad)
        rel2 = jnp.pad(rel2, pad)
        tail = jnp.pad(tail, pad)

    # Head-segment indicator matrices as trace-time constants (softmax scale
    # folded into the score-side matrix).
    seg = (np.arange(D)[:, None] // dh == np.arange(heads)[None, :]).astype(np.float32)
    ssc = jnp.asarray(seg / math.sqrt(dh))        # [D, H]
    st = jnp.asarray(np.ascontiguousarray(seg.T))  # [H, D]

    def row_spec(width):
        return pl.BlockSpec((row_tile, width), lambda i: (i, 0))

    def full_spec(shape):
        nd = len(shape)
        return pl.BlockSpec(shape, lambda i, _nd=nd: (0,) * _nd)

    weight_names = ["pos_emb", "noise", "ln1_w", "ln1_b", "wqkv", "bqkv",
                    "wo", "bo", "ln2_w", "ln2_b", "w1", "b1", "w2", "b2"]
    weights = [params[k] for k in weight_names]

    kernel = functools.partial(_triple_kernel, layers=layers)
    out = pl.pallas_call(
        kernel,
        out_shape=jax.ShapeDtypeStruct((n_pad, 2 * D), jnp.float32),
        grid=(n_pad // row_tile,),
        in_specs=[row_spec(D), row_spec(D), row_spec(D), row_spec(D),
                  full_spec(ssc.shape), full_spec(st.shape)]
                 + [full_spec(w.shape) for w in weights],
        out_specs=row_spec(2 * D),
        compiler_params=pltpu.CompilerParams(dimension_semantics=("parallel",)),
    )(head, rel1, rel2, tail, ssc, st, *weights)
    return out[:n, :D], out[:n, D:]


# ----------------------------------------------------------------------------
# Pallas kernel: row-normalize both operands and take the similarity matmul.
# ----------------------------------------------------------------------------
def _sim_kernel(a_ref, b_ref, out_ref):
    a = a_ref[...]
    b = b_ref[...]
    an = a * lax.rsqrt(jnp.sum(a * a, axis=-1, keepdims=True) + 1e-12)
    bn = b * lax.rsqrt(jnp.sum(b * b, axis=-1, keepdims=True) + 1e-12)
    out_ref[...] = lax.dot_general(
        an, bn, dimension_numbers=(((1,), (1,)), ((), ())),
        preferred_element_type=jnp.float32)


def normalized_sim(a, b):
    # bs/nbc are small here; full-array blocks are fine.
    # TODO(synk): tile into (8,128)-aligned output blocks if bs/nbc grow large.
    m, D = a.shape
    n, _ = b.shape
    return pl.pallas_call(
        _sim_kernel,
        out_shape=jax.ShapeDtypeStruct((m, n), jnp.float32),
        in_specs=[pl.BlockSpec((m, D), lambda: (0, 0)),
                  pl.BlockSpec((n, D), lambda: (0, 0))],
        out_specs=pl.BlockSpec((m, n), lambda: (0, 0)),
    )(a, b)


# ----------------------------------------------------------------------------
# ARClip forward (isTraining=False branch), glue in plain JAX.
# ----------------------------------------------------------------------------
def arclip_forward(params, head_emb, va_rel, class_emb):
    # head_emb: [bs, T, D]  va_rel: [bs] int  class_emb: [nbc, D]
    bs, _, D = head_emb.shape
    nbc = class_emb.shape[0]

    head_mean = jnp.mean(head_emb, axis=1)                        # [bs, D]
    sim = 0.5 * normalized_sim(head_mean, class_emb)              # [bs, nbc]

    # TODO(synk): the repeat/tile replication below could be folded into a
    # (call, batch, class) grid via index_maps instead of materializing
    # bs*nbc-row HBM arrays; at these sizes the extra traffic is negligible.
    head_rep = jnp.repeat(head_mean, nbc, axis=0)                 # [bs*nbc, D]
    class_rep = jnp.tile(class_emb, (bs, 1))                      # [bs*nbc, D]
    rel_fwd = jnp.repeat(params["rel_emb"][va_rel], nbc, axis=0)       # [bs*nbc, 2D]
    rel_inv = jnp.repeat(params["rel_emb"][va_rel + 3], nbc, axis=0)   # [bs*nbc, 2D]

    # Forward-relation and inverse-relation triples fused into ONE pallas_call.
    xh, xt = triple_encoder(
        params,
        jnp.concatenate([head_rep, class_rep], axis=0),
        jnp.concatenate([rel_fwd, rel_inv], axis=0),
        jnp.concatenate([class_rep, head_rep], axis=0))

    m = bs * nbc
    t_h = xh[:m].reshape(bs, nbc, D).mean(axis=1)
    t_t = xt[:m].reshape(bs, nbc, D).mean(axis=0)
    ti_h = xh[m:].reshape(bs, nbc, D).mean(axis=1)
    ti_t = xt[m:].reshape(bs, nbc, D).mean(axis=0)

    sim = sim + 0.25 * normalized_sim(t_h, t_t)
    sim = sim + 0.25 * normalized_sim(ti_h, ti_t)
    return sim


# ----------------------------------------------------------------------------
# Deterministic parameter initialization (shapes from ARClip.__init__).
# ----------------------------------------------------------------------------
def init_params(key, embed_dim=EMBED_DIM, layers=LAYERS):
    D = embed_dim
    ks = jax.random.split(key, 8)

    def nrm(k, shape, std=0.02):
        return std * jax.random.normal(k, shape, dtype=jnp.float32)

    return dict(
        rel_emb=nrm(ks[0], (6, 2 * D)),                 # relation_embeddings
        pos_emb=nrm(ks[1], (4, D)),                     # triple_position_embeddings
        noise=jax.random.normal(ks[2], (1, D), dtype=jnp.float32),
        ln1_w=jnp.ones((layers, 1, D), jnp.float32),
        ln1_b=jnp.zeros((layers, 1, D), jnp.float32),
        wqkv=nrm(ks[3], (layers, D, 3 * D)),            # MHA in_proj (transposed)
        bqkv=jnp.zeros((layers, 1, 3 * D), jnp.float32),
        wo=nrm(ks[4], (layers, D, D)),                  # MHA out_proj (transposed)
        bo=jnp.zeros((layers, 1, D), jnp.float32),
        ln2_w=jnp.ones((layers, 1, D), jnp.float32),
        ln2_b=jnp.zeros((layers, 1, D), jnp.float32),
        w1=nrm(ks[5], (layers, D, 4 * D)),              # mlp c_fc (transposed)
        b1=jnp.zeros((layers, 1, 4 * D), jnp.float32),
        w2=nrm(ks[6], (layers, 4 * D, D)),              # mlp c_proj (transposed)
        b2=jnp.zeros((layers, 1, D), jnp.float32),
    )


# TODO(synk): training branch (E2E_leaner with KLLoss) is not implemented —
# KLLoss is undefined in the provided source; only the inference path is ported.

if __name__ == "__main__":
    key = jax.random.PRNGKey(0)
    kp, kh, kc = jax.random.split(key, 3)
    params = init_params(kp)

    bs, nbc = 2, 4
    head_emb = jax.random.normal(kh, (bs, MAX_FRAMES, EMBED_DIM), dtype=jnp.float32)
    class_emb = jax.random.normal(kc, (nbc, EMBED_DIM), dtype=jnp.float32)
    va_rel = jnp.array([0, 1], dtype=jnp.int32)         # relation ids in {0,1,2}

    sim = jax.jit(arclip_forward)(params, head_emb, va_rel, class_emb)
    jax.block_until_ready(sim)
    assert sim.shape == (bs, nbc) and sim.dtype == jnp.float32
    assert bool(jnp.all(jnp.isfinite(sim)))
    print("KERNEL_OK")
</pallas_src>

<mosaic_0001>
module attributes {stable_mosaic.version = 11 : i64} {
  func.func @_sim_kernel(%arg0: memref<2x32xf32, #tpu.memory_space<vmem>>, %arg1: memref<4x32xf32, #tpu.memory_space<vmem>>, %arg2: memref<2x4xf32, #tpu.memory_space<vmem>>) attributes {dimension_semantics = [], scalar_prefetch = 0 : i64, scratch_operands = 0 : i64, tpu.core_type = #tpu.core_type<tc>} {
    %c0 = arith.constant 0 : index
    %c0_0 = arith.constant 0 : index
    %0 = vector.load %arg0[%c0, %c0_0] : memref<2x32xf32, #tpu.memory_space<vmem>>, vector<2x32xf32>
    %c0_1 = arith.constant 0 : index
    %c0_2 = arith.constant 0 : index
    %1 = vector.load %arg1[%c0_1, %c0_2] : memref<4x32xf32, #tpu.memory_space<vmem>>, vector<4x32xf32>
    %2 = arith.mulf %0, %0 : vector<2x32xf32>
    %cst = arith.constant dense<0.000000e+00> : vector<2xf32>
    %3 = vector.multi_reduction <add>, %2, %cst [1] : vector<2x32xf32> to vector<2xf32>
    %4 = vector.shape_cast %3 : vector<2xf32> to vector<2x1xf32>
    %cst_3 = arith.constant 9.99999996E-13 : f32
    %5 = vector.broadcast %cst_3 : f32 to vector<2x1xf32>
    %6 = arith.addf %4, %5 : vector<2x1xf32>
    %7 = math.rsqrt %6 : vector<2x1xf32>
    %8 = vector.broadcast %7 : vector<2x1xf32> to vector<2x32xf32>
    %9 = arith.mulf %0, %8 : vector<2x32xf32>
    %10 = arith.mulf %1, %1 : vector<4x32xf32>
    %cst_4 = arith.constant dense<0.000000e+00> : vector<4xf32>
    %11 = vector.multi_reduction <add>, %10, %cst_4 [1] : vector<4x32xf32> to vector<4xf32>
    %12 = vector.shape_cast %11 : vector<4xf32> to vector<4x1xf32>
    %cst_5 = arith.constant 9.99999996E-13 : f32
    %13 = vector.broadcast %cst_5 : f32 to vector<4x1xf32>
    %14 = arith.addf %12, %13 : vector<4x1xf32>
    %15 = math.rsqrt %14 : vector<4x1xf32>
    %16 = vector.broadcast %15 : vector<4x1xf32> to vector<4x32xf32>
    %17 = arith.mulf %1, %16 : vector<4x32xf32>
    %cst_6 = arith.constant dense<0.000000e+00> : vector<2x4xf32>
    %18 = tpu.matmul %9, %17, %cst_6 {dimension_numbers = #tpu.dot_dimension_numbers<[1], [1], [0], [0], [0, 0, 1, 0], [], []>} : vector<2x32xf32>, vector<4x32xf32>, vector<2x4xf32> -> vector<2x4xf32>
    %c0_7 = arith.constant 0 : index
    %c0_8 = arith.constant 0 : index
    %19 = vector.load %arg2[%c0_7, %c0_8] : memref<2x4xf32, #tpu.memory_space<vmem>>, vector<2x4xf32>
    tpu.vector_store %arg2[%c0_7, %c0_8], %18 {strides = array<i32>} : memref<2x4xf32, #tpu.memory_space<vmem>>, vector<2x4xf32>,
    return
  }
}

module attributes {stable_mosaic.version = 11 : i64} {
  func.func @_triple_kernel(%arg0: i32, %arg1: memref<8x32xf32, #tpu.memory_space<vmem>>, %arg2: memref<8x32xf32, #tpu.memory_space<vmem>>, %arg3: memref<8x32xf32, #tpu.memory_space<vmem>>, %arg4: memref<8x32xf32, #tpu.memory_space<vmem>>, %arg5: memref<32x4xf32, #tpu.memory_space<vmem>>, %arg6: memref<4x32xf32, #tpu.memory_space<vmem>>, %arg7: memref<4x32xf32, #tpu.memory_space<vmem>>, %arg8: memref<1x32xf32, #tpu.memory_space<vmem>>, %arg9: memref<3x1x32xf32, #tpu.memory_space<vmem>>, %arg10: memref<3x1x32xf32, #tpu.memory_space<vmem>>, %arg11: memref<3x32x96xf32, #tpu.memory_space<vmem>>, %arg12: memref<3x1x96xf32, #tpu.memory_space<vmem>>, %arg13: memref<3x32x32xf32, #tpu.memory_space<vmem>>, %arg14: memref<3x1x32xf32, #tpu.memory_space<vmem>>, %arg15: memref<3x1x32xf32, #tpu.memory_space<vmem>>, %arg16: memref<3x1x32xf32, #tpu.memory_space<vmem>>, %arg17: memref<3x32x128xf32, #tpu.memory_space<vmem>>, %arg18: memref<3x1x128xf32, #tpu.memory_space<vmem>>, %arg19: memref<3x128x32xf32, #tpu.memory_space<vmem>>, %arg20: memref<3x1x32xf32, #tpu.memory_space<vmem>>, %arg21: memref<8x64xf32, #tpu.memory_space<vmem>>) attributes {dimension_semantics = [#tpu.dimension_semantics<parallel>], iteration_bounds = array<i64: 2>, scalar_prefetch = 0 : i64, scratch_operands = 0 : i64, tpu.core_type = #tpu.core_type<tc>, window_params = [{transform_indices = @transform_0, window_bounds = array<i64: 8, 32>}, {transform_indices = @transform_1, window_bounds = array<i64: 8, 32>}, {transform_indices = @transform_2, window_bounds = array<i64: 8, 32>}, {transform_indices = @transform_3, window_bounds = array<i64: 8, 32>}, {pipeline_mode = #tpu.pipeline_mode<synchronous>, transform_indices = @transform_4, window_bounds = array<i64: 32, 4>}, {pipeline_mode = #tpu.pipeline_mode<synchronous>, transform_indices = @transform_5, window_bounds = array<i64: 4, 32>}, {pipeline_mode = #tpu.pipeline_mode<synchronous>, transform_indices = @transform_6, window_bounds = array<i64: 4, 32>}, {pipeline_mode = #tpu.pipeline_mode<synchronous>, transform_indices = @transform_7, window_bounds = array<i64: 1, 32>}, {pipeline_mode = #tpu.pipeline_mode<synchronous>, transform_indices = @transform_8, window_bounds = array<i64: 3, 1, 32>}, {pipeline_mode = #tpu.pipeline_mode<synchronous>, transform_indices = @transform_9, window_bounds = array<i64: 3, 1, 32>}, {pipeline_mode = #tpu.pipeline_mode<synchronous>, transform_indices = @transform_10, window_bounds = array<i64: 3, 32, 96>}, {pipeline_mode = #tpu.pipeline_mode<synchronous>, transform_indices = @transform_11, window_bounds = array<i64: 3, 1, 96>}, {pipeline_mode = #tpu.pipeline_mode<synchronous>, transform_indices = @transform_12, window_bounds = array<i64: 3, 32, 32>}, {pipeline_mode = #tpu.pipeline_mode<synchronous>, transform_indices = @transform_13, window_bounds = array<i64: 3, 1, 32>}, {pipeline_mode = #tpu.pipeline_mode<synchronous>, transform_indices = @transform_14, window_bounds = array<i64: 3, 1, 32>}, {pipeline_mode = #tpu.pipeline_mode<synchronous>, transform_indices = @transform_15, window_bounds = array<i64: 3, 1, 32>}, {pipeline_mode = #tpu.pipeline_mode<synchronous>, transform_indices = @transform_16, window_bounds = array<i64: 3, 32, 128>}, {pipeline_mode = #tpu.pipeline_mode<synchronous>, transform_indices = @transform_17, window_bounds = array<i64: 3, 1, 128>}, {pipeline_mode = #tpu.pipeline_mode<synchronous>, transform_indices = @transform_18, window_bounds = array<i64: 3, 128, 32>}, {pipeline_mode = #tpu.pipeline_mode<synchronous>, transform_indices = @transform_19, window_bounds = array<i64: 3, 1, 32>}, {transform_indices = @transform_20, window_bounds = array<i64: 8, 64>}]} {
    %c0 = arith.constant 0 : index
    %c0_0 = arith.constant 0 : index
    %0 = vector.load %arg1[%c0, %c0_0] : memref<8x32xf32, #tpu.memory_space<vmem>>, vector<8x32xf32>
    %c0_1 = arith.constant 0 : index
    %c0_2 = arith.constant 0 : index
    %1 = vector.load %arg2[%c0_1, %c0_2] : memref<8x32xf32, #tpu.memory_space<vmem>>, vector<8x32xf32>
    %c0_3 = arith.constant 0 : index
    %c0_4 = arith.constant 0 : index
    %2 = vector.load %arg3[%c0_3, %c0_4] : memref<8x32xf32, #tpu.memory_space<vmem>>, vector<8x32xf32>
    %c0_5 = arith.constant 0 : index
    %c0_6 = arith.constant 0 : index
    %3 = vector.load %arg4[%c0_5, %c0_6] : memref<8x32xf32, #tpu.memory_space<vmem>>, vector<8x32xf32>
    %c0_7 = arith.constant 0 : index
    %c0_8 = arith.constant 0 : index
    %4 = vector.load %arg7[%c0_7, %c0_8] : memref<4x32xf32, #tpu.memory_space<vmem>>, vector<4x32xf32>
    %5 = vector.extract_strided_slice %4 {offsets = [0, 0], sizes = [1, 32], strides = [1, 1]} : vector<4x32xf32> to vector<1x32xf32>
    %6 = vector.broadcast %5 : vector<1x32xf32> to vector<8x32xf32>
    %7 = arith.addf %0, %6 : vector<8x32xf32>
    %8 = vector.extract_strided_slice %4 {offsets = [1, 0], sizes = [1, 32], strides = [1, 1]} : vector<4x32xf32> to vector<1x32xf32>
    %9 = vector.broadcast %8 : vector<1x32xf32> to vector<8x32xf32>
    %10 = arith.addf %1, %9 : vector<8x32xf32>
    %11 = vector.extract_strided_slice %4 {offsets = [2, 0], sizes = [1, 32], strides = [1, 1]} : vector<4x32xf32> to vector<1x32xf32>
    %12 = vector.broadcast %11 : vector<1x32xf32> to vector<8x32xf32>
    %13 = arith.addf %2, %12 : vector<8x32xf32>
    %14 = vector.extract_strided_slice %4 {offsets = [3, 0], sizes = [1, 32], strides = [1, 1]} : vector<4x32xf32> to vector<1x32xf32>
    %15 = vector.broadcast %14 : vector<1x32xf32> to vector<8x32xf32>
    %16 = arith.addf %3, %15 : vector<8x32xf32>
    %17 = tpu.concatenate %7, %10, %13, %16 in 0 : vector<8x32xf32>, vector<8x32xf32>, vector<8x32xf32>, vector<8x32xf32> -> vector<32x32xf32>
    %18 = tpu.concatenate %0, %1, %2, %3 in 0 : vector<8x32xf32>, vector<8x32xf32>, vector<8x32xf32>, vector<8x32xf32> -> vector<32x32xf32>
    %c0_9 = arith.constant 0 : index
    %c0_10 = arith.constant 0 : index
    %19 = vector.load %arg5[%c0_9, %c0_10] : memref<32x4xf32, #tpu.memory_space<vmem>>, vector<32x4xf32>
    %c0_11 = arith.constant 0 : index
    %c0_12 = arith.constant 0 : index
    %20 = vector.load %arg6[%c0_11, %c0_12] : memref<4x32xf32, #tpu.memory_space<vmem>>, vector<4x32xf32>
    %c0_13 = arith.constant 0 : index
    %c0_14 = arith.constant 0 : index
    %c0_15 = arith.constant 0 : index
    %21 = vector.load %arg9[%c0_13, %c0_14, %c0_15] : memref<3x1x32xf32, #tpu.memory_space<vmem>>, vector<1x1x32xf32>
    %22 = vector.shape_cast %21 : vector<1x1x32xf32> to vector<1x32xf32>
    %c0_16 = arith.constant 0 : index
    %c0_17 = arith.constant 0 : index
    %c0_18 = arith.constant 0 : index
    %23 = vector.load %arg10[%c0_16, %c0_17, %c0_18] : memref<3x1x32xf32, #tpu.memory_space<vmem>>, vector<1x1x32xf32>
    %24 = vector.shape_cast %23 : vector<1x1x32xf32> to vector<1x32xf32>
    %cst = arith.constant dense<0.000000e+00> : vector<32xf32>
    %25 = vector.multi_reduction <add>, %17, %cst [1] : vector<32x32xf32> to vector<32xf32>
    %26 = vector.shape_cast %25 : vector<32xf32> to vector<32x1xf32>
    %cst_19 = arith.constant 3.200000e+01 : f32
    %27 = vector.broadcast %cst_19 : f32 to vector<32x1xf32>
    %28 = arith.divf %26, %27 : vector<32x1xf32>
    %29 = vector.broadcast %28 : vector<32x1xf32> to vector<32x32xf32>
    %30 = arith.subf %17, %29 : vector<32x32xf32>
    %31 = arith.mulf %30, %30 : vector<32x32xf32>
    %cst_20 = arith.constant dense<0.000000e+00> : vector<32xf32>
    %32 = vector.multi_reduction <add>, %31, %cst_20 [1] : vector<32x32xf32> to vector<32xf32>
    %33 = vector.shape_cast %32 : vector<32xf32> to vector<32x1xf32>
    %cst_21 = arith.constant 3.200000e+01 : f32
    %34 = vector.broadcast %cst_21 : f32 to vector<32x1xf32>
    %35 = arith.divf %33, %34 : vector<32x1xf32>
    %36 = vector.broadcast %28 : vector<32x1xf32> to vector<32x32xf32>
    %37 = arith.subf %17, %36 : vector<32x32xf32>
    %cst_22 = arith.constant 9.99999974E-6 : f32
    %38 = vector.broadcast %cst_22 : f32 to vector<32x1xf32>
    %39 = arith.addf %35, %38 : vector<32x1xf32>
    %40 = math.rsqrt %39 : vector<32x1xf32>
    %41 = vector.broadcast %40 : vector<32x1xf32> to vector<32x32xf32>
    %42 = arith.mulf %37, %41 : vector<32x32xf32>
    %43 = vector.broadcast %22 : vector<1x32xf32> to vector<32x32xf32>
    %44 = arith.mulf %42, %43 : vector<32x32xf32>
    %45 = vector.broadcast %24 : vector<1x32xf32> to vector<32x32xf32>
    %46 = arith.addf %44, %45 : vector<32x32xf32>
    %c0_23 = arith.constant 0 : index
    %c0_24 = arith.constant 0 : index
    %c0_25 = arith.constant 0 : index
    %47 = vector.load %arg11[%c0_23, %c0_24, %c0_25] : memref<3x32x96xf32, #tpu.memory_space<vmem>>, vector<1x32x96xf32>
    %48 = vector.shape_cast %47 : vector<1x32x96xf32> to vector<32x96xf32>
    %cst_26 = arith.constant dense<0.000000e+00> : vector<32x96xf32>
    %49 = tpu.matmul %46, %48, %cst_26 {dimension_numbers = #tpu.dot_dimension_numbers<[1], [0], [0], [1], [0, 0, 1, 1], [], []>} : vector<32x32xf32>, vector<32x96xf32>, vector<32x96xf32> -> vector<32x96xf32>
    %c0_27 = arith.constant 0 : index
    %c0_28 = arith.constant 0 : index
    %c0_29 = arith.constant 0 : index
    %50 = vector.load %arg12[%c0_27, %c0_28, %c0_29] : memref<3x1x96xf32, #tpu.memory_space<vmem>>, vector<1x1x96xf32>
    %51 = vector.shape_cast %50 : vector<1x1x96xf32> to vector<1x96xf32>
    %52 = vector.broadcast %51 : vector<1x96xf32> to vector<32x96xf32>
    %53 = arith.addf %49, %52 : vector<32x96xf32>
    %54 = vector.extract_strided_slice %53 {offsets = [0, 0], sizes = [8, 32], strides = [1, 1]} : vector<32x96xf32> to vector<8x32xf32>
    %55 = vector.extract_strided_slice %53 {offsets = [8, 0], sizes = [8, 32], strides = [1, 1]} : vector<32x96xf32> to vector<8x32xf32>
    %56 = vector.extract_strided_slice %53 {offsets = [16, 0], sizes = [8, 32], strides = [1, 1]} : vector<32x96xf32> to vector<8x32xf32>
    %57 = vector.extract_strided_slice %53 {offsets = [24, 0], sizes = [8, 32], strides = [1, 1]} : vector<32x96xf32> to vector<8x32xf32>
    %58 = vector.extract_strided_slice %53 {offsets = [0, 32], sizes = [8, 32], strides = [1, 1]} : vector<32x96xf32> to vector<8x32xf32>
    %59 = vector.extract_strided_slice %53 {offsets = [8, 32], sizes = [8, 32], strides = [1, 1]} : vector<32x96xf32> to vector<8x32xf32>
    %60 = vector.extract_strided_slice %53 {offsets = [16, 32], sizes = [8, 32], strides = [1, 1]} : vector<32x96xf32> to vector<8x32xf32>
    %61 = vector.extract_strided_slice %53 {offsets = [24, 32], sizes = [8, 32], strides = [1, 1]} : vector<32x96xf32> to vector<8x32xf32>
    %62 = vector.extract_strided_slice %53 {offsets = [0, 64], sizes = [8, 32], strides = [1, 1]} : vector<32x96xf32> to vector<8x32xf32>
    %63 = vector.extract_strided_slice %53 {offsets = [8, 64], sizes = [8, 32], strides = [1, 1]} : vector<32x96xf32> to vector<8x32xf32>
    %64 = vector.extract_strided_slice %53 {offsets = [16, 64], sizes = [8, 32], strides = [1, 1]} : vector<32x96xf32> to vector<8x32xf32>
    %65 = vector.extract_strided_slice %53 {offsets = [24, 64], sizes = [8, 32], strides = [1, 1]} : vector<32x96xf32> to vector<8x32xf32>
    %66 = arith.mulf %54, %58 : vector<8x32xf32>
    %67 = arith.mulf %54, %59 : vector<8x32xf32>
    %68 = arith.mulf %54, %60 : vector<8x32xf32>
    %69 = arith.mulf %54, %61 : vector<8x32xf32>
    %70 = arith.mulf %55, %58 : vector<8x32xf32>
    %71 = arith.mulf %55, %59 : vector<8x32xf32>
    %72 = arith.mulf %55, %60 : vector<8x32xf32>
    %73 = arith.mulf %55, %61 : vector<8x32xf32>
    %74 = arith.mulf %56, %58 : vector<8x32xf32>
    %75 = arith.mulf %56, %59 : vector<8x32xf32>
    %76 = arith.mulf %56, %60 : vector<8x32xf32>
    %77 = arith.mulf %56, %61 : vector<8x32xf32>
    %78 = arith.mulf %57, %58 : vector<8x32xf32>
    %79 = arith.mulf %57, %59 : vector<8x32xf32>
    %80 = arith.mulf %57, %60 : vector<8x32xf32>
    %81 = arith.mulf %57, %61 : vector<8x32xf32>
    %82 = tpu.concatenate %66, %67, %68, %69, %70, %71, %72, %73, %74, %75, %76, %77, %78, %79, %80, %81 in 0 : vector<8x32xf32>, vector<8x32xf32>, vector<8x32xf32>, vector<8x32xf32>, vector<8x32xf32>, vector<8x32xf32>, vector<8x32xf32>, vector<8x32xf32>, vector<8x32xf32>, vector<8x32xf32>, vector<8x32xf32>, vector<8x32xf32>, vector<8x32xf32>, vector<8x32xf32>, vector<8x32xf32>, vector<8x32xf32> -> vector<128x32xf32>
    %cst_30 = arith.constant dense<0.000000e+00> : vector<128x4xf32>
    %83 = tpu.matmul %82, %19, %cst_30 {dimension_numbers = #tpu.dot_dimension_numbers<[1], [0], [0], [1], [0, 0, 1, 1], [], []>} : vector<128x32xf32>, vector<32x4xf32>, vector<128x4xf32> -> vector<128x4xf32>
    %84 = vector.extract_strided_slice %83 {offsets = [0, 0], sizes = [8, 4], strides = [1, 1]} : vector<128x4xf32> to vector<8x4xf32>
    %85 = vector.extract_strided_slice %83 {offsets = [8, 0], sizes = [8, 4], strides = [1, 1]} : vector<128x4xf32> to vector<8x4xf32>
    %86 = vector.extract_strided_slice %83 {offsets = [16, 0], sizes = [8, 4], strides = [1, 1]} : vector<128x4xf32> to vector<8x4xf32>
    %87 = vector.extract_strided_slice %83 {offsets = [24, 0], sizes = [8, 4], strides = [1, 1]} : vector<128x4xf32> to vector<8x4xf32>
    %88 = vector.extract_strided_slice %83 {offsets = [32, 0], sizes = [8, 4], strides = [1, 1]} : vector<128x4xf32> to vector<8x4xf32>
    %89 = vector.extract_strided_slice %83 {offsets = [40, 0], sizes = [8, 4], strides = [1, 1]} : vector<128x4xf32> to vector<8x4xf32>
    %90 = vector.extract_strided_slice %83 {offsets = [48, 0], sizes = [8, 4], strides = [1, 1]} : vector<128x4xf32> to vector<8x4xf32>
    %91 = vector.extract_strided_slice %83 {offsets = [56, 0], sizes = [8, 4], strides = [1, 1]} : vector<128x4xf32> to vector<8x4xf32>
    %92 = vector.extract_strided_slice %83 {offsets = [64, 0], sizes = [8, 4], strides = [1, 1]} : vector<128x4xf32> to vector<8x4xf32>
    %93 = vector.extract_strided_slice %83 {offsets = [72, 0], sizes = [8, 4], strides = [1, 1]} : vector<128x4xf32> to vector<8x4xf32>
    %94 = vector.extract_strided_slice %83 {offsets = [80, 0], sizes = [8, 4], strides = [1, 1]} : vector<128x4xf32> to vector<8x4xf32>
    %95 = vector.extract_strided_slice %83 {offsets = [88, 0], sizes = [8, 4], strides = [1, 1]} : vector<128x4xf32> to vector<8x4xf32>
    %96 = vector.extract_strided_slice %83 {offsets = [96, 0], sizes = [8, 4], strides = [1, 1]} : vector<128x4xf32> to vector<8x4xf32>
    %97 = vector.extract_strided_slice %83 {offsets = [104, 0], sizes = [8, 4], strides = [1, 1]} : vector<128x4xf32> to vector<8x4xf32>
    %98 = vector.extract_strided_slice %83 {offsets = [112, 0], sizes = [8, 4], strides = [1, 1]} : vector<128x4xf32> to vector<8x4xf32>
    %99 = vector.extract_strided_slice %83 {offsets = [120, 0], sizes = [8, 4], strides = [1, 1]} : vector<128x4xf32> to vector<8x4xf32>
    %100 = arith.maximumf %84, %85 : vector<8x4xf32>
    %101 = arith.maximumf %86, %87 : vector<8x4xf32>
    %102 = arith.maximumf %100, %101 : vector<8x4xf32>
    %103 = arith.subf %84, %102 : vector<8x4xf32>
    %104 = math.exp %103 : vector<8x4xf32>
    %105 = arith.subf %85, %102 : vector<8x4xf32>
    %106 = math.exp %105 : vector<8x4xf32>
    %107 = arith.subf %86, %102 : vector<8x4xf32>
    %108 = math.exp %107 : vector<8x4xf32>
    %109 = arith.subf %87, %102 : vector<8x4xf32>
    %110 = math.exp %109 : vector<8x4xf32>
    %111 = arith.addf %104, %106 : vector<8x4xf32>
    %112 = arith.addf %111, %108 : vector<8x4xf32>
    %113 = arith.addf %112, %110 : vector<8x4xf32>
    %114 = tpu.reciprocal %113 {approx = true} : vector<8x4xf32> -> vector<8x4xf32>
    %115 = arith.mulf %104, %114 : vector<8x4xf32>
    %116 = arith.mulf %106, %114 : vector<8x4xf32>
    %117 = arith.mulf %108, %114 : vector<8x4xf32>
    %118 = arith.mulf %110, %114 : vector<8x4xf32>
    %119 = arith.maximumf %88, %89 : vector<8x4xf32>
    %120 = arith.maximumf %90, %91 : vector<8x4xf32>
    %121 = arith.maximumf %119, %120 : vector<8x4xf32>
    %122 = arith.subf %88, %121 : vector<8x4xf32>
    %123 = math.exp %122 : vector<8x4xf32>
    %124 = arith.subf %89, %121 : vector<8x4xf32>
    %125 = math.exp %124 : vector<8x4xf32>
    %126 = arith.subf %90, %121 : vector<8x4xf32>
    %127 = math.exp %126 : vector<8x4xf32>
    %128 = arith.subf %91, %121 : vector<8x4xf32>
    %129 = math.exp %128 : vector<8x4xf32>
    %130 = arith.addf %123, %125 : vector<8x4xf32>
    %131 = arith.addf %130, %127 : vector<8x4xf32>
    %132 = arith.addf %131, %129 : vector<8x4xf32>
    %133 = tpu.reciprocal %132 {approx = true} : vector<8x4xf32> -> vector<8x4xf32>
    %134 = arith.mulf %123, %133 : vector<8x4xf32>
    %135 = arith.mulf %125, %133 : vector<8x4xf32>
    %136 = arith.mulf %127, %133 : vector<8x4xf32>
    %137 = arith.mulf %129, %133 : vector<8x4xf32>
    %138 = arith.maximumf %92, %93 : vector<8x4xf32>
    %139 = arith.maximumf %94, %95 : vector<8x4xf32>
    %140 = arith.maximumf %138, %139 : vector<8x4xf32>
    %141 = arith.subf %92, %140 : vector<8x4xf32>
    %142 = math.exp %141 : vector<8x4xf32>
    %143 = arith.subf %93, %140 : vector<8x4xf32>
    %144 = math.exp %143 : vector<8x4xf32>
    %145 = arith.subf %94, %140 : vector<8x4xf32>
    %146 = math.exp %145 : vector<8x4xf32>
    %147 = arith.subf %95, %140 : vector<8x4xf32>
    %148 = math.exp %147 : vector<8x4xf32>
    %149 = arith.addf %142, %144 : vector<8x4xf32>
    %150 = arith.addf %149, %146 : vector<8x4xf32>
    %151 = arith.addf %150, %148 : vector<8x4xf32>
    %152 = tpu.reciprocal %151 {approx = true} : vector<8x4xf32> -> vector<8x4xf32>
    %153 = arith.mulf %142, %152 : vector<8x4xf32>
    %154 = arith.mulf %144, %152 : vector<8x4xf32>
    %155 = arith.mulf %146, %152 : vector<8x4xf32>
    %156 = arith.mulf %148, %152 : vector<8x4xf32>
    %157 = arith.maximumf %96, %97 : vector<8x4xf32>
    %158 = arith.maximumf %98, %99 : vector<8x4xf32>
    %159 = arith.maximumf %157, %158 : vector<8x4xf32>
    %160 = arith.subf %96, %159 : vector<8x4xf32>
    %161 = math.exp %160 : vector<8x4xf32>
    %162 = arith.subf %97, %159 : vector<8x4xf32>
    %163 = math.exp %162 : vector<8x4xf32>
    %164 = arith.subf %98, %159 : vector<8x4xf32>
    %165 = math.exp %164 : vector<8x4xf32>
    %166 = arith.subf %99, %159 : vector<8x4xf32>
    %167 = math.exp %166 : vector<8x4xf32>
    %168 = arith.addf %161, %163 : vector<8x4xf32>
    %169 = arith.addf %168, %165 : vector<8x4xf32>
    %170 = arith.addf %169, %167 : vector<8x4xf32>
    %171 = tpu.reciprocal %170 {approx = true} : vector<8x4xf32> -> vector<8x4xf32>
    %172 = arith.mulf %161, %171 : vector<8x4xf32>
    %173 = arith.mulf %163, %171 : vector<8x4xf32>
    %174 = arith.mulf %165, %171 : vector<8x4xf32>
    %175 = arith.mulf %167, %171 : vector<8x4xf32>
    %176 = tpu.concatenate %115, %116, %117, %118, %134, %135, %136, %137, %153, %154, %155, %156, %172, %173, %174, %175 in 0 : vector<8x4xf32>, vector<8x4xf32>, vector<8x4xf32>, vector<8x4xf32>, vector<8x4xf32>, vector<8x4xf32>, vector<8x4xf32>, vector<8x4xf32>, vector<8x4xf32>, vector<8x4xf32>, vector<8x4xf32>, vector<8x4xf32>, vector<8x4xf32>, vector<8x4xf32>, vector<8x4xf32>, vector<8x4xf32> -> vector<128x4xf32>
    %cst_31 = arith.constant dense<0.000000e+00> : vector<128x32xf32>
    %177 = tpu.matmul %176, %20, %cst_31 {dimension_numbers = #tpu.dot_dimension_numbers<[1], [0], [0], [1], [0, 0, 1, 1], [], []>} : vector<128x4xf32>, vector<4x32xf32>, vector<128x32xf32> -> vector<128x32xf32>
    %178 = vector.extract_strided_slice %177 {offsets = [0, 0], sizes = [8, 32], strides = [1, 1]} : vector<128x32xf32> to vector<8x32xf32>
    %179 = arith.mulf %178, %62 : vector<8x32xf32>
    %cst_32 = arith.constant 0.000000e+00 : f32
    %180 = vector.broadcast %cst_32 : f32 to vector<8x32xf32>
    %181 = arith.addf %180, %179 : vector<8x32xf32>
    %182 = vector.extract_strided_slice %177 {offsets = [8, 0], sizes = [8, 32], strides = [1, 1]} : vector<128x32xf32> to vector<8x32xf32>
    %183 = arith.mulf %182, %63 : vector<8x32xf32>
    %184 = arith.addf %181, %183 : vector<8x32xf32>
    %185 = vector.extract_strided_slice %177 {offsets = [16, 0], sizes = [8, 32], strides = [1, 1]} : vector<128x32xf32> to vector<8x32xf32>
    %186 = arith.mulf %185, %64 : vector<8x32xf32>
    %187 = arith.addf %184, %186 : vector<8x32xf32>
    %188 = vector.extract_strided_slice %177 {offsets = [24, 0], sizes = [8, 32], strides = [1, 1]} : vector<128x32xf32> to vector<8x32xf32>
    %189 = arith.mulf %188, %65 : vector<8x32xf32>
    %190 = arith.addf %187, %189 : vector<8x32xf32>
    %191 = vector.extract_strided_slice %177 {offsets = [32, 0], sizes = [8, 32], strides = [1, 1]} : vector<128x32xf32> to vector<8x32xf32>
    %192 = arith.mulf %191, %62 : vector<8x32xf32>
    %cst_33 = arith.constant 0.000000e+00 : f32
    %193 = vector.broadcast %cst_33 : f32 to vector<8x32xf32>
    %194 = arith.addf %193, %192 : vector<8x32xf32>
    %195 = vector.extract_strided_slice %177 {offsets = [40, 0], sizes = [8, 32], strides = [1, 1]} : vector<128x32xf32> to vector<8x32xf32>
    %196 = arith.mulf %195, %63 : vector<8x32xf32>
    %197 = arith.addf %194, %196 : vector<8x32xf32>
    %198 = vector.extract_strided_slice %177 {offsets = [48, 0], sizes = [8, 32], strides = [1, 1]} : vector<128x32xf32> to vector<8x32xf32>
    %199 = arith.mulf %198, %64 : vector<8x32xf32>
    %200 = arith.addf %197, %199 : vector<8x32xf32>
    %201 = vector.extract_strided_slice %177 {offsets = [56, 0], sizes = [8, 32], strides = [1, 1]} : vector<128x32xf32> to vector<8x32xf32>
    %202 = arith.mulf %201, %65 : vector<8x32xf32>
    %203 = arith.addf %200, %202 : vector<8x32xf32>
    %204 = vector.extract_strided_slice %177 {offsets = [64, 0], sizes = [8, 32], strides = [1, 1]} : vector<128x32xf32> to vector<8x32xf32>
    %205 = arith.mulf %204, %62 : vector<8x32xf32>
    %cst_34 = arith.constant 0.000000e+00 : f32
    %206 = vector.broadcast %cst_34 : f32 to vector<8x32xf32>
    %207 = arith.addf %206, %205 : vector<8x32xf32>
    %208 = vector.extract_strided_slice %177 {offsets = [72, 0], sizes = [8, 32], strides = [1, 1]} : vector<128x32xf32> to vector<8x32xf32>
    %209 = arith.mulf %208, %63 : vector<8x32xf32>
    %210 = arith.addf %207, %209 : vector<8x32xf32>
    %211 = vector.extract_strided_slice %177 {offsets = [80, 0], sizes = [8, 32], strides = [1, 1]} : vector<128x32xf32> to vector<8x32xf32>
    %212 = arith.mulf %211, %64 : vector<8x32xf32>
    %213 = arith.addf %210, %212 : vector<8x32xf32>
    %214 = vector.extract_strided_slice %177 {offsets = [88, 0], sizes = [8, 32], strides = [1, 1]} : vector<128x32xf32> to vector<8x32xf32>
    %215 = arith.mulf %214, %65 : vector<8x32xf32>
    %216 = arith.addf %213, %215 : vector<8x32xf32>
    %217 = vector.extract_strided_slice %177 {offsets = [96, 0], sizes = [8, 32], strides = [1, 1]} : vector<128x32xf32> to vector<8x32xf32>
    %218 = arith.mulf %217, %62 : vector<8x32xf32>
    %cst_35 = arith.constant 0.000000e+00 : f32
    %219 = vector.broadcast %cst_35 : f32 to vector<8x32xf32>
    %220 = arith.addf %219, %218 : vector<8x32xf32>
    %221 = vector.extract_strided_slice %177 {offsets = [104, 0], sizes = [8, 32], strides = [1, 1]} : vector<128x32xf32> to vector<8x32xf32>
    %222 = arith.mulf %221, %63 : vector<8x32xf32>
    %223 = arith.addf %220, %222 : vector<8x32xf32>
    %224 = vector.extract_strided_slice %177 {offsets = [112, 0], sizes = [8, 32], strides = [1, 1]} : vector<128x32xf32> to vector<8x32xf32>
    %225 = arith.mulf %224, %64 : vector<8x32xf32>
    %226 = arith.addf %223, %225 : vector<8x32xf32>
    %227 = vector.extract_strided_slice %177 {offsets = [120, 0], sizes = [8, 32], strides = [1, 1]} : vector<128x32xf32> to vector<8x32xf32>
    %228 = arith.mulf %227, %65 : vector<8x32xf32>
    %229 = arith.addf %226, %228 : vector<8x32xf32>
    %230 = tpu.concatenate %190, %203, %216, %229 in 0 : vector<8x32xf32>, vector<8x32xf32>, vector<8x32xf32>, vector<8x32xf32> -> vector<32x32xf32>
    %c0_36 = arith.constant 0 : index
    %c0_37 = arith.constant 0 : index
    %c0_38 = arith.constant 0 : index
    %231 = vector.load %arg13[%c0_36, %c0_37, %c0_38] : memref<3x32x32xf32, #tpu.memory_space<vmem>>, vector<1x32x32xf32>
    %232 = vector.shape_cast %231 : vector<1x32x32xf32> to vector<32x32xf32>
    %cst_39 = arith.constant dense<0.000000e+00> : vector<32x32xf32>
    %233 = tpu.matmul %230, %232, %cst_39 {dimension_numbers = #tpu.dot_dimension_numbers<[1], [0], [0], [1], [0, 0, 1, 1], [], []>} : vector<32x32xf32>, vector<32x32xf32>, vector<32x32xf32> -> vector<32x32xf32>
    %234 = arith.addf %17, %233 : vector<32x32xf32>
    %c0_40 = arith.constant 0 : index
    %c0_41 = arith.constant 0 : index
    %c0_42 = arith.constant 0 : index
    %235 = vector.load %arg14[%c0_40, %c0_41, %c0_42] : memref<3x1x32xf32, #tpu.memory_space<vmem>>, vector<1x1x32xf32>
    %236 = vector.shape_cast %235 : vector<1x1x32xf32> to vector<1x32xf32>
    %237 = vector.broadcast %236 : vector<1x32xf32> to vector<32x32xf32>
    %238 = arith.addf %234, %237 : vector<32x32xf32>
    %c0_43 = arith.constant 0 : index
    %c0_44 = arith.constant 0 : index
    %c0_45 = arith.constant 0 : index
    %239 = vector.load %arg15[%c0_43, %c0_44, %c0_45] : memref<3x1x32xf32, #tpu.memory_space<vmem>>, vector<1x1x32xf32>
    %240 = vector.shape_cast %239 : vector<1x1x32xf32> to vector<1x32xf32>
    %c0_46 = arith.constant 0 : index
    %c0_47 = arith.constant 0 : index
    %c0_48 = arith.constant 0 : index
    %241 = vector.load %arg16[%c0_46, %c0_47, %c0_48] : memref<3x1x32xf32, #tpu.memory_space<vmem>>, vector<1x1x32xf32>
    %242 = vector.shape_cast %241 : vector<1x1x32xf32> to vector<1x32xf32>
    %cst_49 = arith.constant dense<0.000000e+00> : vector<32xf32>
    %243 = vector.multi_reduction <add>, %238, %cst_49 [1] : vector<32x32xf32> to vector<32xf32>
    %244 = vector.shape_cast %243 : vector<32xf32> to vector<32x1xf32>
    %cst_50 = arith.constant 3.200000e+01 : f32
    %245 = vector.broadcast %cst_50 : f32 to vector<32x1xf32>
    %246 = arith.divf %244, %245 : vector<32x1xf32>
    %247 = vector.broadcast %246 : vector<32x1xf32> to vector<32x32xf32>
    %248 = arith.subf %238, %247 : vector<32x32xf32>
    %249 = arith.mulf %248, %248 : vector<32x32xf32>
    %cst_51 = arith.constant dense<0.000000e+00> : vector<32xf32>
    %250 = vector.multi_reduction <add>, %249, %cst_51 [1] : vector<32x32xf32> to vector<32xf32>
    %251 = vector.shape_cast %250 : vector<32xf32> to vector<32x1xf32>
    %cst_52 = arith.constant 3.200000e+01 : f32
    %252 = vector.broadcast %cst_52 : f32 to vector<32x1xf32>
    %253 = arith.divf %251, %252 : vector<32x1xf32>
    %254 = vector.broadcast %246 : vector<32x1xf32> to vector<32x32xf32>
    %255 = arith.subf %238, %254 : vector<32x32xf32>
    %cst_53 = arith.constant 9.99999974E-6 : f32
    %256 = vector.broadcast %cst_53 : f32 to vector<32x1xf32>
    %257 = arith.addf %253, %256 : vector<32x1xf32>
    %258 = math.rsqrt %257 : vector<32x1xf32>
    %259 = vector.broadcast %258 : vector<32x1xf32> to vector<32x32xf32>
    %260 = arith.mulf %255, %259 : vector<32x32xf32>
    %261 = vector.broadcast %240 : vector<1x32xf32> to vector<32x32xf32>
    %262 = arith.mulf %260, %261 : vector<32x32xf32>
    %263 = vector.broadcast %242 : vector<1x32xf32> to vector<32x32xf32>
    %264 = arith.addf %262, %263 : vector<32x32xf32>
    %c0_54 = arith.constant 0 : index
    %c0_55 = arith.constant 0 : index
    %c0_56 = arith.constant 0 : index
    %265 = vector.load %arg17[%c0_54, %c0_55, %c0_56] : memref<3x32x128xf32, #tpu.memory_space<vmem>>, vector<1x32x128xf32>
    %266 = vector.shape_cast %265 : vector<1x32x128xf32> to vector<32x128xf32>
    %cst_57 = arith.constant dense<0.000000e+00> : vector<32x128xf32>
    %267 = tpu.matmul %264, %266, %cst_57 {dimension_numbers = #tpu.dot_dimension_numbers<[1], [0], [0], [1], [0, 0, 1, 1], [], []>} : vector<32x32xf32>, vector<32x128xf32>, vector<32x128xf32> -> vector<32x128xf32>
    %c0_58 = arith.constant 0 : index
    %c0_59 = arith.constant 0 : index
    %c0_60 = arith.constant 0 : index
    %268 = vector.load %arg18[%c0_58, %c0_59, %c0_60] : memref<3x1x128xf32, #tpu.memory_space<vmem>>, vector<1x1x128xf32>
    %269 = vector.shape_cast %268 : vector<1x1x128xf32> to vector<1x128xf32>
    %270 = vector.broadcast %269 : vector<1x128xf32> to vector<32x128xf32>
    %271 = arith.addf %267, %270 : vector<32x128xf32>
    %cst_61 = arith.constant 1.702000e+00 : f32
    %272 = vector.broadcast %cst_61 : f32 to vector<32x128xf32>
    %273 = arith.mulf %272, %271 : vector<32x128xf32>
    %274 = arith.negf %273 : vector<32x128xf32>
    %275 = math.exp %274 : vector<32x128xf32>
    %cst_62 = arith.constant 1.000000e+00 : f32
    %276 = vector.broadcast %cst_62 : f32 to vector<32x128xf32>
    %277 = arith.addf %276, %275 : vector<32x128xf32>
    %278 = arith.divf %276, %277 : vector<32x128xf32>
    %279 = arith.mulf %271, %278 : vector<32x128xf32>
    %c0_63 = arith.constant 0 : index
    %c0_64 = arith.constant 0 : index
    %c0_65 = arith.constant 0 : index
    %280 = vector.load %arg19[%c0_63, %c0_64, %c0_65] : memref<3x128x32xf32, #tpu.memory_space<vmem>>, vector<1x128x32xf32>
    %281 = vector.shape_cast %280 : vector<1x128x32xf32> to vector<128x32xf32>
    %cst_66 = arith.constant dense<0.000000e+00> : vector<32x32xf32>
    %282 = tpu.matmul %279, %281, %cst_66 {dimension_numbers = #tpu.dot_dimension_numbers<[1], [0], [0], [1], [0, 0, 1, 1], [], []>} : vector<32x128xf32>, vector<128x32xf32>, vector<32x32xf32> -> vector<32x32xf32>
    %283 = arith.addf %238, %282 : vector<32x32xf32>
    %c0_67 = arith.constant 0 : index
    %c0_68 = arith.constant 0 : index
    %c0_69 = arith.constant 0 : index
    %284 = vector.load %arg20[%c0_67, %c0_68, %c0_69] : memref<3x1x32xf32, #tpu.memory_space<vmem>>, vector<1x1x32xf32>
    %285 = vector.shape_cast %284 : vector<1x1x32xf32> to vector<1x32xf32>
    %286 = vector.broadcast %285 : vector<1x32xf32> to vector<32x32xf32>
    %287 = arith.addf %283, %286 : vector<32x32xf32>
    %c1 = arith.constant 1 : index
    %c0_70 = arith.constant 0 : index
    %c0_71 = arith.constant 0 : index
    %288 = vector.load %arg9[%c1, %c0_70, %c0_71] : memref<3x1x32xf32, #tpu.memory_space<vmem>>, vector<1x1x32xf32>
    %289 = vector.shape_cast %288 : vector<1x1x32xf32> to vector<1x32xf32>
    %c1_72 = arith.constant 1 : index
    %c0_73 = arith.constant 0 : index
    %c0_74 = arith.constant 0 : index
    %290 = vector.load %arg10[%c1_72, %c0_73, %c0_74] : memref<3x1x32xf32, #tpu.memory_space<vmem>>, vector<1x1x32xf32>
    %291 = vector.shape_cast %290 : vector<1x1x32xf32> to vector<1x32xf32>
    %cst_75 = arith.constant dense<0.000000e+00> : vector<32xf32>
    %292 = vector.multi_reduction <add>, %287, %cst_75 [1] : vector<32x32xf32> to vector<32xf32>
    %293 = vector.shape_cast %292 : vector<32xf32> to vector<32x1xf32>
    %cst_76 = arith.constant 3.200000e+01 : f32
    %294 = vector.broadcast %cst_76 : f32 to vector<32x1xf32>
    %295 = arith.divf %293, %294 : vector<32x1xf32>
    %296 = vector.broadcast %295 : vector<32x1xf32> to vector<32x32xf32>
    %297 = arith.subf %287, %296 : vector<32x32xf32>
    %298 = arith.mulf %297, %297 : vector<32x32xf32>
    %cst_77 = arith.constant dense<0.000000e+00> : vector<32xf32>
    %299 = vector.multi_reduction <add>, %298, %cst_77 [1] : vector<32x32xf32> to vector<32xf32>
    %300 = vector.shape_cast %299 : vector<32xf32> to vector<32x1xf32>
    %cst_78 = arith.constant 3.200000e+01 : f32
    %301 = vector.broadcast %cst_78 : f32 to vector<32x1xf32>
    %302 = arith.divf %300, %301 : vector<32x1xf32>
    %303 = vector.broadcast %295 : vector<32x1xf32> to vector<32x32xf32>
    %304 = arith.subf %287, %303 : vector<32x32xf32>
    %cst_79 = arith.constant 9.99999974E-6 : f32
    %305 = vector.broadcast %cst_79 : f32 to vector<32x1xf32>
    %306 = arith.addf %302, %305 : vector<32x1xf32>
    %307 = math.rsqrt %306 : vector<32x1xf32>
    %308 = vector.broadcast %307 : vector<32x1xf32> to vector<32x32xf32>
    %309 = arith.mulf %304, %308 : vector<32x32xf32>
    %310 = vector.broadcast %289 : vector<1x32xf32> to vector<32x32xf32>
    %311 = arith.mulf %309, %310 : vector<32x32xf32>
    %312 = vector.broadcast %291 : vector<1x32xf32> to vector<32x32xf32>
    %313 = arith.addf %311, %312 : vector<32x32xf32>
    %c1_80 = arith.constant 1 : index
    %c0_81 = arith.constant 0 : index
    %c0_82 = arith.constant 0 : index
    %314 = vector.load %arg11[%c1_80, %c0_81, %c0_82] : memref<3x32x96xf32, #tpu.memory_space<vmem>>, vector<1x32x96xf32>
    %315 = vector.shape_cast %314 : vector<1x32x96xf32> to vector<32x96xf32>
    %cst_83 = arith.constant dense<0.000000e+00> : vector<32x96xf32>
    %316 = tpu.matmul %313, %315, %cst_83 {dimension_numbers = #tpu.dot_dimension_numbers<[1], [0], [0], [1], [0, 0, 1, 1], [], []>} : vector<32x32xf32>, vector<32x96xf32>, vector<32x96xf32> -> vector<32x96xf32>
    %c1_84 = arith.constant 1 : index
    %c0_85 = arith.constant 0 : index
    %c0_86 = arith.constant 0 : index
    %317 = vector.load %arg12[%c1_84, %c0_85, %c0_86] : memref<3x1x96xf32, #tpu.memory_space<vmem>>, vector<1x1x96xf32>
    %318 = vector.shape_cast %317 : vector<1x1x96xf32> to vector<1x96xf32>
    %319 = vector.broadcast %318 : vector<1x96xf32> to vector<32x96xf32>
    %320 = arith.addf %316, %319 : vector<32x96xf32>
    %321 = vector.extract_strided_slice %320 {offsets = [0, 0], sizes = [8, 32], strides = [1, 1]} : vector<32x96xf32> to vector<8x32xf32>
    %322 = vector.extract_strided_slice %320 {offsets = [8, 0], sizes = [8, 32], strides = [1, 1]} : vector<32x96xf32> to vector<8x32xf32>
    %323 = vector.extract_strided_slice %320 {offsets = [16, 0], sizes = [8, 32], strides = [1, 1]} : vector<32x96xf32> to vector<8x32xf32>
    %324 = vector.extract_strided_slice %320 {offsets = [24, 0], sizes = [8, 32], strides = [1, 1]} : vector<32x96xf32> to vector<8x32xf32>
    %325 = vector.extract_strided_slice %320 {offsets = [0, 32], sizes = [8, 32], strides = [1, 1]} : vector<32x96xf32> to vector<8x32xf32>
    %326 = vector.extract_strided_slice %320 {offsets = [8, 32], sizes = [8, 32], strides = [1, 1]} : vector<32x96xf32> to vector<8x32xf32>
    %327 = vector.extract_strided_slice %320 {offsets = [16, 32], sizes = [8, 32], strides = [1, 1]} : vector<32x96xf32> to vector<8x32xf32>
    %328 = vector.extract_strided_slice %320 {offsets = [24, 32], sizes = [8, 32], strides = [1, 1]} : vector<32x96xf32> to vector<8x32xf32>
    %329 = vector.extract_strided_slice %320 {offsets = [0, 64], sizes = [8, 32], strides = [1, 1]} : vector<32x96xf32> to vector<8x32xf32>
    %330 = vector.extract_strided_slice %320 {offsets = [8, 64], sizes = [8, 32], strides = [1, 1]} : vector<32x96xf32> to vector<8x32xf32>
    %331 = vector.extract_strided_slice %320 {offsets = [16, 64], sizes = [8, 32], strides = [1, 1]} : vector<32x96xf32> to vector<8x32xf32>
    %332 = vector.extract_strided_slice %320 {offsets = [24, 64], sizes = [8, 32], strides = [1, 1]} : vector<32x96xf32> to vector<8x32xf32>
    %333 = arith.mulf %321, %325 : vector<8x32xf32>
    %334 = arith.mulf %321, %326 : vector<8x32xf32>
    %335 = arith.mulf %321, %327 : vector<8x32xf32>
    %336 = arith.mulf %321, %328 : vector<8x32xf32>
    %337 = arith.mulf %322, %325 : vector<8x32xf32>
    %338 = arith.mulf %322, %326 : vector<8x32xf32>
    %339 = arith.mulf %322, %327 : vector<8x32xf32>
    %340 = arith.mulf %322, %328 : vector<8x32xf32>
    %341 = arith.mulf %323, %325 : vector<8x32xf32>
    %342 = arith.mulf %323, %326 : vector<8x32xf32>
    %343 = arith.mulf %323, %327 : vector<8x32xf32>
    %344 = arith.mulf %323, %328 : vector<8x32xf32>
    %345 = arith.mulf %324, %325 : vector<8x32xf32>
    %346 = arith.mulf %324, %326 : vector<8x32xf32>
    %347 = arith.mulf %324, %327 : vector<8x32xf32>
    %348 = arith.mulf %324, %328 : vector<8x32xf32>
    %349 = tpu.concatenate %333, %334, %335, %336, %337, %338, %339, %340, %341, %342, %343, %344, %345, %346, %347, %348 in 0 : vector<8x32xf32>, vector<8x32xf32>, vector<8x32xf32>, vector<8x32xf32>, vector<8x32xf32>, vector<8x32xf32>, vector<8x32xf32>, vector<8x32xf32>, vector<8x32xf32>, vector<8x32xf32>, vector<8x32xf32>, vector<8x32xf32>, vector<8x32xf32>, vector<8x32xf32>, vector<8x32xf32>, vector<8x32xf32> -> vector<128x32xf32>
    %cst_87 = arith.constant dense<0.000000e+00> : vector<128x4xf32>
    %350 = tpu.matmul %349, %19, %cst_87 {dimension_numbers = #tpu.dot_dimension_numbers<[1], [0], [0], [1], [0, 0, 1, 1], [], []>} : vector<128x32xf32>, vector<32x4xf32>, vector<128x4xf32> -> vector<128x4xf32>
    %351 = vector.extract_strided_slice %350 {offsets = [0, 0], sizes = [8, 4], strides = [1, 1]} : vector<128x4xf32> to vector<8x4xf32>
    %352 = vector.extract_strided_slice %350 {offsets = [8, 0], sizes = [8, 4], strides = [1, 1]} : vector<128x4xf32> to vector<8x4xf32>
    %353 = vector.extract_strided_slice %350 {offsets = [16, 0], sizes = [8, 4], strides = [1, 1]} : vector<128x4xf32> to vector<8x4xf32>
    %354 = vector.extract_strided_slice %350 {offsets = [24, 0], sizes = [8, 4], strides = [1, 1]} : vector<128x4xf32> to vector<8x4xf32>
    %355 = vector.extract_strided_slice %350 {offsets = [32, 0], sizes = [8, 4], strides = [1, 1]} : vector<128x4xf32> to vector<8x4xf32>
    %356 = vector.extract_strided_slice %350 {offsets = [40, 0], sizes = [8, 4], strides = [1, 1]} : vector<128x4xf32> to vector<8x4xf32>
    %357 = vector.extract_strided_slice %350 {offsets = [48, 0], sizes = [8, 4], strides = [1, 1]} : vector<128x4xf32> to vector<8x4xf32>
    %358 = vector.extract_strided_slice %350 {offsets = [56, 0], sizes = [8, 4], strides = [1, 1]} : vector<128x4xf32> to vector<8x4xf32>
    %359 = vector.extract_strided_slice %350 {offsets = [64, 0], sizes = [8, 4], strides = [1, 1]} : vector<128x4xf32> to vector<8x4xf32>
    %360 = vector.extract_strided_slice %350 {offsets = [72, 0], sizes = [8, 4], strides = [1, 1]} : vector<128x4xf32> to vector<8x4xf32>
    %361 = vector.extract_strided_slice %350 {offsets = [80, 0], sizes = [8, 4], strides = [1, 1]} : vector<128x4xf32> to vector<8x4xf32>
    %362 = vector.extract_strided_slice %350 {offsets = [88, 0], sizes = [8, 4], strides = [1, 1]} : vector<128x4xf32> to vector<8x4xf32>
    %363 = vector.extract_strided_slice %350 {offsets = [96, 0], sizes = [8, 4], strides = [1, 1]} : vector<128x4xf32> to vector<8x4xf32>
    %364 = vector.extract_strided_slice %350 {offsets = [104, 0], sizes = [8, 4], strides = [1, 1]} : vector<128x4xf32> to vector<8x4xf32>
    %365 = vector.extract_strided_slice %350 {offsets = [112, 0], sizes = [8, 4], strides = [1, 1]} : vector<128x4xf32> to vector<8x4xf32>
    %366 = vector.extract_strided_slice %350 {offsets = [120, 0], sizes = [8, 4], strides = [1, 1]} : vector<128x4xf32> to vector<8x4xf32>
    %367 = arith.maximumf %351, %352 : vector<8x4xf32>
    %368 = arith.maximumf %353, %354 : vector<8x4xf32>
    %369 = arith.maximumf %367, %368 : vector<8x4xf32>
    %370 = arith.subf %351, %369 : vector<8x4xf32>
    %371 = math.exp %370 : vector<8x4xf32>
    %372 = arith.subf %352, %369 : vector<8x4xf32>
    %373 = math.exp %372 : vector<8x4xf32>
    %374 = arith.subf %353, %369 : vector<8x4xf32>
    %375 = math.exp %374 : vector<8x4xf32>
    %376 = arith.subf %354, %369 : vector<8x4xf32>
    %377 = math.exp %376 : vector<8x4xf32>
    %378 = arith.addf %371, %373 : vector<8x4xf32>
    %379 = arith.addf %378, %375 : vector<8x4xf32>
    %380 = arith.addf %379, %377 : vector<8x4xf32>
    %381 = tpu.reciprocal %380 {approx = true} : vector<8x4xf32> -> vector<8x4xf32>
    %382 = arith.mulf %371, %381 : vector<8x4xf32>
    %383 = arith.mulf %373, %381 : vector<8x4xf32>
    %384 = arith.mulf %375, %381 : vector<8x4xf32>
    %385 = arith.mulf %377, %381 : vector<8x4xf32>
    %386 = arith.maximumf %355, %356 : vector<8x4xf32>
    %387 = arith.maximumf %357, %358 : vector<8x4xf32>
    %388 = arith.maximumf %386, %387 : vector<8x4xf32>
    %389 = arith.subf %355, %388 : vector<8x4xf32>
    %390 = math.exp %389 : vector<8x4xf32>
    %391 = arith.subf %356, %388 : vector<8x4xf32>
    %392 = math.exp %391 : vector<8x4xf32>
    %393 = arith.subf %357, %388 : vector<8x4xf32>
    %394 = math.exp %393 : vector<8x4xf32>
    %395 = arith.subf %358, %388 : vector<8x4xf32>
    %396 = math.exp %395 : vector<8x4xf32>
    %397 = arith.addf %390, %392 : vector<8x4xf32>
    %398 = arith.addf %397, %394 : vector<8x4xf32>
    %399 = arith.addf %398, %396 : vector<8x4xf32>
    %400 = tpu.reciprocal %399 {approx = true} : vector<8x4xf32> -> vector<8x4xf32>
    %401 = arith.mulf %390, %400 : vector<8x4xf32>
    %402 = arith.mulf %392, %400 : vector<8x4xf32>
    %403 = arith.mulf %394, %400 : vector<8x4xf32>
    %404 = arith.mulf %396, %400 : vector<8x4xf32>
    %405 = arith.maximumf %359, %360 : vector<8x4xf32>
    %406 = arith.maximumf %361, %362 : vector<8x4xf32>
    %407 = arith.maximumf %405, %406 : vector<8x4xf32>
    %408 = arith.subf %359, %407 : vector<8x4xf32>
    %409 = math.exp %408 : vector<8x4xf32>
    %410 = arith.subf %360, %407 : vector<8x4xf32>
    %411 = math.exp %410 : vector<8x4xf32>
    %412 = arith.subf %361, %407 : vector<8x4xf32>
    %413 = math.exp %412 : vector<8x4xf32>
    %414 = arith.subf %362, %407 : vector<8x4xf32>
    %415 = math.exp %414 : vector<8x4xf32>
    %416 = arith.addf %409, %411 : vector<8x4xf32>
    %417 = arith.addf %416, %413 : vector<8x4xf32>
    %418 = arith.addf %417, %415 : vector<8x4xf32>
    %419 = tpu.reciprocal %418 {approx = true} : vector<8x4xf32> -> vector<8x4xf32>
    %420 = arith.mulf %409, %419 : vector<8x4xf32>
    %421 = arith.mulf %411, %419 : vector<8x4xf32>
    %422 = arith.mulf %413, %419 : vector<8x4xf32>
    %423 = arith.mulf %415, %419 : vector<8x4xf32>
    %424 = arith.maximumf %363, %364 : vector<8x4xf32>
    %425 = arith.maximumf %365, %366 : vector<8x4xf32>
    %426 = arith.maximumf %424, %425 : vector<8x4xf32>
    %427 = arith.subf %363, %426 : vector<8x4xf32>
    %428 = math.exp %427 : vector<8x4xf32>
    %429 = arith.subf %364, %426 : vector<8x4xf32>
    %430 = math.exp %429 : vector<8x4xf32>
    %431 = arith.subf %365, %426 : vector<8x4xf32>
    %432 = math.exp %431 : vector<8x4xf32>
    %433 = arith.subf %366, %426 : vector<8x4xf32>
    %434 = math.exp %433 : vector<8x4xf32>
    %435 = arith.addf %428, %430 : vector<8x4xf32>
    %436 = arith.addf %435, %432 : vector<8x4xf32>
    %437 = arith.addf %436, %434 : vector<8x4xf32>
    %438 = tpu.reciprocal %437 {approx = true} : vector<8x4xf32> -> vector<8x4xf32>
    %439 = arith.mulf %428, %438 : vector<8x4xf32>
    %440 = arith.mulf %430, %438 : vector<8x4xf32>
    %441 = arith.mulf %432, %438 : vector<8x4xf32>
    %442 = arith.mulf %434, %438 : vector<8x4xf32>
    %443 = tpu.concatenate %382, %383, %384, %385, %401, %402, %403, %404, %420, %421, %422, %423, %439, %440, %441, %442 in 0 : vector<8x4xf32>, vector<8x4xf32>, vector<8x4xf32>, vector<8x4xf32>, vector<8x4xf32>, vector<8x4xf32>, vector<8x4xf32>, vector<8x4xf32>, vector<8x4xf32>, vector<8x4xf32>, vector<8x4xf32>, vector<8x4xf32>, vector<8x4xf32>, vector<8x4xf32>, vector<8x4xf32>, vector<8x4xf32> -> vector<128x4xf32>
    %cst_88 = arith.constant dense<0.000000e+00> : vector<128x32xf32>
    %444 = tpu.matmul %443, %20, %cst_88 {dimension_numbers = #tpu.dot_dimension_numbers<[1], [0], [0], [1], [0, 0, 1, 1], [], []>} : vector<128x4xf32>, vector<4x32xf32>, vector<128x32xf32> -> vector<128x32xf32>
    %445 = vector.extract_strided_slice %444 {offsets = [0, 0], sizes = [8, 32], strides = [1, 1]} : vector<128x32xf32> to vector<8x32xf32>
    %446 = arith.mulf %445, %329 : vector<8x32xf32>
    %cst_89 = arith.constant 0.000000e+00 : f32
    %447 = vector.broadcast %cst_89 : f32 to vector<8x32xf32>
    %448 = arith.addf %447, %446 : vector<8x32xf32>
    %449 = vector.extract_strided_slice %444 {offsets = [8, 0], sizes = [8, 32], strides = [1, 1]} : vector<128x32xf32> to vector<8x32xf32>
    %450 = arith.mulf %449, %330 : vector<8x32xf32>
    %451 = arith.addf %448, %450 : vector<8x32xf32>
    %452 = vector.extract_strided_slice %444 {offsets = [16, 0], sizes = [8, 32], strides = [1, 1]} : vector<128x32xf32> to vector<8x32xf32>
    %453 = arith.mulf %452, %331 : vector<8x32xf32>
    %454 = arith.addf %451, %453 : vector<8x32xf32>
    %455 = vector.extract_strided_slice %444 {offsets = [24, 0], sizes = [8, 32], strides = [1, 1]} : vector<128x32xf32> to vector<8x32xf32>
    %456 = arith.mulf %455, %332 : vector<8x32xf32>
    %457 = arith.addf %454, %456 : vector<8x32xf32>
    %458 = vector.extract_strided_slice %444 {offsets = [32, 0], sizes = [8, 32], strides = [1, 1]} : vector<128x32xf32> to vector<8x32xf32>
    %459 = arith.mulf %458, %329 : vector<8x32xf32>
    %cst_90 = arith.constant 0.000000e+00 : f32
    %460 = vector.broadcast %cst_90 : f32 to vector<8x32xf32>
    %461 = arith.addf %460, %459 : vector<8x32xf32>
    %462 = vector.extract_strided_slice %444 {offsets = [40, 0], sizes = [8, 32], strides = [1, 1]} : vector<128x32xf32> to vector<8x32xf32>
    %463 = arith.mulf %462, %330 : vector<8x32xf32>
    %464 = arith.addf %461, %463 : vector<8x32xf32>
    %465 = vector.extract_strided_slice %444 {offsets = [48, 0], sizes = [8, 32], strides = [1, 1]} : vector<128x32xf32> to vector<8x32xf32>
    %466 = arith.mulf %465, %331 : vector<8x32xf32>
    %467 = arith.addf %464, %466 : vector<8x32xf32>
    %468 = vector.extract_strided_slice %444 {offsets = [56, 0], sizes = [8, 32], strides = [1, 1]} : vector<128x32xf32> to vector<8x32xf32>
    %469 = arith.mulf %468, %332 : vector<8x32xf32>
    %470 = arith.addf %467, %469 : vector<8x32xf32>
    %471 = vector.extract_strided_slice %444 {offsets = [64, 0], sizes = [8, 32], strides = [1, 1]} : vector<128x32xf32> to vector<8x32xf32>
    %472 = arith.mulf %471, %329 : vector<8x32xf32>
    %cst_91 = arith.constant 0.000000e+00 : f32
    %473 = vector.broadcast %cst_91 : f32 to vector<8x32xf32>
    %474 = arith.addf %473, %472 : vector<8x32xf32>
    %475 = vector.extract_strided_slice %444 {offsets = [72, 0], sizes = [8, 32], strides = [1, 1]} : vector<128x32xf32> to vector<8x32xf32>
    %476 = arith.mulf %475, %330 : vector<8x32xf32>
    %477 = arith.addf %474, %476 : vector<8x32xf32>
    %478 = vector.extract_strided_slice %444 {offsets = [80, 0], sizes = [8, 32], strides = [1, 1]} : vector<128x32xf32> to vector<8x32xf32>
    %479 = arith.mulf %478, %331 : vector<8x32xf32>
    %480 = arith.addf %477, %479 : vector<8x32xf32>
    %481 = vector.extract_strided_slice %444 {offsets = [88, 0], sizes = [8, 32], strides = [1, 1]} : vector<128x32xf32> to vector<8x32xf32>
    %482 = arith.mulf %481, %332 : vector<8x32xf32>
    %483 = arith.addf %480, %482 : vector<8x32xf32>
    %484 = vector.extract_strided_slice %444 {offsets = [96, 0], sizes = [8, 32], strides = [1, 1]} : vector<128x32xf32> to vector<8x32xf32>
    %485 = arith.mulf %484, %329 : vector<8x32xf32>
    %cst_92 = arith.constant 0.000000e+00 : f32
    %486 = vector.broadcast %cst_92 : f32 to vector<8x32xf32>
    %487 = arith.addf %486, %485 : vector<8x32xf32>
    %488 = vector.extract_strided_slice %444 {offsets = [104, 0], sizes = [8, 32], strides = [1, 1]} : vector<128x32xf32> to vector<8x32xf32>
    %489 = arith.mulf %488, %330 : vector<8x32xf32>
    %490 = arith.addf %487, %489 : vector<8x32xf32>
    %491 = vector.extract_strided_slice %444 {offsets = [112, 0], sizes = [8, 32], strides = [1, 1]} : vector<128x32xf32> to vector<8x32xf32>
    %492 = arith.mulf %491, %331 : vector<8x32xf32>
    %493 = arith.addf %490, %492 : vector<8x32xf32>
    %494 = vector.extract_strided_slice %444 {offsets = [120, 0], sizes = [8, 32], strides = [1, 1]} : vector<128x32xf32> to vector<8x32xf32>
    %495 = arith.mulf %494, %332 : vector<8x32xf32>
    %496 = arith.addf %493, %495 : vector<8x32xf32>
    %497 = tpu.concatenate %457, %470, %483, %496 in 0 : vector<8x32xf32>, vector<8x32xf32>, vector<8x32xf32>, vector<8x32xf32> -> vector<32x32xf32>
    %c1_93 = arith.constant 1 : index
    %c0_94 = arith.constant 0 : index
    %c0_95 = arith.constant 0 : index
    %498 = vector.load %arg13[%c1_93, %c0_94, %c0_95] : memref<3x32x32xf32, #tpu.memory_space<vmem>>, vector<1x32x32xf32>
    %499 = vector.shape_cast %498 : vector<1x32x32xf32> to vector<32x32xf32>
    %cst_96 = arith.constant dense<0.000000e+00> : vector<32x32xf32>
    %500 = tpu.matmul %497, %499, %cst_96 {dimension_numbers = #tpu.dot_dimension_numbers<[1], [0], [0], [1], [0, 0, 1, 1], [], []>} : vector<32x32xf32>, vector<32x32xf32>, vector<32x32xf32> -> vector<32x32xf32>
    %501 = arith.addf %287, %500 : vector<32x32xf32>
    %c1_97 = arith.constant 1 : index
    %c0_98 = arith.constant 0 : index
    %c0_99 = arith.constant 0 : index
    %502 = vector.load %arg14[%c1_97, %c0_98, %c0_99] : memref<3x1x32xf32, #tpu.memory_space<vmem>>, vector<1x1x32xf32>
    %503 = vector.shape_cast %502 : vector<1x1x32xf32> to vector<1x32xf32>
    %504 = vector.broadcast %503 : vector<1x32xf32> to vector<32x32xf32>
    %505 = arith.addf %501, %504 : vector<32x32xf32>
    %c1_100 = arith.constant 1 : index
    %c0_101 = arith.constant 0 : index
    %c0_102 = arith.constant 0 : index
    %506 = vector.load %arg15[%c1_100, %c0_101, %c0_102] : memref<3x1x32xf32, #tpu.memory_space<vmem>>, vector<1x1x32xf32>
    %507 = vector.shape_cast %506 : vector<1x1x32xf32> to vector<1x32xf32>
    %c1_103 = arith.constant 1 : index
    %c0_104 = arith.constant 0 : index
    %c0_105 = arith.constant 0 : index
    %508 = vector.load %arg16[%c1_103, %c0_104, %c0_105] : memref<3x1x32xf32, #tpu.memory_space<vmem>>, vector<1x1x32xf32>
    %509 = vector.shape_cast %508 : vector<1x1x32xf32> to vector<1x32xf32>
    %cst_106 = arith.constant dense<0.000000e+00> : vector<32xf32>
    %510 = vector.multi_reduction <add>, %505, %cst_106 [1] : vector<32x32xf32> to vector<32xf32>
    %511 = vector.shape_cast %510 : vector<32xf32> to vector<32x1xf32>
    %cst_107 = arith.constant 3.200000e+01 : f32
    %512 = vector.broadcast %cst_107 : f32 to vector<32x1xf32>
    %513 = arith.divf %511, %512 : vector<32x1xf32>
    %514 = vector.broadcast %513 : vector<32x1xf32> to vector<32x32xf32>
    %515 = arith.subf %505, %514 : vector<32x32xf32>
    %516 = arith.mulf %515, %515 : vector<32x32xf32>
    %cst_108 = arith.constant dense<0.000000e+00> : vector<32xf32>
    %517 = vector.multi_reduction <add>, %516, %cst_108 [1] : vector<32x32xf32> to vector<32xf32>
    %518 = vector.shape_cast %517 : vector<32xf32> to vector<32x1xf32>
    %cst_109 = arith.constant 3.200000e+01 : f32
    %519 = vector.broadcast %cst_109 : f32 to vector<32x1xf32>
    %520 = arith.divf %518, %519 : vector<32x1xf32>
    %521 = vector.broadcast %513 : vector<32x1xf32> to vector<32x32xf32>
    %522 = arith.subf %505, %521 : vector<32x32xf32>
    %cst_110 = arith.constant 9.99999974E-6 : f32
    %523 = vector.broadcast %cst_110 : f32 to vector<32x1xf32>
    %524 = arith.addf %520, %523 : vector<32x1xf32>
    %525 = math.rsqrt %524 : vector<32x1xf32>
    %526 = vector.broadcast %525 : vector<32x1xf32> to vector<32x32xf32>
    %527 = arith.mulf %522, %526 : vector<32x32xf32>
    %528 = vector.broadcast %507 : vector<1x32xf32> to vector<32x32xf32>
    %529 = arith.mulf %527, %528 : vector<32x32xf32>
    %530 = vector.broadcast %509 : vector<1x32xf32> to vector<32x32xf32>
    %531 = arith.addf %529, %530 : vector<32x32xf32>
    %c1_111 = arith.constant 1 : index
    %c0_112 = arith.constant 0 : index
    %c0_113 = arith.constant 0 : index
    %532 = vector.load %arg17[%c1_111, %c0_112, %c0_113] : memref<3x32x128xf32, #tpu.memory_space<vmem>>, vector<1x32x128xf32>
    %533 = vector.shape_cast %532 : vector<1x32x128xf32> to vector<32x128xf32>
    %cst_114 = arith.constant dense<0.000000e+00> : vector<32x128xf32>
    %534 = tpu.matmul %531, %533, %cst_114 {dimension_numbers = #tpu.dot_dimension_numbers<[1], [0], [0], [1], [0, 0, 1, 1], [], []>} : vector<32x32xf32>, vector<32x128xf32>, vector<32x128xf32> -> vector<32x128xf32>
    %c1_115 = arith.constant 1 : index
    %c0_116 = arith.constant 0 : index
    %c0_117 = arith.constant 0 : index
    %535 = vector.load %arg18[%c1_115, %c0_116, %c0_117] : memref<3x1x128xf32, #tpu.memory_space<vmem>>, vector<1x1x128xf32>
    %536 = vector.shape_cast %535 : vector<1x1x128xf32> to vector<1x128xf32>
    %537 = vector.broadcast %536 : vector<1x128xf32> to vector<32x128xf32>
    %538 = arith.addf %534, %537 : vector<32x128xf32>
    %cst_118 = arith.constant 1.702000e+00 : f32
    %539 = vector.broadcast %cst_118 : f32 to vector<32x128xf32>
    %540 = arith.mulf %539, %538 : vector<32x128xf32>
    %541 = arith.negf %540 : vector<32x128xf32>
    %542 = math.exp %541 : vector<32x128xf32>
    %cst_119 = arith.constant 1.000000e+00 : f32
    %543 = vector.broadcast %cst_119 : f32 to vector<32x128xf32>
    %544 = arith.addf %543, %542 : vector<32x128xf32>
    %545 = arith.divf %543, %544 : vector<32x128xf32>
    %546 = arith.mulf %538, %545 : vector<32x128xf32>
    %c1_120 = arith.constant 1 : index
    %c0_121 = arith.constant 0 : index
    %c0_122 = arith.constant 0 : index
    %547 = vector.load %arg19[%c1_120, %c0_121, %c0_122] : memref<3x128x32xf32, #tpu.memory_space<vmem>>, vector<1x128x32xf32>
    %548 = vector.shape_cast %547 : vector<1x128x32xf32> to vector<128x32xf32>
    %cst_123 = arith.constant dense<0.000000e+00> : vector<32x32xf32>
    %549 = tpu.matmul %546, %548, %cst_123 {dimension_numbers = #tpu.dot_dimension_numbers<[1], [0], [0], [1], [0, 0, 1, 1], [], []>} : vector<32x128xf32>, vector<128x32xf32>, vector<32x32xf32> -> vector<32x32xf32>
    %550 = arith.addf %505, %549 : vector<32x32xf32>
    %c1_124 = arith.constant 1 : index
    %c0_125 = arith.constant 0 : index
    %c0_126 = arith.constant 0 : index
    %551 = vector.load %arg20[%c1_124, %c0_125, %c0_126] : memref<3x1x32xf32, #tpu.memory_space<vmem>>, vector<1x1x32xf32>
    %552 = vector.shape_cast %551 : vector<1x1x32xf32> to vector<1x32xf32>
    %553 = vector.broadcast %552 : vector<1x32xf32> to vector<32x32xf32>
    %554 = arith.addf %550, %553 : vector<32x32xf32>
    %c2 = arith.constant 2 : index
    %c0_127 = arith.constant 0 : index
    %c0_128 = arith.constant 0 : index
    %555 = vector.load %arg9[%c2, %c0_127, %c0_128] : memref<3x1x32xf32, #tpu.memory_space<vmem>>, vector<1x1x32xf32>
    %556 = vector.shape_cast %555 : vector<1x1x32xf32> to vector<1x32xf32>
    %c2_129 = arith.constant 2 : index
    %c0_130 = arith.constant 0 : index
    %c0_131 = arith.constant 0 : index
    %557 = vector.load %arg10[%c2_129, %c0_130, %c0_131] : memref<3x1x32xf32, #tpu.memory_space<vmem>>, vector<1x1x32xf32>
    %558 = vector.shape_cast %557 : vector<1x1x32xf32> to vector<1x32xf32>
    %cst_132 = arith.constant dense<0.000000e+00> : vector<32xf32>
    %559 = vector.multi_reduction <add>, %554, %cst_132 [1] : vector<32x32xf32> to vector<32xf32>
    %560 = vector.shape_cast %559 : vector<32xf32> to vector<32x1xf32>
    %cst_133 = arith.constant 3.200000e+01 : f32
    %561 = vector.broadcast %cst_133 : f32 to vector<32x1xf32>
    %562 = arith.divf %560, %561 : vector<32x1xf32>
    %563 = vector.broadcast %562 : vector<32x1xf32> to vector<32x32xf32>
    %564 = arith.subf %554, %563 : vector<32x32xf32>
    %565 = arith.mulf %564, %564 : vector<32x32xf32>
    %cst_134 = arith.constant dense<0.000000e+00> : vector<32xf32>
    %566 = vector.multi_reduction <add>, %565, %cst_134 [1] : vector<32x32xf32> to vector<32xf32>
    %567 = vector.shape_cast %566 : vector<32xf32> to vector<32x1xf32>
    %cst_135 = arith.constant 3.200000e+01 : f32
    %568 = vector.broadcast %cst_135 : f32 to vector<32x1xf32>
    %569 = arith.divf %567, %568 : vector<32x1xf32>
    %570 = vector.broadcast %562 : vector<32x1xf32> to vector<32x32xf32>
    %571 = arith.subf %554, %570 : vector<32x32xf32>
    %cst_136 = arith.constant 9.99999974E-6 : f32
    %572 = vector.broadcast %cst_136 : f32 to vector<32x1xf32>
    %573 = arith.addf %569, %572 : vector<32x1xf32>
    %574 = math.rsqrt %573 : vector<32x1xf32>
    %575 = vector.broadcast %574 : vector<32x1xf32> to vector<32x32xf32>
    %576 = arith.mulf %571, %575 : vector<32x32xf32>
    %577 = vector.broadcast %556 : vector<1x32xf32> to vector<32x32xf32>
    %578 = arith.mulf %576, %577 : vector<32x32xf32>
    %579 = vector.broadcast %558 : vector<1x32xf32> to vector<32x32xf32>
    %580 = arith.addf %578, %579 : vector<32x32xf32>
    %c2_137 = arith.constant 2 : index
    %c0_138 = arith.constant 0 : index
    %c0_139 = arith.constant 0 : index
    %581 = vector.load %arg11[%c2_137, %c0_138, %c0_139] : memref<3x32x96xf32, #tpu.memory_space<vmem>>, vector<1x32x96xf32>
    %582 = vector.shape_cast %581 : vector<1x32x96xf32> to vector<32x96xf32>
    %cst_140 = arith.constant dense<0.000000e+00> : vector<32x96xf32>
    %583 = tpu.matmul %580, %582, %cst_140 {dimension_numbers = #tpu.dot_dimension_numbers<[1], [0], [0], [1], [0, 0, 1, 1], [], []>} : vector<32x32xf32>, vector<32x96xf32>, vector<32x96xf32> -> vector<32x96xf32>
    %c2_141 = arith.constant 2 : index
    %c0_142 = arith.constant 0 : index
    %c0_143 = arith.constant 0 : index
    %584 = vector.load %arg12[%c2_141, %c0_142, %c0_143] : memref<3x1x96xf32, #tpu.memory_space<vmem>>, vector<1x1x96xf32>
    %585 = vector.shape_cast %584 : vector<1x1x96xf32> to vector<1x96xf32>
    %586 = vector.broadcast %585 : vector<1x96xf32> to vector<32x96xf32>
    %587 = arith.addf %583, %586 : vector<32x96xf32>
    %588 = vector.extract_strided_slice %587 {offsets = [0, 0], sizes = [8, 32], strides = [1, 1]} : vector<32x96xf32> to vector<8x32xf32>
    %589 = vector.extract_strided_slice %587 {offsets = [8, 0], sizes = [8, 32], strides = [1, 1]} : vector<32x96xf32> to vector<8x32xf32>
    %590 = vector.extract_strided_slice %587 {offsets = [16, 0], sizes = [8, 32], strides = [1, 1]} : vector<32x96xf32> to vector<8x32xf32>
    %591 = vector.extract_strided_slice %587 {offsets = [24, 0], sizes = [8, 32], strides = [1, 1]} : vector<32x96xf32> to vector<8x32xf32>
    %592 = vector.extract_strided_slice %587 {offsets = [0, 32], sizes = [8, 32], strides = [1, 1]} : vector<32x96xf32> to vector<8x32xf32>
    %593 = vector.extract_strided_slice %587 {offsets = [8, 32], sizes = [8, 32], strides = [1, 1]} : vector<32x96xf32> to vector<8x32xf32>
    %594 = vector.extract_strided_slice %587 {offsets = [16, 32], sizes = [8, 32], strides = [1, 1]} : vector<32x96xf32> to vector<8x32xf32>
    %595 = vector.extract_strided_slice %587 {offsets = [24, 32], sizes = [8, 32], strides = [1, 1]} : vector<32x96xf32> to vector<8x32xf32>
    %596 = vector.extract_strided_slice %587 {offsets = [0, 64], sizes = [8, 32], strides = [1, 1]} : vector<32x96xf32> to vector<8x32xf32>
    %597 = vector.extract_strided_slice %587 {offsets = [8, 64], sizes = [8, 32], strides = [1, 1]} : vector<32x96xf32> to vector<8x32xf32>
    %598 = vector.extract_strided_slice %587 {offsets = [16, 64], sizes = [8, 32], strides = [1, 1]} : vector<32x96xf32> to vector<8x32xf32>
    %599 = vector.extract_strided_slice %587 {offsets = [24, 64], sizes = [8, 32], strides = [1, 1]} : vector<32x96xf32> to vector<8x32xf32>
    %600 = arith.mulf %588, %592 : vector<8x32xf32>
    %601 = arith.mulf %588, %593 : vector<8x32xf32>
    %602 = arith.mulf %588, %594 : vector<8x32xf32>
    %603 = arith.mulf %588, %595 : vector<8x32xf32>
    %604 = arith.mulf %589, %592 : vector<8x32xf32>
    %605 = arith.mulf %589, %593 : vector<8x32xf32>
    %606 = arith.mulf %589, %594 : vector<8x32xf32>
    %607 = arith.mulf %589, %595 : vector<8x32xf32>
    %608 = arith.mulf %590, %592 : vector<8x32xf32>
    %609 = arith.mulf %590, %593 : vector<8x32xf32>
    %610 = arith.mulf %590, %594 : vector<8x32xf32>
    %611 = arith.mulf %590, %595 : vector<8x32xf32>
    %612 = arith.mulf %591, %592 : vector<8x32xf32>
    %613 = arith.mulf %591, %593 : vector<8x32xf32>
    %614 = arith.mulf %591, %594 : vector<8x32xf32>
    %615 = arith.mulf %591, %595 : vector<8x32xf32>
    %616 = tpu.concatenate %600, %601, %602, %603, %604, %605, %606, %607, %608, %609, %610, %611, %612, %613, %614, %615 in 0 : vector<8x32xf32>, vector<8x32xf32>, vector<8x32xf32>, vector<8x32xf32>, vector<8x32xf32>, vector<8x32xf32>, vector<8x32xf32>, vector<8x32xf32>, vector<8x32xf32>, vector<8x32xf32>, vector<8x32xf32>, vector<8x32xf32>, vector<8x32xf32>, vector<8x32xf32>, vector<8x32xf32>, vector<8x32xf32> -> vector<128x32xf32>
    %cst_144 = arith.constant dense<0.000000e+00> : vector<128x4xf32>
    %617 = tpu.matmul %616, %19, %cst_144 {dimension_numbers = #tpu.dot_dimension_numbers<[1], [0], [0], [1], [0, 0, 1, 1], [], []>} : vector<128x32xf32>, vector<32x4xf32>, vector<128x4xf32> -> vector<128x4xf32>
    %618 = vector.extract_strided_slice %617 {offsets = [0, 0], sizes = [8, 4], strides = [1, 1]} : vector<128x4xf32> to vector<8x4xf32>
    %619 = vector.extract_strided_slice %617 {offsets = [8, 0], sizes = [8, 4], strides = [1, 1]} : vector<128x4xf32> to vector<8x4xf32>
    %620 = vector.extract_strided_slice %617 {offsets = [16, 0], sizes = [8, 4], strides = [1, 1]} : vector<128x4xf32> to vector<8x4xf32>
    %621 = vector.extract_strided_slice %617 {offsets = [24, 0], sizes = [8, 4], strides = [1, 1]} : vector<128x4xf32> to vector<8x4xf32>
    %622 = vector.extract_strided_slice %617 {offsets = [32, 0], sizes = [8, 4], strides = [1, 1]} : vector<128x4xf32> to vector<8x4xf32>
    %623 = vector.extract_strided_slice %617 {offsets = [40, 0], sizes = [8, 4], strides = [1, 1]} : vector<128x4xf32> to vector<8x4xf32>
    %624 = vector.extract_strided_slice %617 {offsets = [48, 0], sizes = [8, 4], strides = [1, 1]} : vector<128x4xf32> to vector<8x4xf32>
    %625 = vector.extract_strided_slice %617 {offsets = [56, 0], sizes = [8, 4], strides = [1, 1]} : vector<128x4xf32> to vector<8x4xf32>
    %626 = vector.extract_strided_slice %617 {offsets = [64, 0], sizes = [8, 4], strides = [1, 1]} : vector<128x4xf32> to vector<8x4xf32>
    %627 = vector.extract_strided_slice %617 {offsets = [72, 0], sizes = [8, 4], strides = [1, 1]} : vector<128x4xf32> to vector<8x4xf32>
    %628 = vector.extract_strided_slice %617 {offsets = [80, 0], sizes = [8, 4], strides = [1, 1]} : vector<128x4xf32> to vector<8x4xf32>
    %629 = vector.extract_strided_slice %617 {offsets = [88, 0], sizes = [8, 4], strides = [1, 1]} : vector<128x4xf32> to vector<8x4xf32>
    %630 = vector.extract_strided_slice %617 {offsets = [96, 0], sizes = [8, 4], strides = [1, 1]} : vector<128x4xf32> to vector<8x4xf32>
    %631 = vector.extract_strided_slice %617 {offsets = [104, 0], sizes = [8, 4], strides = [1, 1]} : vector<128x4xf32> to vector<8x4xf32>
    %632 = vector.extract_strided_slice %617 {offsets = [112, 0], sizes = [8, 4], strides = [1, 1]} : vector<128x4xf32> to vector<8x4xf32>
    %633 = vector.extract_strided_slice %617 {offsets = [120, 0], sizes = [8, 4], strides = [1, 1]} : vector<128x4xf32> to vector<8x4xf32>
    %634 = arith.maximumf %618, %619 : vector<8x4xf32>
    %635 = arith.maximumf %620, %621 : vector<8x4xf32>
    %636 = arith.maximumf %634, %635 : vector<8x4xf32>
    %637 = arith.subf %618, %636 : vector<8x4xf32>
    %638 = math.exp %637 : vector<8x4xf32>
    %639 = arith.subf %619, %636 : vector<8x4xf32>
    %640 = math.exp %639 : vector<8x4xf32>
    %641 = arith.subf %620, %636 : vector<8x4xf32>
    %642 = math.exp %641 : vector<8x4xf32>
    %643 = arith.subf %621, %636 : vector<8x4xf32>
    %644 = math.exp %643 : vector<8x4xf32>
    %645 = arith.addf %638, %640 : vector<8x4xf32>
    %646 = arith.addf %645, %642 : vector<8x4xf32>
    %647 = arith.addf %646, %644 : vector<8x4xf32>
    %648 = tpu.reciprocal %647 {approx = true} : vector<8x4xf32> -> vector<8x4xf32>
    %649 = arith.mulf %638, %648 : vector<8x4xf32>
    %650 = arith.mulf %640, %648 : vector<8x4xf32>
    %651 = arith.mulf %642, %648 : vector<8x4xf32>
    %652 = arith.mulf %644, %648 : vector<8x4xf32>
    %653 = arith.maximumf %622, %623 : vector<8x4xf32>
    %654 = arith.maximumf %624, %625 : vector<8x4xf32>
    %655 = arith.maximumf %653, %654 : vector<8x4xf32>
    %656 = arith.subf %622, %655 : vector<8x4xf32>
    %657 = math.exp %656 : vector<8x4xf32>
    %658 = arith.subf %623, %655 : vector<8x4xf32>
    %659 = math.exp %658 : vector<8x4xf32>
    %660 = arith.subf %624, %655 : vector<8x4xf32>
    %661 = math.exp %660 : vector<8x4xf32>
    %662 = arith.subf %625, %655 : vector<8x4xf32>
    %663 = math.exp %662 : vector<8x4xf32>
    %664 = arith.addf %657, %659 : vector<8x4xf32>
    %665 = arith.addf %664, %661 : vector<8x4xf32>
    %666 = arith.addf %665, %663 : vector<8x4xf32>
    %667 = tpu.reciprocal %666 {approx = true} : vector<8x4xf32> -> vector<8x4xf32>
    %668 = arith.mulf %657, %667 : vector<8x4xf32>
    %669 = arith.mulf %659, %667 : vector<8x4xf32>
    %670 = arith.mulf %661, %667 : vector<8x4xf32>
    %671 = arith.mulf %663, %667 : vector<8x4xf32>
    %672 = arith.maximumf %626, %627 : vector<8x4xf32>
    %673 = arith.maximumf %628, %629 : vector<8x4xf32>
    %674 = arith.maximumf %672, %673 : vector<8x4xf32>
    %675 = arith.subf %626, %674 : vector<8x4xf32>
    %676 = math.exp %675 : vector<8x4xf32>
    %677 = arith.subf %627, %674 : vector<8x4xf32>
    %678 = math.exp %677 : vector<8x4xf32>
    %679 = arith.subf %628, %674 : vector<8x4xf32>
    %680 = math.exp %679 : vector<8x4xf32>
    %681 = arith.subf %629, %674 : vector<8x4xf32>
    %682 = math.exp %681 : vector<8x4xf32>
    %683 = arith.addf %676, %678 : vector<8x4xf32>
    %684 = arith.addf %683, %680 : vector<8x4xf32>
    %685 = arith.addf %684, %682 : vector<8x4xf32>
    %686 = tpu.reciprocal %685 {approx = true} : vector<8x4xf32> -> vector<8x4xf32>
    %687 = arith.mulf %676, %686 : vector<8x4xf32>
    %688 = arith.mulf %678, %686 : vector<8x4xf32>
    %689 = arith.mulf %680, %686 : vector<8x4xf32>
    %690 = arith.mulf %682, %686 : vector<8x4xf32>
    %691 = arith.maximumf %630, %631 : vector<8x4xf32>
    %692 = arith.maximumf %632, %633 : vector<8x4xf32>
    %693 = arith.maximumf %691, %692 : vector<8x4xf32>
    %694 = arith.subf %630, %693 : vector<8x4xf32>
    %695 = math.exp %694 : vector<8x4xf32>
    %696 = arith.subf %631, %693 : vector<8x4xf32>
    %697 = math.exp %696 : vector<8x4xf32>
    %698 = arith.subf %632, %693 : vector<8x4xf32>
    %699 = math.exp %698 : vector<8x4xf32>
    %700 = arith.subf %633, %693 : vector<8x4xf32>
    %701 = math.exp %700 : vector<8x4xf32>
    %702 = arith.addf %695, %697 : vector<8x4xf32>
    %703 = arith.addf %702, %699 : vector<8x4xf32>
    %704 = arith.addf %703, %701 : vector<8x4xf32>
    %705 = tpu.reciprocal %704 {approx = true} : vector<8x4xf32> -> vector<8x4xf32>
    %706 = arith.mulf %695, %705 : vector<8x4xf32>
    %707 = arith.mulf %697, %705 : vector<8x4xf32>
    %708 = arith.mulf %699, %705 : vector<8x4xf32>
    %709 = arith.mulf %701, %705 : vector<8x4xf32>
    %710 = tpu.concatenate %649, %650, %651, %652, %668, %669, %670, %671, %687, %688, %689, %690, %706, %707, %708, %709 in 0 : vector<8x4xf32>, vector<8x4xf32>, vector<8x4xf32>, vector<8x4xf32>, vector<8x4xf32>, vector<8x4xf32>, vector<8x4xf32>, vector<8x4xf32>, vector<8x4xf32>, vector<8x4xf32>, vector<8x4xf32>, vector<8x4xf32>, vector<8x4xf32>, vector<8x4xf32>, vector<8x4xf32>, vector<8x4xf32> -> vector<128x4xf32>
    %cst_145 = arith.constant dense<0.000000e+00> : vector<128x32xf32>
    %711 = tpu.matmul %710, %20, %cst_145 {dimension_numbers = #tpu.dot_dimension_numbers<[1], [0], [0], [1], [0, 0, 1, 1], [], []>} : vector<128x4xf32>, vector<4x32xf32>, vector<128x32xf32> -> vector<128x32xf32>
    %712 = vector.extract_strided_slice %711 {offsets = [0, 0], sizes = [8, 32], strides = [1, 1]} : vector<128x32xf32> to vector<8x32xf32>
    %713 = arith.mulf %712, %596 : vector<8x32xf32>
    %cst_146 = arith.constant 0.000000e+00 : f32
    %714 = vector.broadcast %cst_146 : f32 to vector<8x32xf32>
    %715 = arith.addf %714, %713 : vector<8x32xf32>
    %716 = vector.extract_strided_slice %711 {offsets = [8, 0], sizes = [8, 32], strides = [1, 1]} : vector<128x32xf32> to vector<8x32xf32>
    %717 = arith.mulf %716, %597 : vector<8x32xf32>
    %718 = arith.addf %715, %717 : vector<8x32xf32>
    %719 = vector.extract_strided_slice %711 {offsets = [16, 0], sizes = [8, 32], strides = [1, 1]} : vector<128x32xf32> to vector<8x32xf32>
    %720 = arith.mulf %719, %598 : vector<8x32xf32>
    %721 = arith.addf %718, %720 : vector<8x32xf32>
    %722 = vector.extract_strided_slice %711 {offsets = [24, 0], sizes = [8, 32], strides = [1, 1]} : vector<128x32xf32> to vector<8x32xf32>
    %723 = arith.mulf %722, %599 : vector<8x32xf32>
    %724 = arith.addf %721, %723 : vector<8x32xf32>
    %725 = vector.extract_strided_slice %711 {offsets = [32, 0], sizes = [8, 32], strides = [1, 1]} : vector<128x32xf32> to vector<8x32xf32>
    %726 = arith.mulf %725, %596 : vector<8x32xf32>
    %cst_147 = arith.constant 0.000000e+00 : f32
    %727 = vector.broadcast %cst_147 : f32 to vector<8x32xf32>
    %728 = arith.addf %727, %726 : vector<8x32xf32>
    %729 = vector.extract_strided_slice %711 {offsets = [40, 0], sizes = [8, 32], strides = [1, 1]} : vector<128x32xf32> to vector<8x32xf32>
    %730 = arith.mulf %729, %597 : vector<8x32xf32>
    %731 = arith.addf %728, %730 : vector<8x32xf32>
    %732 = vector.extract_strided_slice %711 {offsets = [48, 0], sizes = [8, 32], strides = [1, 1]} : vector<128x32xf32> to vector<8x32xf32>
    %733 = arith.mulf %732, %598 : vector<8x32xf32>
    %734 = arith.addf %731, %733 : vector<8x32xf32>
    %735 = vector.extract_strided_slice %711 {offsets = [56, 0], sizes = [8, 32], strides = [1, 1]} : vector<128x32xf32> to vector<8x32xf32>
    %736 = arith.mulf %735, %599 : vector<8x32xf32>
    %737 = arith.addf %734, %736 : vector<8x32xf32>
    %738 = vector.extract_strided_slice %711 {offsets = [64, 0], sizes = [8, 32], strides = [1, 1]} : vector<128x32xf32> to vector<8x32xf32>
    %739 = arith.mulf %738, %596 : vector<8x32xf32>
    %cst_148 = arith.constant 0.000000e+00 : f32
    %740 = vector.broadcast %cst_148 : f32 to vector<8x32xf32>
    %741 = arith.addf %740, %739 : vector<8x32xf32>
    %742 = vector.extract_strided_slice %711 {offsets = [72, 0], sizes = [8, 32], strides = [1, 1]} : vector<128x32xf32> to vector<8x32xf32>
    %743 = arith.mulf %742, %597 : vector<8x32xf32>
    %744 = arith.addf %741, %743 : vector<8x32xf32>
    %745 = vector.extract_strided_slice %711 {offsets = [80, 0], sizes = [8, 32], strides = [1, 1]} : vector<128x32xf32> to vector<8x32xf32>
    %746 = arith.mulf %745, %598 : vector<8x32xf32>
    %747 = arith.addf %744, %746 : vector<8x32xf32>
    %748 = vector.extract_strided_slice %711 {offsets = [88, 0], sizes = [8, 32], strides = [1, 1]} : vector<128x32xf32> to vector<8x32xf32>
    %749 = arith.mulf %748, %599 : vector<8x32xf32>
    %750 = arith.addf %747, %749 : vector<8x32xf32>
    %751 = vector.extract_strided_slice %711 {offsets = [96, 0], sizes = [8, 32], strides = [1, 1]} : vector<128x32xf32> to vector<8x32xf32>
    %752 = arith.mulf %751, %596 : vector<8x32xf32>
    %cst_149 = arith.constant 0.000000e+00 : f32
    %753 = vector.broadcast %cst_149 : f32 to vector<8x32xf32>
    %754 = arith.addf %753, %752 : vector<8x32xf32>
    %755 = vector.extract_strided_slice %711 {offsets = [104, 0], sizes = [8, 32], strides = [1, 1]} : vector<128x32xf32> to vector<8x32xf32>
    %756 = arith.mulf %755, %597 : vector<8x32xf32>
    %757 = arith.addf %754, %756 : vector<8x32xf32>
    %758 = vector.extract_strided_slice %711 {offsets = [112, 0], sizes = [8, 32], strides = [1, 1]} : vector<128x32xf32> to vector<8x32xf32>
    %759 = arith.mulf %758, %598 : vector<8x32xf32>
    %760 = arith.addf %757, %759 : vector<8x32xf32>
    %761 = vector.extract_strided_slice %711 {offsets = [120, 0], sizes = [8, 32], strides = [1, 1]} : vector<128x32xf32> to vector<8x32xf32>
    %762 = arith.mulf %761, %599 : vector<8x32xf32>
    %763 = arith.addf %760, %762 : vector<8x32xf32>
    %764 = tpu.concatenate %724, %737, %750, %763 in 0 : vector<8x32xf32>, vector<8x32xf32>, vector<8x32xf32>, vector<8x32xf32> -> vector<32x32xf32>
    %c2_150 = arith.constant 2 : index
    %c0_151 = arith.constant 0 : index
    %c0_152 = arith.constant 0 : index
    %765 = vector.load %arg13[%c2_150, %c0_151, %c0_152] : memref<3x32x32xf32, #tpu.memory_space<vmem>>, vector<1x32x32xf32>
    %766 = vector.shape_cast %765 : vector<1x32x32xf32> to vector<32x32xf32>
    %cst_153 = arith.constant dense<0.000000e+00> : vector<32x32xf32>
    %767 = tpu.matmul %764, %766, %cst_153 {dimension_numbers = #tpu.dot_dimension_numbers<[1], [0], [0], [1], [0, 0, 1, 1], [], []>} : vector<32x32xf32>, vector<32x32xf32>, vector<32x32xf32> -> vector<32x32xf32>
    %768 = arith.addf %554, %767 : vector<32x32xf32>
    %c2_154 = arith.constant 2 : index
    %c0_155 = arith.constant 0 : index
    %c0_156 = arith.constant 0 : index
    %769 = vector.load %arg14[%c2_154, %c0_155, %c0_156] : memref<3x1x32xf32, #tpu.memory_space<vmem>>, vector<1x1x32xf32>
    %770 = vector.shape_cast %769 : vector<1x1x32xf32> to vector<1x32xf32>
    %771 = vector.broadcast %770 : vector<1x32xf32> to vector<32x32xf32>
    %772 = arith.addf %768, %771 : vector<32x32xf32>
    %c2_157 = arith.constant 2 : index
    %c0_158 = arith.constant 0 : index
    %c0_159 = arith.constant 0 : index
    %773 = vector.load %arg15[%c2_157, %c0_158, %c0_159] : memref<3x1x32xf32, #tpu.memory_space<vmem>>, vector<1x1x32xf32>
    %774 = vector.shape_cast %773 : vector<1x1x32xf32> to vector<1x32xf32>
    %c2_160 = arith.constant 2 : index
    %c0_161 = arith.constant 0 : index
    %c0_162 = arith.constant 0 : index
    %775 = vector.load %arg16[%c2_160, %c0_161, %c0_162] : memref<3x1x32xf32, #tpu.memory_space<vmem>>, vector<1x1x32xf32>
    %776 = vector.shape_cast %775 : vector<1x1x32xf32> to vector<1x32xf32>
    %cst_163 = arith.constant dense<0.000000e+00> : vector<32xf32>
    %777 = vector.multi_reduction <add>, %772, %cst_163 [1] : vector<32x32xf32> to vector<32xf32>
    %778 = vector.shape_cast %777 : vector<32xf32> to vector<32x1xf32>
    %cst_164 = arith.constant 3.200000e+01 : f32
    %779 = vector.broadcast %cst_164 : f32 to vector<32x1xf32>
    %780 = arith.divf %778, %779 : vector<32x1xf32>
    %781 = vector.broadcast %780 : vector<32x1xf32> to vector<32x32xf32>
    %782 = arith.subf %772, %781 : vector<32x32xf32>
    %783 = arith.mulf %782, %782 : vector<32x32xf32>
    %cst_165 = arith.constant dense<0.000000e+00> : vector<32xf32>
    %784 = vector.multi_reduction <add>, %783, %cst_165 [1] : vector<32x32xf32> to vector<32xf32>
    %785 = vector.shape_cast %784 : vector<32xf32> to vector<32x1xf32>
    %cst_166 = arith.constant 3.200000e+01 : f32
    %786 = vector.broadcast %cst_166 : f32 to vector<32x1xf32>
    %787 = arith.divf %785, %786 : vector<32x1xf32>
    %788 = vector.broadcast %780 : vector<32x1xf32> to vector<32x32xf32>
    %789 = arith.subf %772, %788 : vector<32x32xf32>
    %cst_167 = arith.constant 9.99999974E-6 : f32
    %790 = vector.broadcast %cst_167 : f32 to vector<32x1xf32>
    %791 = arith.addf %787, %790 : vector<32x1xf32>
    %792 = math.rsqrt %791 : vector<32x1xf32>
    %793 = vector.broadcast %792 : vector<32x1xf32> to vector<32x32xf32>
    %794 = arith.mulf %789, %793 : vector<32x32xf32>
    %795 = vector.broadcast %774 : vector<1x32xf32> to vector<32x32xf32>
    %796 = arith.mulf %794, %795 : vector<32x32xf32>
    %797 = vector.broadcast %776 : vector<1x32xf32> to vector<32x32xf32>
    %798 = arith.addf %796, %797 : vector<32x32xf32>
    %c2_168 = arith.constant 2 : index
    %c0_169 = arith.constant 0 : index
    %c0_170 = arith.constant 0 : index
    %799 = vector.load %arg17[%c2_168, %c0_169, %c0_170] : memref<3x32x128xf32, #tpu.memory_space<vmem>>, vector<1x32x128xf32>
    %800 = vector.shape_cast %799 : vector<1x32x128xf32> to vector<32x128xf32>
    %cst_171 = arith.constant dense<0.000000e+00> : vector<32x128xf32>
    %801 = tpu.matmul %798, %800, %cst_171 {dimension_numbers = #tpu.dot_dimension_numbers<[1], [0], [0], [1], [0, 0, 1, 1], [], []>} : vector<32x32xf32>, vector<32x128xf32>, vector<32x128xf32> -> vector<32x128xf32>
    %c2_172 = arith.constant 2 : index
    %c0_173 = arith.constant 0 : index
    %c0_174 = arith.constant 0 : index
    %802 = vector.load %arg18[%c2_172, %c0_173, %c0_174] : memref<3x1x128xf32, #tpu.memory_space<vmem>>, vector<1x1x128xf32>
    %803 = vector.shape_cast %802 : vector<1x1x128xf32> to vector<1x128xf32>
    %804 = vector.broadcast %803 : vector<1x128xf32> to vector<32x128xf32>
    %805 = arith.addf %801, %804 : vector<32x128xf32>
    %cst_175 = arith.constant 1.702000e+00 : f32
    %806 = vector.broadcast %cst_175 : f32 to vector<32x128xf32>
    %807 = arith.mulf %806, %805 : vector<32x128xf32>
    %808 = arith.negf %807 : vector<32x128xf32>
    %809 = math.exp %808 : vector<32x128xf32>
    %cst_176 = arith.constant 1.000000e+00 : f32
    %810 = vector.broadcast %cst_176 : f32 to vector<32x128xf32>
    %811 = arith.addf %810, %809 : vector<32x128xf32>
    %812 = arith.divf %810, %811 : vector<32x128xf32>
    %813 = arith.mulf %805, %812 : vector<32x128xf32>
    %c2_177 = arith.constant 2 : index
    %c0_178 = arith.constant 0 : index
    %c0_179 = arith.constant 0 : index
    %814 = vector.load %arg19[%c2_177, %c0_178, %c0_179] : memref<3x128x32xf32, #tpu.memory_space<vmem>>, vector<1x128x32xf32>
    %815 = vector.shape_cast %814 : vector<1x128x32xf32> to vector<128x32xf32>
    %cst_180 = arith.constant dense<0.000000e+00> : vector<32x32xf32>
    %816 = tpu.matmul %813, %815, %cst_180 {dimension_numbers = #tpu.dot_dimension_numbers<[1], [0], [0], [1], [0, 0, 1, 1], [], []>} : vector<32x128xf32>, vector<128x32xf32>, vector<32x32xf32> -> vector<32x32xf32>
    %817 = arith.addf %772, %816 : vector<32x32xf32>
    %c2_181 = arith.constant 2 : index
    %c0_182 = arith.constant 0 : index
    %c0_183 = arith.constant 0 : index
    %818 = vector.load %arg20[%c2_181, %c0_182, %c0_183] : memref<3x1x32xf32, #tpu.memory_space<vmem>>, vector<1x1x32xf32>
    %819 = vector.shape_cast %818 : vector<1x1x32xf32> to vector<1x32xf32>
    %820 = vector.broadcast %819 : vector<1x32xf32> to vector<32x32xf32>
    %821 = arith.addf %817, %820 : vector<32x32xf32>
    %822 = arith.addf %821, %18 : vector<32x32xf32>
    %823 = vector.extract_strided_slice %822 {offsets = [0, 0], sizes = [8, 32], strides = [1, 1]} : vector<32x32xf32> to vector<8x32xf32>
    %824 = vector.extract_strided_slice %822 {offsets = [8, 0], sizes = [8, 32], strides = [1, 1]} : vector<32x32xf32> to vector<8x32xf32>
    %825 = arith.mulf %823, %824 : vector<8x32xf32>
    %c0_184 = arith.constant 0 : index
    %c0_185 = arith.constant 0 : index
    %826 = vector.load %arg8[%c0_184, %c0_185] : memref<1x32xf32, #tpu.memory_space<vmem>>, vector<1x32xf32>
    %827 = vector.broadcast %826 : vector<1x32xf32> to vector<8x32xf32>
    %828 = arith.subf %825, %827 : vector<8x32xf32>
    %829 = vector.extract_strided_slice %822 {offsets = [16, 0], sizes = [8, 32], strides = [1, 1]} : vector<32x32xf32> to vector<8x32xf32>
    %830 = vector.extract_strided_slice %822 {offsets = [24, 0], sizes = [8, 32], strides = [1, 1]} : vector<32x32xf32> to vector<8x32xf32>
    %831 = arith.mulf %829, %830 : vector<8x32xf32>
    %832 = tpu.concatenate %828, %831 in 1 : vector<8x32xf32>, vector<8x32xf32> -> vector<8x64xf32>
    %c0_186 = arith.constant 0 : index
    %c0_187 = arith.constant 0 : index
    %833 = vector.load %arg21[%c0_186, %c0_187] : memref<8x64xf32, #tpu.memory_space<vmem>>, vector<8x64xf32>
    tpu.vector_store %arg21[%c0_186, %c0_187], %832 {strides = array<i32>} : memref<8x64xf32, #tpu.memory_space<vmem>>, vector<8x64xf32>,
    return
  }
  func.func @transform_0(%arg0: i32) -> (i32, i32) {
    %c0_i32 = arith.constant 0 : i32
    %c0_i32_0 = arith.constant 0 : i32
    return %arg0, %c0_i32 : i32, i32
  }
  func.func @transform_1(%arg0: i32) -> (i32, i32) {
    %c0_i32 = arith.constant 0 : i32
    %c0_i32_0 = arith.constant 0 : i32
    return %arg0, %c0_i32 : i32, i32
  }
  func.func @transform_2(%arg0: i32) -> (i32, i32) {
    %c0_i32 = arith.constant 0 : i32
    %c0_i32_0 = arith.constant 0 : i32
    return %arg0, %c0_i32 : i32, i32
  }
  func.func @transform_3(%arg0: i32) -> (i32, i32) {
    %c0_i32 = arith.constant 0 : i32
    %c0_i32_0 = arith.constant 0 : i32
    return %arg0, %c0_i32 : i32, i32
  }
  func.func @transform_4(%arg0: i32) -> (i32, i32) {
    %c0_i32 = arith.constant 0 : i32
    %c0_i32_0 = arith.constant 0 : i32
    %c0_i32_1 = arith.constant 0 : i32
    return %c0_i32, %c0_i32_0 : i32, i32
  }
  func.func @transform_5(%arg0: i32) -> (i32, i32) {
    %c0_i32 = arith.constant 0 : i32
    %c0_i32_0 = arith.constant 0 : i32
    %c0_i32_1 = arith.constant 0 : i32
    return %c0_i32, %c0_i32_0 : i32, i32
  }
  func.func @transform_6(%arg0: i32) -> (i32, i32) {
    %c0_i32 = arith.constant 0 : i32
    %c0_i32_0 = arith.constant 0 : i32
    %c0_i32_1 = arith.constant 0 : i32
    return %c0_i32, %c0_i32_0 : i32, i32
  }
  func.func @transform_7(%arg0: i32) -> (i32, i32) {
    %c0_i32 = arith.constant 0 : i32
    %c0_i32_0 = arith.constant 0 : i32
    %c0_i32_1 = arith.constant 0 : i32
    return %c0_i32, %c0_i32_0 : i32, i32
  }
  func.func @transform_8(%arg0: i32) -> (i32, i32, i32) {
    %c0_i32 = arith.constant 0 : i32
    %c0_i32_0 = arith.constant 0 : i32
    %c0_i32_1 = arith.constant 0 : i32
    %c0_i32_2 = arith.constant 0 : i32
    return %c0_i32, %c0_i32_0, %c0_i32_1 : i32, i32, i32
  }
  func.func @transform_9(%arg0: i32) -> (i32, i32, i32) {
    %c0_i32 = arith.constant 0 : i32
    %c0_i32_0 = arith.constant 0 : i32
    %c0_i32_1 = arith.constant 0 : i32
    %c0_i32_2 = arith.constant 0 : i32
    return %c0_i32, %c0_i32_0, %c0_i32_1 : i32, i32, i32
  }
  func.func @transform_10(%arg0: i32) -> (i32, i32, i32) {
    %c0_i32 = arith.constant 0 : i32
    %c0_i32_0 = arith.constant 0 : i32
    %c0_i32_1 = arith.constant 0 : i32
    %c0_i32_2 = arith.constant 0 : i32
    return %c0_i32, %c0_i32_0, %c0_i32_1 : i32, i32, i32
  }
  func.func @transform_11(%arg0: i32) -> (i32, i32, i32) {
    %c0_i32 = arith.constant 0 : i32
    %c0_i32_0 = arith.constant 0 : i32
    %c0_i32_1 = arith.constant 0 : i32
    %c0_i32_2 = arith.constant 0 : i32
    return %c0_i32, %c0_i32_0, %c0_i32_1 : i32, i32, i32
  }
  func.func @transform_12(%arg0: i32) -> (i32, i32, i32) {
    %c0_i32 = arith.constant 0 : i32
    %c0_i32_0 = arith.constant 0 : i32
    %c0_i32_1 = arith.constant 0 : i32
    %c0_i32_2 = arith.constant 0 : i32
    return %c0_i32, %c0_i32_0, %c0_i32_1 : i32, i32, i32
  }
  func.func @transform_13(%arg0: i32) -> (i32, i32, i32) {
    %c0_i32 = arith.constant 0 : i32
    %c0_i32_0 = arith.constant 0 : i32
    %c0_i32_1 = arith.constant 0 : i32
    %c0_i32_2 = arith.constant 0 : i32
    return %c0_i32, %c0_i32_0, %c0_i32_1 : i32, i32, i32
  }
  func.func @transform_14(%arg0: i32) -> (i32, i32, i32) {
    %c0_i32 = arith.constant 0 : i32
    %c0_i32_0 = arith.constant 0 : i32
    %c0_i32_1 = arith.constant 0 : i32
    %c0_i32_2 = arith.constant 0 : i32
    return %c0_i32, %c0_i32_0, %c0_i32_1 : i32, i32, i32
  }
  func.func @transform_15(%arg0: i32) -> (i32, i32, i32) {
    %c0_i32 = arith.constant 0 : i32
    %c0_i32_0 = arith.constant 0 : i32
    %c0_i32_1 = arith.constant 0 : i32
    %c0_i32_2 = arith.constant 0 : i32
    return %c0_i32, %c0_i32_0, %c0_i32_1 : i32, i32, i32
  }
  func.func @transform_16(%arg0: i32) -> (i32, i32, i32) {
    %c0_i32 = arith.constant 0 : i32
    %c0_i32_0 = arith.constant 0 : i32
    %c0_i32_1 = arith.constant 0 : i32
    %c0_i32_2 = arith.constant 0 : i32
    return %c0_i32, %c0_i32_0, %c0_i32_1 : i32, i32, i32
  }
  func.func @transform_17(%arg0: i32) -> (i32, i32, i32) {
    %c0_i32 = arith.constant 0 : i32
    %c0_i32_0 = arith.constant 0 : i32
    %c0_i32_1 = arith.constant 0 : i32
    %c0_i32_2 = arith.constant 0 : i32
    return %c0_i32, %c0_i32_0, %c0_i32_1 : i32, i32, i32
  }
  func.func @transform_18(%arg0: i32) -> (i32, i32, i32) {
    %c0_i32 = arith.constant 0 : i32
    %c0_i32_0 = arith.constant 0 : i32
    %c0_i32_1 = arith.constant 0 : i32
    %c0_i32_2 = arith.constant 0 : i32
    return %c0_i32, %c0_i32_0, %c0_i32_1 : i32, i32, i32
  }
  func.func @transform_19(%arg0: i32) -> (i32, i32, i32) {
    %c0_i32 = arith.constant 0 : i32
    %c0_i32_0 = arith.constant 0 : i32
    %c0_i32_1 = arith.constant 0 : i32
    %c0_i32_2 = arith.constant 0 : i32
    return %c0_i32, %c0_i32_0, %c0_i32_1 : i32, i32, i32
  }
  func.func @transform_20(%arg0: i32) -> (i32, i32) {
    %c0_i32 = arith.constant 0 : i32
    %c0_i32_0 = arith.constant 0 : i32
    return %arg0, %c0_i32 : i32, i32
  }
}

</mosaic_0001>

<bundles_post_ra>
// kernel: arclip_forward.4
= control target key start
LH: loop header
LB: loop body
LE: loop exit
PB: predicated region body
PF: predicated region fallthrough
CT: control target
= control target key end

     0   :  { %vm22_vm0 = vcmask 257024   ;;  %vm14_vm1 = vcmask 254976   ;;  %v127_v6 = vmov 0.0   ;;  %vm128_vm2 = vmmov 0   ;;  %s153_s1 = inlined_call_operand.vmem [shape: f32[4,32], index: 1, kind: input, shape index: {}]   ;;  %s154_s0 = inlined_call_operand.vmem [shape: f32[2,32], index: 0, kind: input, shape index: {}]   ;;  %s155_s2 = inlined_call_operand.vmem [shape: f32[2,4], index: 2, kind: output, shape index: {}]  }
   0x1   :  { %v12_v0 = vld [vmem:[%s153_s1] sm:$0xf]  ;;  %116 = vmatprep.subr.mxu0 %v127_v6  ;;  %118 = vmatprep.mubr.msk.f32.mxu0 %vm128_vm2, %v127_v6  ;;  %vm29_vm3 = vcmask 261120   ;;  %vm106_vm4 = vcmask 25600  }
   0x2   :  { %v11_v1 = vld [vmem:[%s154_s0] sm:$0x3]  ;;  %v21_v2 = vmul.f32 %v12_v0, %v12_v0 }
   0x3   :  { %v13_v3 = vmul.f32 %v11_v1, %v11_v1 }
   0x4   :  { %v23_v4 = vsel %vm22_vm0, %v21_v2, 0.0 }
   0x5   :  { %24 = vadd.xlane.f32.xlu0 %v23_v4  ;;  %v15_v5 = vsel %vm14_vm1, %v13_v3, 0.0 }
   0x9   :  { %16 = vadd.xlane.f32.xlu0 %v15_v5 }
  0x92   :  { %v25_v7 = vpop.xlane.xlu0 %24 }
  0x93   :  { %v26_v8 = vadd.f32 1e-12, %v25_v7 }
  0x95   :  { %123 = vrsqrt.f32 %v26_v8 }
  0x96   :  { %v17_v9 = vpop.xlane.xlu0 %16 }
  0x97   :  { %v18_v10 = vadd.f32 1e-12, %v17_v9 }
  0x99   :  { %125 = vrsqrt.f32 %v18_v10 }
  0x9f   :  { %v124_v11 = vpop.eup %123 }
  0xa0   :  { %v28_v12 = vmul.f32 %v124_v11, %v12_v0 }
  0xa2   :  { %117 = vmatpush3.xpose.msk.msra.mxu0 %vm29_vm3, %v28_v12 }
  0xa3   :  { %v126_v13 = vpop.eup %125 }
  0xa4   :  { %v20_v14 = vmul.f32 %v126_v13, %v11_v1 }
  0xa6   :  { %119 = vmatmul.mubr.msk.f32.vlgmr.msra.gmra.mrb[0].mxu0 %vm29_vm3, %v20_v14 }
 0x179   :  { %v102_v15 = vpop.f32.mrb[0].mxu0 }
 0x17a   :  { %107 = vst.msk [vmem:[%s155_s2] sm:$0x3] %vm106_vm4, %v102_v15  ;;  %v120_v16 = vpop.f32.mrb[1].mxu0 }

// kernel: arclip_forward.5
= control target key start
LH: loop header
LB: loop body
LE: loop exit
PB: predicated region body
PF: predicated region fallthrough
CT: control target
= control target key end

     0   :  { %s6608_s0 = inlined_call_operand.vmem [shape: f32[16,32], index: 0, kind: input, shape index: {}]   ;;  %s6609_s1 = inlined_call_operand.vmem [shape: f32[16,32], index: 1, kind: input, shape index: {}]   ;;  %s6610_s2 = inlined_call_operand.vmem [shape: f32[16,32], index: 2, kind: input, shape index: {}]   ;;  %s6611_s3 = inlined_call_operand.vmem [shape: f32[16,32], index: 3, kind: input, shape index: {}]   ;;  %s6612_s4 = inlined_call_operand.vmem [shape: f32[32,4], index: 4, kind: input, shape index: {}]   ;;  %s6613_s5 = inlined_call_operand.vmem [shape: f32[4,32], index: 5, kind: input, shape index: {}]   ;;  %s6614_s6 = inlined_call_operand.vmem [shape: f32[4,32], index: 6, kind: input, shape index: {}]   ;;  %s6615_s7 = inlined_call_operand.vmem [shape: f32[1,32], index: 7, kind: input, shape index: {}]   ;;  %s6616_s8 = inlined_call_operand.vmem [shape: f32[3,1,32], index: 8, kind: input, shape index: {}]   ;;  %s6617_s9 = inlined_call_operand.vmem [shape: f32[3,1,32], index: 9, kind: input, shape index: {}]   ;;  %s6618_s10 = inlined_call_operand.vmem [shape: f32[3,32,96], index: 10, kind: input, shape index: {}]   ;;  %s6619_s11 = inlined_call_operand.vmem [shape: f32[3,1,96], index: 11, kind: input, shape index: {}]   ;;  %s6620_s12 = inlined_call_operand.vmem [shape: f32[3,32,32], index: 12, kind: input, shape index: {}]   ;;  %s6621_s13 = inlined_call_operand.vmem [shape: f32[3,1,32], index: 13, kind: input, shape index: {}]   ;;  %s6622_s14 = inlined_call_operand.vmem [shape: f32[3,1,32], index: 14, kind: input, shape index: {}]   ;;  %s6623_s15 = inlined_call_operand.vmem [shape: f32[3,1,32], index: 15, kind: input, shape index: {}]   ;;  %s6624_s16 = inlined_call_operand.vmem [shape: f32[3,32,128], index: 16, kind: input, shape index: {}]   ;;  %s6625_s17 = inlined_call_operand.vmem [shape: f32[3,1,128], index: 17, kind: input, shape index: {}]   ;;  %s6626_s18 = inlined_call_operand.vmem [shape: f32[3,128,32], index: 18, kind: input, shape index: {}]   ;;  %s6627_s19 = inlined_call_operand.vmem [shape: f32[3,1,32], index: 19, kind: input, shape index: {}]   ;;  %s6628_s20 = inlined_call_operand.vmem [shape: f32[16,64], index: 20, kind: output, shape index: {}]  }
   0x1   :  { %6635 = sst [smem:[#allocation2_spill]] %s6608_s0 }
   0x2   :  { %6636 = sst [smem:[#allocation3_spill]] %s6609_s1  ;;  %s5850_s1 = smov 0  }
   0x3   :  { %6637 = sst [smem:[#allocation4_spill]] %s6610_s2 }
   0x4   :  { %6638 = sst [smem:[#allocation5_spill]] %s6611_s3 }
   0x5   :  { %6639 = sst [smem:[#allocation6_spill]] %s6612_s4 }
   0x6   :  { %6640 = sst [smem:[#allocation7_spill]] %s6614_s6 }
   0x7 LB: > { %s4393_s22 = sadd.s32 4294967295, %s5740_s1   ;;  %p4397_p0 = scmp.ge.s32.totalorder %s5740_s1, 1  ;;  %s5740_s1 = sphi %s5850_s1, %s30_s1  }
   0x8   : > { %p588_p1 = scmp.lt.s32.totalorder %s5740_s1, 3 }
   0xa   : > { %p589_p2 = pnand %p4397_p0, %p588_p1 }
   0xb   : > { %p656_p3 = scmp.lt.s32.totalorder (!%p589_p2), %s4393_s22, 1  ;;  %v681_v0 = vlaneseq (!%p589_p2)  ;;  %s6641_s6 = sld [smem:[#allocation7_spill]] (!%p589_p2)  ;;  %vm708_vm0 = vcmask (!%p589_p2), 261120   ;;  %v782_v43 = vld [vmem:[%s6618_s10] sm:$0xff] (!%p589_p2)  ;;  %v783_v44 = vld [vmem:[%s6618_s10 + $0x8] sm:$0xff] (!%p589_p2)  ;;  %v784_v45 = vld [vmem:[%s6618_s10 + $0x10] sm:$0xff] (!%p589_p2) }
   0xc   : > { %592 = sbr.rel (%p589_p2) target bundleno = 6601 (0x19c9), region = 100  ;;  %s6642_s26 = sld [smem:[#allocation2_spill]] (!%p589_p2)  ;;  %v5306_v46 = vpack.c.bf16 (!%p589_p2), %v783_v44, %v782_v43  ;;  %v785_v47 = vld [vmem:[%s6618_s10 + $0x18] sm:$0xff] (!%p589_p2)  ;;  %v4403_v62 = vld [vmem:[%s6616_s8] ss:$0 sm:$0xff] (!%p589_p2)  ;;  %vm1256_vm1 = vcmask (!%p589_p2), 1043456  }
   0xd   : > { %v682_v1 = vshrl.u32 (!%p589_p2), %v681_v0, 7  ;;  %s6643_s29 = sld [smem:[#allocation4_spill]] (!%p589_p2)  ;;  %s6645_s3 = sld [smem:[#allocation5_spill]] (!%p589_p2)  ;;  %v5310_v48 = vpack.c.bf16 (!%p589_p2), %v785_v47, %v784_v45  ;;  %v4404_v0 = vld [vmem:[%s6617_s9] ss:$0 sm:$0xff] (!%p589_p2)  ;;  %vm1207_vm2 = vcmask (!%p589_p2), 31744  }
   0xe   : > { %5307 = vmatprep.subr.bf16.mxu0 (!%p589_p2), %v5306_v46  ;;  %s6632_s24 = smov (!%p589_p2), 96   ;;  %s6630_s25 = smov (!%p589_p2), 64   ;;  %vm4302_vm3 = vcmask (!%p589_p2), 523264  }
   0xf   : > { %v683_v3 = vsub.s32 (!%p589_p2), 0, %v682_v1  ;;  %v693_v4 = vsub.s32 (!%p589_p2), 2, %v682_v1  ;;  %v688_v5 = vsub.s32 (!%p589_p2), 1, %v682_v1  ;;  %v698_v6 = vsub.s32 (!%p589_p2), 3, %v682_v1  ;;  %5309 = vmatpush3.bf16.msra.mxu0 (!%p589_p2), %v5306_v46  ;;  %s5744_s0 = smov (!%p589_p2), 32  }
  0x10   : > { %5311 = vmatprep.subr.bf16.mxu0 (!%p589_p2), %v5310_v48 }
  0x11   : > { %v680_v2 = vld [vmem:[%s6641_s6] sm:$0xf] (!%p589_p2) }
  0x12   : > { %v684_v8 = vrot.slane (!%p589_p2), %v680_v2, %v683_v3  ;;  %v694_v10 = vrot.slane (!%p589_p2), %v680_v2, %v693_v4  ;;  %v689_v11 = vrot.slane (!%p589_p2), %v680_v2, %v688_v5  ;;  %v699_v12 = vrot.slane (!%p589_p2), %v680_v2, %v698_v6 }
  0x13   : > { %s6650_s22 = smov (!%p656_p3, %s4393_s22), 1  ;;  %5313 = vmatpush3.bf16.msra.mxu0 %v5310_v48 }
  0x14   : > { %s5861_s2 = sshll.u32 %s6650_s22, 3  ;;  %s6644_s22 = sld [smem:[#allocation3_spill]] }
  0x15   : > { %s5867_s27 = scalar_lea.vmem %s6642_s26, %s5861_s2  ;;  %s5873_s30 = scalar_lea.vmem %s6643_s29, %s5861_s2 }
  0x16   : > { %v676_v7 = vld [vmem:[%s5867_s27] sm:$0xff]  ;;  %s5887_s26 = scalar_lea.vmem %s6645_s3, %s5861_s2 }
  0x17   : > { %v678_v9 = vld [vmem:[%s5873_s30] sm:$0xff]  ;;  %v5891_v15 = vadd.f32 %v684_v8, %v676_v7 }
  0x18   : > { %v679_v14 = vld [vmem:[%s5887_s26] sm:$0xff]  ;;  %v5893_v16 = vadd.f32 %v694_v10, %v678_v9 }
  0x19   : > { %v5897_v18 = vadd.f32 %v699_v12, %v679_v14  ;;  %v709_v19 = vsel %vm708_vm0, %v5891_v15, 0.0 }
  0x1a   : > { %s5881_s23 = scalar_lea.vmem %s6644_s22, %s5861_s2  ;;  %v715_v20 = vsel %vm708_vm0, %v5893_v16, 0.0  ;;  %710 = vadd.xlane.f32.xlu0 %v709_v19  ;;  %s6646_s22 = sld [smem:[#allocation6_spill]] }
  0x1b   : > { %v677_v13 = vld [vmem:[%s5881_s23] sm:$0xff]  ;;  %716 = vadd.xlane.f32.xlu1 %v715_v20  ;;  %v718_v22 = vsel %vm708_vm0, %v5897_v18, 0.0 }
  0x1c   : > { %v5895_v17 = vadd.f32 %v689_v11, %v677_v13 }
  0x1e   : > { %v712_v21 = vsel %vm708_vm0, %v5895_v17, 0.0 }
  0x1f   : > { %713 = vadd.xlane.f32.xlu0 %v712_v21  ;;  %719 = vadd.xlane.f32.xlu1 %v718_v22 }
  0x20   : > { %v701_v19 = vld [vmem:[%s6646_s22] sm:$0xff]  ;;  %v702_v20 = vld [vmem:[%s6646_s22 + $0x8] sm:$0xff]  ;;  %v703_v22 = vld [vmem:[%s6646_s22 + $0x10] sm:$0xff] }
  0x21   : > { %v5943_v21 = vpack.c.bf16 %v702_v20, %v701_v19 }
  0x23   : > { %5315 = vmatprep.subr.bf16.mxu0 %v5943_v21  ;;  %5498 = vmatprep.subr.bf16.mxu1 %v5943_v21 }
  0x24   : > { %5500 = vmatpush3.bf16.msra.mxu1 %v5943_v21 }
  0xa7   : > { %v711_v23 = vpop.xlane.xlu0 %710 }
  0xa8   : > { %v717_v24 = vpop.xlane.xlu1 %716  ;;  %v722_v25 = vmul.f32 0.03125, %v711_v23  ;;  %v704_v23 = vld [vmem:[%s6646_s22 + $0x18] sm:$0xff] }
  0xa9   : > { %v724_v26 = vmul.f32 0.03125, %v717_v24  ;;  %v5955_v24 = vpack.c.bf16 %v704_v23, %v703_v22 }
  0xaa   : > { %v726_v27 = vsub.f32 %v5891_v15, %v722_v25  ;;  %v4405_v25 = vld [vmem:[%s6619_s11] ss:$0 sm:$0xff] }
  0xab   : > { %v728_v28 = vsub.f32 %v5893_v16, %v724_v26  ;;  %5499 = vmatprep.subr.bf16.mxu1 %v5955_v24 }
  0xac   : > { %v714_v29 = vpop.xlane.xlu0 %713  ;;  %v720_v30 = vpop.xlane.xlu1 %719  ;;  %v730_v33 = vmul.f32 %v726_v27, %v726_v27  ;;  %5501 = vmatpush3.bf16.msra.mxu1 %v5955_v24 }
  0xad   : > { %v723_v31 = vmul.f32 0.03125, %v714_v29  ;;  %v725_v32 = vmul.f32 0.03125, %v720_v30  ;;  %v732_v34 = vmul.f32 %v728_v28, %v728_v28 }
  0xae   : > { %v734_v37 = vsel %vm708_vm0, %v730_v33, 0.0 }
  0xaf   : > { %v727_v35 = vsub.f32 %v5895_v17, %v723_v31  ;;  %v729_v36 = vsub.f32 %v5897_v18, %v725_v32  ;;  %735 = vadd.xlane.f32.xlu0 %v734_v37  ;;  %v740_v38 = vsel %vm708_vm0, %v732_v34, 0.0 }
  0xb1   : > { %v731_v39 = vmul.f32 %v727_v35, %v727_v35  ;;  %v733_v40 = vmul.f32 %v729_v36, %v729_v36 }
  0xb3   : > { %v737_v41 = vsel %vm708_vm0, %v731_v39, 0.0  ;;  %741 = vadd.xlane.f32.xlu0 %v740_v38  ;;  %v743_v42 = vsel %vm708_vm0, %v733_v40, 0.0 }
  0xb4   : > { %738 = vadd.xlane.f32.xlu1 %v737_v41 }
  0xb8   : > { %744 = vadd.xlane.f32.xlu1 %v743_v42 }
 0x13c   : > { %v736_v49 = vpop.xlane.xlu0 %735 }
 0x13d   : > { %v746_v50 = vmul.f32 0.03125, %v736_v49 }
 0x13f   : > { %v750_v51 = vadd.f32 1e-05, %v746_v50 }
 0x140   : > { %v742_v53 = vpop.xlane.xlu0 %741 }
 0x141   : > { %v739_v52 = vpop.xlane.xlu1 %738  ;;  %5513 = vrsqrt.f32 %v750_v51  ;;  %v748_v55 = vmul.f32 0.03125, %v742_v53 }
 0x142   : > { %v747_v54 = vmul.f32 0.03125, %v739_v52 }
 0x143   : > { %v752_v57 = vadd.f32 1e-05, %v748_v55 }
 0x144   : > { %v751_v56 = vadd.f32 1e-05, %v747_v54  ;;  %v5991_v54 = vld [vmem:[%s6613_s5] sm:$0xf] }
 0x145   : > { %v745_v58 = vpop.xlane.xlu1 %744 }
 0x146   : > { %5515 = vrsqrt.f32 %v751_v56  ;;  %v749_v59 = vmul.f32 0.03125, %v745_v58 }
 0x147   : > { %5517 = vrsqrt.f32 %v752_v57 }
 0x148   : > { %v753_v60 = vadd.f32 1e-05, %v749_v59 }
 0x14a   : > { %5519 = vrsqrt.f32 %v753_v60 }
 0x14b   : > { %v5514_v61 = vpop.eup %5513 }
 0x14c   : > { %v758_v63 = vmul.f32 %v5514_v61, %v726_v27 }
 0x14e   : > { %v768_v1 = vmul.f32 %v4403_v62, %v758_v63 }
 0x150   : > { %v5516_v2 = vpop.eup %5515  ;;  %v778_v4 = vadd.f32 %v4404_v0, %v768_v1 }
 0x151   : > { %v5518_v3 = vpop.eup %5517  ;;  %v759_v5 = vmul.f32 %v5516_v2, %v727_v35 }
 0x152   : > { %v760_v6 = vmul.f32 %v5518_v3, %v728_v28  ;;  %4900 = vmatprep.mubr.msk.f32.mxu0 %vm708_vm0, %v778_v4 }
 0x153   : > { %v769_v7 = vmul.f32 %v4403_v62, %v759_v5 }
 0x154   : > { %v5520_v8 = vpop.eup %5519  ;;  %v770_v9 = vmul.f32 %v4403_v62, %v760_v6 }
 0x155   : > { %v779_v10 = vadd.f32 %v4404_v0, %v769_v7  ;;  %v761_v11 = vmul.f32 %v5520_v8, %v729_v36 }
 0x156   : > { %v780_v12 = vadd.f32 %v4404_v0, %v770_v9 }
 0x157   : > { %4901 = vmatmul.mubr.msk.f32.vlgmr.msra.gmra.mrb[0].mxu0 %vm708_vm0, %v779_v10  ;;  %v771_v13 = vmul.f32 %v4403_v62, %v761_v11 }
 0x158   : > { %4903 = vmatprep.mubr.msk.f32.mxu0 %vm708_vm0, %v780_v12  ;;  %5317 = vmatpush3.bf16.msra.mxu0 %v5943_v21 }
 0x159   : > { %v781_v14 = vadd.f32 %v4404_v0, %v771_v13  ;;  %5319 = vmatprep.subr.bf16.mxu0 %v5955_v24 }
 0x15b   : > { %4904 = vmatmul.mubr.msk.f32.gmra.mrb[2].mxu0 %vm708_vm0, %v781_v14 }
 0x15c   : > { %5321 = vmatpush3.bf16.msra.mxu0 %v5955_v24 }
 0x15d   : > { %4938 = vmatprep.subr.msk.mxu0 %vm1256_vm1, %v5991_v54 }
 0x22a   : > { %v4902_v26 = vpop.f32.mrb[0].mxu0 }
 0x22b   : > { %v877_v27 = vadd.f32 %v4902_v26, %v4405_v25  ;;  %v871_v28 = vpop.f32.mrb[1].mxu0 }
 0x22c   : > { %v872_v29 = vadd.f32 %v4405_v25, %v871_v28 }
 0x22d   : > { %896 = vrot.lane.b32.xlu1 %v877_v27, %s6632_s24 }
 0x22e   : > { %891 = vrot.lane.b32.xlu0 %v872_v29, %s6632_s24  ;;  %v4905_v30 = vpop.f32.mrb[2].mxu0 }
 0x22f   : > { %v881_v31 = vpop.f32.mrb[3].mxu0  ;;  %v887_v33 = vadd.f32 %v4905_v30, %v4405_v25 }
 0x230   : > { %v882_v32 = vadd.f32 %v4405_v25, %v881_v31 }
 0x232   : > { %1405 = vrot.lane.b32.xlu0 %v872_v29, %s6630_s25  ;;  %901 = vrot.lane.b32.xlu1 %v882_v32, %s6632_s24 }
 0x236   : > { %1415 = vrot.lane.b32.xlu0 %v882_v32, %s6630_s25  ;;  %906 = vrot.lane.b32.xlu1 %v887_v33, %s6632_s24  ;;  %s6647_s24 = smov 96  }
 0x23a   : > { %1410 = vrot.lane.b32.xlu1 %v877_v27, %s6630_s25 }
 0x23e   : > { %1420 = vrot.lane.b32.xlu1 %v887_v33, %s6630_s25  ;;  %s6648_s25 = smov 64  }
 0x29f   : > { %v897_v34 = vpop.permute.xlu1 %896 }
 0x2a0   : > { %v892_v35 = vpop.permute.xlu0 %891  ;;  %v899_v37 = vmul.f32 %v897_v34, %v872_v29  ;;  %v911_v43 = vmul.f32 %v897_v34, %v877_v27  ;;  %v915_v47 = vmul.f32 %v897_v34, %v882_v32  ;;  %v919_v51 = vmul.f32 %v897_v34, %v887_v33 }
 0x2a1   : > { %v894_v36 = vmul.f32 %v892_v35, %v872_v29  ;;  %v910_v42 = vmul.f32 %v892_v35, %v877_v27  ;;  %v914_v46 = vmul.f32 %v892_v35, %v882_v32  ;;  %v918_v50 = vmul.f32 %v892_v35, %v887_v33 }
 0x2a3   : > { %4914 = vmatprep.mubr.msk.f32.mxu0 %vm708_vm0, %v894_v36 }
 0x2a4   : > { %v902_v38 = vpop.permute.xlu1 %901  ;;  %4915 = vmatmul.mubr.msk.f32.vlgmr.msra.gmra.mrb[4].mxu0 %vm708_vm0, %v899_v37 }
 0x2a5   : > { %v904_v39 = vmul.f32 %v902_v38, %v872_v29  ;;  %v912_v44 = vmul.f32 %v902_v38, %v877_v27  ;;  %v916_v48 = vmul.f32 %v902_v38, %v882_v32  ;;  %v920_v52 = vmul.f32 %v902_v38, %v887_v33  ;;  %4939 = vmatpush3.msk.msra.mxu0 %vm1256_vm1, %v5991_v54 }
 0x2a7   : > { %4917 = vmatprep.mubr.msk.f32.mxu1 %vm708_vm0, %v904_v39 }
 0x2a8   : > { %v907_v40 = vpop.permute.xlu1 %906 }
 0x2a9   : > { %v909_v41 = vmul.f32 %v907_v40, %v872_v29  ;;  %v913_v45 = vmul.f32 %v907_v40, %v877_v27  ;;  %v917_v49 = vmul.f32 %v907_v40, %v882_v32  ;;  %v921_v53 = vmul.f32 %v907_v40, %v887_v33 }
 0x2ab   : > { %4918 = vmatmul.mubr.msk.f32.vlgmr.msra.gmra.mrb[0].mxu1 %vm708_vm0, %v909_v41 }
 0x2ac   : > { %4920 = vmatprep.mubr.msk.f32.mxu1 %vm708_vm0, %v910_v42 }
 0x2af   : > { %4921 = vmatmul.mubr.msk.f32.gmra.mrb[2].mxu1 %vm708_vm0, %v911_v43 }
 0x2b0   : > { %4923 = vmatprep.mubr.msk.f32.mxu1 %vm708_vm0, %v912_v44 }
 0x2b3   : > { %4924 = vmatmul.mubr.msk.f32.gmra.mrb[4].mxu1 %vm708_vm0, %v913_v45 }
 0x2b4   : > { %4926 = vmatprep.mubr.msk.f32.mxu1 %vm708_vm0, %v914_v46 }
 0x2b7   : > { %4927 = vmatmul.mubr.msk.f32.gmra.mrb[6].mxu1 %vm708_vm0, %v915_v47 }
 0x2b8   : > { %4929 = vmatprep.mubr.msk.f32.mxu1 %vm708_vm0, %v916_v48 }
 0x2bb   : > { %4930 = vmatmul.mubr.msk.f32.gmra.mrb[8].mxu1 %vm708_vm0, %v917_v49 }
 0x2bc   : > { %4932 = vmatprep.mubr.msk.f32.mxu1 %vm708_vm0, %v918_v50 }
 0x2bf   : > { %4933 = vmatmul.mubr.msk.f32.gmra.mrb[10].mxu1 %vm708_vm0, %v919_v51 }
 0x2c0   : > { %4935 = vmatprep.mubr.msk.f32.mxu1 %vm708_vm0, %v920_v52 }
 0x2c3   : > { %4936 = vmatmul.mubr.msk.f32.gmra.mrb[12].mxu1 %vm708_vm0, %v921_v53 }
 0x377   : > { %v4916_v55 = vpop.f32.mrb[4].mxu0 }
 0x378   : > { %v1036_v56 = vpop.f32.mrb[5].mxu0 }
 0x379   : > { %v1115_v57 = vmax.f32 %v1036_v56, %v4916_v55 }
 0x37e   : > { %v4919_v58 = vpop.f32.mrb[0].mxu1 }
 0x37f   : > { %v1046_v59 = vpop.f32.mrb[1].mxu1 }
 0x380   : > { %v1116_v60 = vmax.f32 %v1046_v59, %v4919_v58 }
 0x382   : > { %v1117_v61 = vmax.f32 %v1115_v57, %v1116_v60  ;;  %v4922_v62 = vpop.f32.mrb[2].mxu1 }
 0x383   : > { %v1056_v63 = vpop.f32.mrb[3].mxu1 }
 0x384   : > { %v1118_v0 = vsub.f32 %v1036_v56, %v1117_v61  ;;  %v1121_v1 = vsub.f32 %v4916_v55, %v1117_v61  ;;  %v1124_v2 = vsub.f32 %v1046_v59, %v1117_v61  ;;  %v1127_v3 = vsub.f32 %v4919_v58, %v1117_v61 }
 0x385   : > { %v1138_v4 = vmax.f32 %v1056_v63, %v4922_v62 }
 0x386   : > { %v1119_v5 = vmul.f32 1.442695, %v1118_v0  ;;  %v1122_v6 = vmul.f32 1.442695, %v1121_v1  ;;  %v1125_v7 = vmul.f32 1.442695, %v1124_v2 }
 0x387   : > { %v4925_v8 = vpop.f32.mrb[4].mxu1  ;;  %v1128_v9 = vmul.f32 1.442695, %v1127_v3 }
 0x388   : > { %5521 = vpow2.f32 %v1119_v5  ;;  %v1066_v10 = vpop.f32.mrb[5].mxu1 }
 0x389   : > { %5523 = vpow2.f32 %v1122_v6  ;;  %v1139_v11 = vmax.f32 %v1066_v10, %v4925_v8 }
 0x38a   : > { %v4928_v12 = vpop.f32.mrb[6].mxu1  ;;  %5525 = vpow2.f32 %v1125_v7 }
 0x38b   : > { %v1140_v13 = vmax.f32 %v1138_v4, %v1139_v11  ;;  %v1076_v14 = vpop.f32.mrb[7].mxu1  ;;  %5527 = vpow2.f32 %v1128_v9 }
 0x38c   : > { %v1161_v19 = vmax.f32 %v1076_v14, %v4928_v12 }
 0x38d   : > { %v1141_v20 = vsub.f32 %v1056_v63, %v1140_v13  ;;  %v1144_v22 = vsub.f32 %v4922_v62, %v1140_v13  ;;  %v1147_v23 = vsub.f32 %v1066_v10, %v1140_v13  ;;  %v1150_v25 = vsub.f32 %v4925_v8, %v1140_v13 }
 0x38e   : > { %v4931_v26 = vpop.f32.mrb[8].mxu1 }
 0x38f   : > { %v1142_v27 = vmul.f32 1.442695, %v1141_v20  ;;  %v1145_v28 = vmul.f32 1.442695, %v1144_v22  ;;  %v1148_v29 = vmul.f32 1.442695, %v1147_v23 }
 0x390   : > { %v1086_v30 = vpop.f32.mrb[9].mxu1  ;;  %v1151_v33 = vmul.f32 1.442695, %v1150_v25 }
 0x391   : > { %5529 = vpow2.f32 %v1142_v27  ;;  %v1162_v31 = vmax.f32 %v1086_v30, %v4931_v26 }
 0x392   : > { %v5522_v32 = vpop.eup %5521  ;;  %5531 = vpow2.f32 %v1145_v28  ;;  %v4934_v34 = vpop.f32.mrb[10].mxu1 }
 0x393   : > { %v5524_v35 = vpop.eup %5523  ;;  %v1163_v36 = vmax.f32 %v1161_v19, %v1162_v31  ;;  %v1096_v37 = vpop.f32.mrb[11].mxu1  ;;  %5533 = vpow2.f32 %v1148_v29 }
 0x394   : > { %v1130_v38 = vadd.f32 %v5524_v35, %v5522_v32  ;;  %v1184_v39 = vmax.f32 %v1096_v37, %v4934_v34  ;;  %v5526_v40 = vpop.eup %5525  ;;  %5535 = vpow2.f32 %v1151_v33 }
 0x395   : > { %v1164_v41 = vsub.f32 %v1076_v14, %v1163_v36  ;;  %v1167_v42 = vsub.f32 %v4928_v12, %v1163_v36  ;;  %v1170_v43 = vsub.f32 %v1086_v30, %v1163_v36  ;;  %v1173_v44 = vsub.f32 %v4931_v26, %v1163_v36  ;;  %v5528_v45 = vpop.eup %5527 }
 0x396   : > { %v1131_v46 = vadd.f32 %v5526_v40, %v1130_v38  ;;  %v4937_v47 = vpop.f32.mrb[12].mxu1 }
 0x397   : > { %v1165_v48 = vmul.f32 1.442695, %v1164_v41  ;;  %v1168_v49 = vmul.f32 1.442695, %v1167_v42  ;;  %v1106_v51 = vpop.f32.mrb[13].mxu1 }
 0x398   : > { %v1132_v50 = vadd.f32 %v5528_v45, %v1131_v46  ;;  %v1171_v52 = vmul.f32 1.442695, %v1170_v43  ;;  %v1185_v53 = vmax.f32 %v1106_v51, %v4937_v47  ;;  %v1174_v56 = vmul.f32 1.442695, %v1173_v44 }
 0x399   : > { %5537 = vpow2.f32 %v1165_v48  ;;  %v1449_v48 = vld [vmem:[%s6620_s12] sm:$0xff] }
 0x39a   : > { %5539 = vrcp.f32 %v1132_v50  ;;  %v1186_v57 = vmax.f32 %v1184_v39, %v1185_v53 }
 0x39b   : > { %v5530_v55 = vpop.eup %5529  ;;  %5541 = vpow2.f32 %v1168_v49  ;;  %v1450_v49 = vld [vmem:[%s6620_s12 + $0x8] sm:$0xff] }
 0x39c   : > { %v5532_v58 = vpop.eup %5531  ;;  %5543 = vpow2.f32 %v1171_v52  ;;  %v1187_v60 = vsub.f32 %v1096_v37, %v1186_v57  ;;  %v1190_v61 = vsub.f32 %v4934_v34, %v1186_v57  ;;  %v1193_v63 = vsub.f32 %v1106_v51, %v1186_v57  ;;  %v1451_v51 = vld [vmem:[%s6620_s12 + $0x10] sm:$0xff]  ;;  %v1452_v52 = vld [vmem:[%s6620_s12 + $0x18] sm:$0xff] }
 0x39d   : > { %v1153_v59 = vadd.f32 %v5532_v58, %v5530_v55  ;;  %v5534_v62 = vpop.eup %5533  ;;  %v1196_v0 = vsub.f32 %v4937_v47, %v1186_v57  ;;  %5545 = vpow2.f32 %v1174_v56  ;;  %v5322_v50 = vpack.c.bf16 %v1450_v49, %v1449_v48  ;;  %v1411_v56 = vpop.permute.xlu1 %1410 }
 0x39e   : > { %v1188_v2 = vmul.f32 1.442695, %v1187_v60  ;;  %v1191_v3 = vmul.f32 1.442695, %v1190_v61  ;;  %v5536_v4 = vpop.eup %5535  ;;  %v1194_v5 = vmul.f32 1.442695, %v1193_v63  ;;  %v5326_v53 = vpack.c.bf16 %v1452_v52, %v1451_v51 }
 0x39f   : > { %v1154_v1 = vadd.f32 %v5534_v62, %v1153_v59  ;;  %v1197_v7 = vmul.f32 1.442695, %v1196_v0  ;;  %5323 = vmatprep.subr.bf16.mxu1 %v5322_v50 }
 0x3a0   : > { %5547 = vpow2.f32 %v1188_v2  ;;  %5325 = vmatpush3.bf16.msra.mxu1 %v5322_v50 }
 0x3a1   : > { %v1155_v6 = vadd.f32 %v5536_v4, %v1154_v1  ;;  %5549 = vpow2.f32 %v1191_v3  ;;  %5327 = vmatprep.subr.bf16.mxu1 %v5326_v53  ;;  %v1421_v2 = vpop.permute.xlu1 %1420 }
 0x3a3   : > { %v5538_v8 = vpop.eup %5537  ;;  %5551 = vrcp.f32 %v1155_v6 }
 0x3a4   : > { %v5540_v9 = vpop.eup %5539  ;;  %5553 = vpow2.f32 %v1194_v5  ;;  %5329 = vmatpush3.bf16.msra.mxu1 %v5326_v53 }
 0x3a5   : > { %v5542_v10 = vpop.eup %5541  ;;  %v1134_v11 = vmul.f32 %v5540_v9, %v5522_v32  ;;  %v1135_v12 = vmul.f32 %v5540_v9, %v5524_v35  ;;  %v1136_v13 = vmul.f32 %v5540_v9, %v5526_v40  ;;  %5555 = vpow2.f32 %v1197_v7 }
 0x3a6   : > { %v1176_v14 = vadd.f32 %v5542_v10, %v5538_v8  ;;  %v1137_v19 = vmul.f32 %v5540_v9, %v5528_v45  ;;  %v5544_v20 = vpop.eup %5543 }
 0x3a7   : > { %4940 = vmatprep.mubr.msk.f32.mxu0 %vm1207_vm2, %v1134_v11  ;;  %v5546_v23 = vpop.eup %5545 }
 0x3a8   : > { %v1177_v22 = vadd.f32 %v5544_v20, %v1176_v14  ;;  %4941 = vmatmul.mubr.msk.f32.vlgmr.msra.gmra.mrb[6].mxu0 %vm1207_vm2, %v1135_v12 }
 0x3a9   : > { %4943 = vmatprep.mubr.msk.f32.mxu0 %vm1207_vm2, %v1136_v13 }
 0x3aa   : > { %v1178_v25 = vadd.f32 %v5546_v23, %v1177_v22  ;;  %v5548_v26 = vpop.eup %5547 }
 0x3ab   : > { %v5550_v27 = vpop.eup %5549 }
 0x3ac   : > { %5557 = vrcp.f32 %v1178_v25  ;;  %4944 = vmatmul.mubr.msk.f32.gmra.mrb[8].mxu0 %vm1207_vm2, %v1137_v19  ;;  %v1199_v29 = vadd.f32 %v5550_v27, %v5548_v26 }
 0x3ad   : > { %v5552_v28 = vpop.eup %5551 }
 0x3ae   : > { %v5554_v30 = vpop.eup %5553  ;;  %v1157_v31 = vmul.f32 %v5552_v28, %v5530_v55  ;;  %v1158_v32 = vmul.f32 %v5552_v28, %v5532_v58  ;;  %v1159_v33 = vmul.f32 %v5552_v28, %v5534_v62  ;;  %v1160_v34 = vmul.f32 %v5552_v28, %v5536_v4  ;;  %v1406_v55 = vpop.permute.xlu0 %1405 }
 0x3af   : > { %v1200_v35 = vadd.f32 %v5554_v30, %v1199_v29  ;;  %v5556_v36 = vpop.eup %5555 }
 0x3b0   : > { %4946 = vmatprep.mubr.msk.f32.mxu0 %vm1207_vm2, %v1157_v31 }
 0x3b1   : > { %v1201_v37 = vadd.f32 %v5556_v36, %v1200_v35  ;;  %4947 = vmatmul.mubr.msk.f32.gmra.mrb[10].mxu0 %vm1207_vm2, %v1158_v32 }
 0x3b2   : > { %4949 = vmatprep.mubr.msk.f32.mxu0 %vm1207_vm2, %v1159_v33  ;;  %v1416_v63 = vpop.permute.xlu0 %1415 }
 0x3b3   : > { %5559 = vrcp.f32 %v1201_v37 }
 0x3b5   : > { %4950 = vmatmul.mubr.msk.f32.gmra.mrb[12].mxu0 %vm1207_vm2, %v1160_v34 }
 0x3b6   : > { %v5558_v38 = vpop.eup %5557 }
 0x3b7   : > { %v1180_v39 = vmul.f32 %v5558_v38, %v5538_v8  ;;  %v1181_v40 = vmul.f32 %v5558_v38, %v5542_v10  ;;  %v1182_v41 = vmul.f32 %v5558_v38, %v5544_v20  ;;  %v1183_v42 = vmul.f32 %v5558_v38, %v5546_v23 }
 0x3b9   : > { %4952 = vmatprep.mubr.msk.f32.mxu0 %vm1207_vm2, %v1180_v39 }
 0x3ba   : > { %4953 = vmatmul.mubr.msk.f32.gmra.mrb[14].mxu0 %vm1207_vm2, %v1181_v40 }
 0x3bb   : > { %4955 = vmatprep.mubr.msk.f32.mxu0 %vm1207_vm2, %v1182_v41 }
 0x3bd   : > { %v5560_v43 = vpop.eup %5559 }
 0x3be   : > { %4956 = vmatmul.mubr.msk.f32.gmra.mrb[16].mxu0 %vm1207_vm2, %v1183_v42  ;;  %v1203_v44 = vmul.f32 %v5560_v43, %v5548_v26  ;;  %v1204_v45 = vmul.f32 %v5560_v43, %v5550_v27  ;;  %v1205_v46 = vmul.f32 %v5560_v43, %v5554_v30  ;;  %v1206_v47 = vmul.f32 %v5560_v43, %v5556_v36 }
 0x3c0   : > { %4958 = vmatprep.mubr.msk.f32.mxu0 %vm1207_vm2, %v1203_v44 }
 0x3c2   : > { %4959 = vmatmul.mubr.msk.f32.gmra.mrb[18].mxu0 %vm1207_vm2, %v1204_v45 }
 0x3c3   : > { %4961 = vmatprep.mubr.msk.f32.mxu0 %vm1207_vm2, %v1205_v46  ;;  %v4447_v46 = vld [vmem:[%s6621_s13] ss:$0 sm:$0xff] }
 0x3c6   : > { %4962 = vmatmul.mubr.msk.f32.gmra.mrb[20].mxu0 %vm1207_vm2, %v1206_v47 }
 0x47b   : > { %v4942_v57 = vpop.f32.mrb[6].mxu0 }
 0x47c   : > { %v1413_v58 = vmul.f32 %v4942_v57, %v1411_v56  ;;  %v1326_v59 = vpop.f32.mrb[7].mxu0 }
 0x47d   : > { %v1408_v60 = vmul.f32 %v1406_v55, %v1326_v59 }
 0x47f   : > { %v1414_v61 = vadd.f32 %v1413_v58, %v1408_v60  ;;  %v4945_v62 = vpop.f32.mrb[8].mxu0 }
 0x480   : > { %v1336_v0 = vpop.f32.mrb[9].mxu0  ;;  %v1423_v3 = vmul.f32 %v4945_v62, %v1421_v2 }
 0x481   : > { %v1418_v1 = vmul.f32 %v1416_v63, %v1336_v0 }
 0x483   : > { %v1419_v4 = vadd.f32 %v1418_v1, %v1414_v61 }
 0x484   : > { %v4948_v5 = vpop.f32.mrb[10].mxu0 }
 0x485   : > { %v1424_v6 = vadd.f32 %v1423_v3, %v1419_v4  ;;  %v1427_v7 = vmul.f32 %v4948_v5, %v1411_v56  ;;  %v1346_v8 = vpop.f32.mrb[11].mxu0 }
 0x486   : > { %v1425_v9 = vmul.f32 %v1406_v55, %v1346_v8 }
 0x487   : > { %4972 = vmatprep.mubr.msk.f32.mxu1 %vm708_vm0, %v1424_v6 }
 0x488   : > { %v1428_v10 = vadd.f32 %v1427_v7, %v1425_v9  ;;  %v4951_v11 = vpop.f32.mrb[12].mxu0 }
 0x489   : > { %v1356_v12 = vpop.f32.mrb[13].mxu0  ;;  %v1431_v14 = vmul.f32 %v4951_v11, %v1421_v2 }
 0x48a   : > { %v1429_v13 = vmul.f32 %v1416_v63, %v1356_v12 }
 0x48c   : > { %v1430_v19 = vadd.f32 %v1429_v13, %v1428_v10 }
 0x48d   : > { %v4954_v20 = vpop.f32.mrb[14].mxu0 }
 0x48e   : > { %v1432_v22 = vadd.f32 %v1431_v14, %v1430_v19  ;;  %v1435_v23 = vmul.f32 %v4954_v20, %v1411_v56  ;;  %v1366_v25 = vpop.f32.mrb[15].mxu0  ;;  %v1639_v19 = vld [vmem:[%s6624_s16] sm:$0xff]  ;;  %v1640_v20 = vld [vmem:[%s6624_s16 + $0x8] sm:$0xff] }
 0x48f   : > { %v1433_v26 = vmul.f32 %v1406_v55, %v1366_v25  ;;  %v1642_v25 = vld [vmem:[%s6624_s16 + $0x18] sm:$0xff] }
 0x490   : > { %4973 = vmatmul.mubr.msk.f32.vlgmr.msra.gmra.mrb[14].mxu1 %vm708_vm0, %v1432_v22  ;;  %v5330_v22 = vpack.c.bf16 %v1640_v20, %v1639_v19  ;;  %v1793_v19 = vld [vmem:[%s6626_s18 + $0x70] sm:$0xff]  ;;  %v1794_v20 = vld [vmem:[%s6626_s18 + $0x78] sm:$0xff] }
 0x491   : > { %v1436_v27 = vadd.f32 %v1435_v23, %v1433_v26  ;;  %v4957_v28 = vpop.f32.mrb[16].mxu0  ;;  %v1641_v23 = vld [vmem:[%s6624_s16 + $0x10] sm:$0xff] }
 0x492   : > { %v1376_v29 = vpop.f32.mrb[17].mxu0  ;;  %v1439_v31 = vmul.f32 %v4957_v28, %v1421_v2  ;;  %5331 = vmatprep.subr.bf16.mxu0 %v5330_v22  ;;  %v5334_v26 = vpack.c.bf16 %v1642_v25, %v1641_v23  ;;  %v4450_v23 = vld [vmem:[%s6625_s17] ss:$0 sm:$0xff] }
 0x493   : > { %v1437_v30 = vmul.f32 %v1416_v63, %v1376_v29  ;;  %5333 = vmatpush3.bf16.msra.mxu0 %v5330_v22  ;;  %v5366_v22 = vpack.c.bf16 %v1794_v20, %v1793_v19 }
 0x494   : > { %5335 = vmatprep.subr.bf16.mxu0 %v5334_v26 }
 0x495   : > { %v1438_v32 = vadd.f32 %v1437_v30, %v1436_v27  ;;  %v4960_v33 = vpop.f32.mrb[18].mxu0 }
 0x496   : > { %v1443_v34 = vmul.f32 %v4960_v33, %v1411_v56  ;;  %v1386_v35 = vpop.f32.mrb[19].mxu0 }
 0x497   : > { %v1440_v36 = vadd.f32 %v1439_v31, %v1438_v32  ;;  %v1441_v37 = vmul.f32 %v1406_v55, %v1386_v35  ;;  %5337 = vmatpush3.bf16.msra.mxu0 %v5334_v26 }
 0x499   : > { %v1444_v38 = vadd.f32 %v1443_v34, %v1441_v37  ;;  %v4963_v39 = vpop.f32.mrb[20].mxu0  ;;  %4975 = vmatprep.mubr.msk.f32.mxu1 %vm708_vm0, %v1440_v36  ;;  %v4448_v34 = vld [vmem:[%s6622_s14] ss:$0 sm:$0xff] }
 0x49a   : > { %v1396_v40 = vpop.f32.mrb[21].mxu0  ;;  %v1447_v42 = vmul.f32 %v4963_v39, %v1421_v2  ;;  %v4449_v39 = vld [vmem:[%s6623_s15] ss:$0 sm:$0xff] }
 0x49b   : > { %v1445_v41 = vmul.f32 %v1416_v63, %v1396_v40 }
 0x49d   : > { %v1446_v43 = vadd.f32 %v1445_v41, %v1444_v38 }
 0x49f   : > { %v1448_v44 = vadd.f32 %v1447_v42, %v1446_v43 }
 0x4a1   : > { %4976 = vmatmul.mubr.msk.f32.gmra.mrb[16].mxu1 %vm708_vm0, %v1448_v44 }
 0x563   : > { %v4974_v45 = vpop.f32.mrb[14].mxu1 }
 0x564   : > { %v1551_v47 = vadd.f32 %v4974_v45, %v5895_v17  ;;  %v1531_v48 = vpop.f32.mrb[15].mxu1 }
 0x565   : > { %v1550_v49 = vadd.f32 %v1531_v48, %v5891_v15 }
 0x566   : > { %v6034_v50 = vadd.f32 %v4447_v46, %v1551_v47 }
 0x567   : > { %v6036_v51 = vadd.f32 %v4447_v46, %v1550_v49 }
 0x568   : > { %v1570_v52 = vsel %vm708_vm0, %v6034_v50, 0.0 }
 0x569   : > { %1571 = vadd.xlane.f32.xlu1 %v1570_v52  ;;  %v1567_v53 = vsel %vm708_vm0, %v6036_v51, 0.0 }
 0x56a   : > { %1568 = vadd.xlane.f32.xlu0 %v1567_v53 }
 0x574   : > { %v4977_v55 = vpop.f32.mrb[16].mxu1 }
 0x575   : > { %v1541_v56 = vpop.f32.mrb[17].mxu1  ;;  %v1553_v57 = vadd.f32 %v4977_v55, %v5897_v18 }
 0x576   : > { %v1552_v17 = vadd.f32 %v1541_v56, %v5893_v16 }
 0x577   : > { %v6046_v15 = vadd.f32 %v4447_v46, %v1553_v57 }
 0x578   : > { %v6044_v58 = vadd.f32 %v4447_v46, %v1552_v17 }
 0x579   : > { %v1576_v60 = vsel %vm708_vm0, %v6046_v15, 0.0 }
 0x57a   : > { %v1573_v59 = vsel %vm708_vm0, %v6044_v58, 0.0 }
 0x57b   : > { %1574 = vadd.xlane.f32.xlu0 %v1573_v59 }
 0x57f   : > { %1577 = vadd.xlane.f32.xlu0 %v1576_v60  ;;  %v1779_v60 = vld [vmem:[%s6626_s18] sm:$0xff] }
 0x5f6   : > { %v1572_v61 = vpop.xlane.xlu1 %1571 }
 0x5f7   : > { %v1580_v62 = vmul.f32 0.03125, %v1572_v61  ;;  %v1569_v63 = vpop.xlane.xlu0 %1568  ;;  %v1780_v61 = vld [vmem:[%s6626_s18 + $0x8] sm:$0xff] }
 0x5f8   : > { %v1579_v0 = vmul.f32 0.03125, %v1569_v63  ;;  %v1781_v63 = vld [vmem:[%s6626_s18 + $0x10] sm:$0xff] }
 0x5f9   : > { %v1584_v18 = vsub.f32 %v6034_v50, %v1580_v62  ;;  %v5338_v62 = vpack.c.bf16 %v1780_v61, %v1779_v60  ;;  %v4459_v61 = vld [vmem:[%s6627_s19] ss:$0 sm:$0xff] }
 0x5fa   : > { %v1583_v16 = vsub.f32 %v6036_v51, %v1579_v0  ;;  %v1782_v0 = vld [vmem:[%s6626_s18 + $0x18] sm:$0xff] }
 0x5fb   : > { %v1588_v1 = vmul.f32 %v1584_v18, %v1584_v18  ;;  %5339 = vmatprep.subr.bf16.mxu1 %v5338_v62 }
 0x5fc   : > { %v1587_v2 = vmul.f32 %v1583_v16, %v1583_v16  ;;  %5341 = vmatpush3.bf16.msra.mxu1 %v5338_v62 }
 0x5fd   : > { %v1594_v3 = vsel %vm708_vm0, %v1588_v1, 0.0  ;;  %v1784_v1 = vld [vmem:[%s6626_s18 + $0x28] sm:$0xff] }
 0x5fe   : > { %1595 = vadd.xlane.f32.xlu1 %v1594_v3  ;;  %v1591_v4 = vsel %vm708_vm0, %v1587_v2, 0.0  ;;  %v1785_v3 = vld [vmem:[%s6626_s18 + $0x30] sm:$0xff] }
 0x5ff   : > { %1592 = vadd.xlane.f32.xlu0 %v1591_v4  ;;  %v1786_v4 = vld [vmem:[%s6626_s18 + $0x38] sm:$0xff] }
 0x608   : > { %v1575_v5 = vpop.xlane.xlu0 %1574 }
 0x609   : > { %v1581_v6 = vmul.f32 0.03125, %v1575_v5  ;;  %v5350_v5 = vpack.c.bf16 %v1786_v4, %v1785_v3 }
 0x60b   : > { %v1585_v7 = vsub.f32 %v6044_v58, %v1581_v6  ;;  %v1787_v6 = vld [vmem:[%s6626_s18 + $0x40] sm:$0xff] }
 0x60c   : > { %v1578_v8 = vpop.xlane.xlu0 %1577 }
 0x60d   : > { %v1582_v9 = vmul.f32 0.03125, %v1578_v8  ;;  %v1589_v10 = vmul.f32 %v1585_v7, %v1585_v7 }
 0x60f   : > { %v1586_v11 = vsub.f32 %v6046_v15, %v1582_v9  ;;  %v1597_v12 = vsel %vm708_vm0, %v1589_v10, 0.0  ;;  %v1789_v9 = vld [vmem:[%s6626_s18 + $0x50] sm:$0xff]  ;;  %v1790_v10 = vld [vmem:[%s6626_s18 + $0x58] sm:$0xff] }
 0x610   : > { %1598 = vadd.xlane.f32.xlu0 %v1597_v12  ;;  %v1791_v12 = vld [vmem:[%s6626_s18 + $0x60] sm:$0xff] }
 0x611   : > { %v1590_v13 = vmul.f32 %v1586_v11, %v1586_v11 }
 0x613   : > { %v1600_v14 = vsel %vm708_vm0, %v1590_v13, 0.0  ;;  %v1792_v13 = vld [vmem:[%s6626_s18 + $0x68] sm:$0xff] }
 0x614   : > { %1601 = vadd.xlane.f32.xlu1 %v1600_v14  ;;  %v5362_v14 = vpack.c.bf16 %v1792_v13, %v1791_v12 }
 0x68b   : > { %v1596_v27 = vpop.xlane.xlu1 %1595 }
 0x68c   : > { %v1604_v28 = vmul.f32 0.03125, %v1596_v27  ;;  %v1593_v29 = vpop.xlane.xlu0 %1592 }
 0x68d   : > { %v1603_v30 = vmul.f32 0.03125, %v1593_v29 }
 0x68e   : > { %v1608_v31 = vadd.f32 1e-05, %v1604_v28 }
 0x68f   : > { %v1607_v32 = vadd.f32 1e-05, %v1603_v30 }
 0x690   : > { %5561 = vrsqrt.f32 %v1608_v31 }
 0x691   : > { %5563 = vrsqrt.f32 %v1607_v32 }
 0x69a   : > { %v5562_v33 = vpop.eup %5561 }
 0x69b   : > { %v5564_v35 = vpop.eup %5563  ;;  %v1616_v36 = vmul.f32 %v5562_v33, %v1584_v18  ;;  %v5342_v18 = vpack.c.bf16 %v1782_v0, %v1781_v63 }
 0x69c   : > { %v1615_v37 = vmul.f32 %v5564_v35, %v1583_v16  ;;  %v1783_v16 = vld [vmem:[%s6626_s18 + $0x20] sm:$0xff] }
 0x69d   : > { %v1599_v38 = vpop.xlane.xlu0 %1598  ;;  %v1626_v40 = vmul.f32 %v4448_v34, %v1616_v36  ;;  %5343 = vmatprep.subr.bf16.mxu1 %v5342_v18  ;;  %v5346_v2 = vpack.c.bf16 %v1784_v1, %v1783_v16 }
 0x69e   : > { %v1605_v41 = vmul.f32 0.03125, %v1599_v38  ;;  %v1625_v42 = vmul.f32 %v4448_v34, %v1615_v37  ;;  %5345 = vmatpush3.bf16.msra.mxu1 %v5342_v18 }
 0x69f   : > { %v1636_v46 = vadd.f32 %v4449_v39, %v1626_v40  ;;  %5347 = vmatprep.subr.bf16.mxu1 %v5346_v2 }
 0x6a0   : > { %v1609_v43 = vadd.f32 1e-05, %v1605_v41  ;;  %v1635_v44 = vadd.f32 %v4449_v39, %v1625_v42 }
 0x6a1   : > { %v1602_v45 = vpop.xlane.xlu1 %1601 }
 0x6a2   : > { %5565 = vrsqrt.f32 %v1609_v43  ;;  %v1606_v47 = vmul.f32 0.03125, %v1602_v45  ;;  %4986 = vmatprep.mubr.msk.f32.mxu0 %vm708_vm0, %v1635_v44  ;;  %5349 = vmatpush3.bf16.msra.mxu1 %v5346_v2 }
 0x6a3   : > { %4987 = vmatmul.mubr.msk.f32.vlgmr.msra.gmra.mrb[22].mxu0 %vm708_vm0, %v1636_v46  ;;  %5351 = vmatprep.subr.bf16.mxu1 %v5350_v5 }
 0x6a4   : > { %v1610_v48 = vadd.f32 1e-05, %v1606_v47 }
 0x6a6   : > { %5567 = vrsqrt.f32 %v1610_v48  ;;  %5353 = vmatpush3.bf16.msra.mxu1 %v5350_v5 }
 0x6ac   : > { %v5566_v49 = vpop.eup %5565 }
 0x6ad   : > { %v1617_v52 = vmul.f32 %v5566_v49, %v1585_v7  ;;  %v1788_v7 = vld [vmem:[%s6626_s18 + $0x48] sm:$0xff] }
 0x6ae   : > { %v5354_v8 = vpack.c.bf16 %v1788_v7, %v1787_v6 }
 0x6af   : > { %v1627_v53 = vmul.f32 %v4448_v34, %v1617_v52 }
 0x6b0   : > { %v5568_v55 = vpop.eup %5567  ;;  %5355 = vmatprep.subr.bf16.mxu1 %v5354_v8 }
 0x6b1   : > { %v1637_v56 = vadd.f32 %v4449_v39, %v1627_v53  ;;  %v1618_v57 = vmul.f32 %v5568_v55, %v1586_v11  ;;  %5357 = vmatpush3.bf16.msra.mxu1 %v5354_v8  ;;  %v5358_v11 = vpack.c.bf16 %v1790_v10, %v1789_v9 }
 0x6b3   : > { %4989 = vmatprep.mubr.msk.f32.mxu0 %vm708_vm0, %v1637_v56  ;;  %v1628_v17 = vmul.f32 %v4448_v34, %v1618_v57  ;;  %5359 = vmatprep.subr.bf16.mxu1 %v5358_v11 }
 0x6b5   : > { %v1638_v59 = vadd.f32 %v4449_v39, %v1628_v17  ;;  %5361 = vmatpush3.bf16.msra.mxu1 %v5358_v11 }
 0x6b6   : > { %5363 = vmatprep.subr.bf16.mxu1 %v5362_v14 }
 0x6b7   : > { %4990 = vmatmul.mubr.msk.f32.gmra.mrb[24].mxu0 %vm708_vm0, %v1638_v59 }
 0x6b9   : > { %5365 = vmatpush3.bf16.msra.mxu1 %v5362_v14 }
 0x6ba   : > { %5367 = vmatprep.subr.bf16.mxu1 %v5366_v22 }
 0x6bd   : > { %5369 = vmatpush3.bf16.msra.mxu1 %v5366_v22 }
 0x6be   : > { %5076 = vmatprep.subr.msk.mxu1 %vm1256_vm1, %v5991_v54 }
 0x776   : > { %v4988_v25 = vpop.f32.mrb[22].mxu0 }
 0x777   : > { %v1734_v26 = vadd.f32 %v4988_v25, %v4450_v23  ;;  %v1728_v27 = vpop.f32.mrb[23].mxu0 }
 0x778   : > { %v1729_v28 = vadd.f32 %v4450_v23, %v1728_v27 }
 0x779   : > { %v4456_v29 = vmul.f32 -1.702, %v1734_v26 }
 0x77a   : > { %v4455_v30 = vmul.f32 -1.702, %v1729_v28 }
 0x77b   : > { %v1757_v31 = vmul.f32 1.442695, %v4456_v29 }
 0x77c   : > { %v1755_v32 = vmul.f32 1.442695, %v4455_v30 }
 0x77d   : > { %5569 = vpow2.f32 %v1757_v31 }
 0x77e   : > { %5571 = vpow2.f32 %v1755_v32  ;;  %v4464_v32 = vld [vmem:[%s6618_s10 + $0x20] sm:$0xff] }
 0x787   : > { %v5570_v33 = vpop.eup %5569 }
 0x788   : > { %v5572_v34 = vpop.eup %5571  ;;  %v1764_v35 = vadd.f32 1.0, %v5570_v33  ;;  %v4465_v33 = vld [vmem:[%s6618_s10 + $0x28] sm:$0xff] }
 0x789   : > { %v1763_v36 = vadd.f32 1.0, %v5572_v34  ;;  %v5370_v34 = vpack.c.bf16 %v4465_v33, %v4464_v32 }
 0x78a   : > { %5573 = vrcp.f32 %v1764_v35  ;;  %v4991_v37 = vpop.f32.mrb[24].mxu0  ;;  %v4466_v35 = vld [vmem:[%s6618_s10 + $0x30] sm:$0xff] }
 0x78b   : > { %5575 = vrcp.f32 %v1763_v36  ;;  %v1744_v38 = vadd.f32 %v4991_v37, %v4450_v23  ;;  %v1738_v39 = vpop.f32.mrb[25].mxu0  ;;  %5371 = vmatprep.subr.bf16.mxu0 %v5370_v34  ;;  %v4467_v36 = vld [vmem:[%s6618_s10 + $0x38] sm:$0xff] }
 0x78c   : > { %v1739_v40 = vadd.f32 %v4450_v23, %v1738_v39  ;;  %5373 = vmatpush3.bf16.msra.mxu0 %v5370_v34  ;;  %v5374_v37 = vpack.c.bf16 %v4467_v36, %v4466_v35 }
 0x78d   : > { %v4458_v41 = vmul.f32 -1.702, %v1744_v38 }
 0x78e   : > { %v4457_v42 = vmul.f32 -1.702, %v1739_v40  ;;  %5375 = vmatprep.subr.bf16.mxu0 %v5374_v37 }
 0x78f   : > { %v1761_v43 = vmul.f32 1.442695, %v4458_v41 }
 0x790   : > { %v1759_v44 = vmul.f32 1.442695, %v4457_v42  ;;  %5377 = vmatpush3.bf16.msra.mxu0 %v5374_v37 }
 0x791   : > { %5577 = vpow2.f32 %v1761_v43  ;;  %5379 = vmatprep.subr.bf16.mxu0 %v5943_v21 }
 0x792   : > { %5579 = vpow2.f32 %v1759_v44 }
 0x794   : > { %v5574_v45 = vpop.eup %5573 }
 0x795   : > { %v5576_v46 = vpop.eup %5575  ;;  %v1776_v48 = vmul.f32 %v5574_v45, %v1734_v26  ;;  %v4462_v45 = vld [vmem:[%s6616_s8 + $0x1] ss:$0 sm:$0xff] }
 0x796   : > { %v1775_v47 = vmul.f32 %v5576_v46, %v1729_v28 }
 0x798   : > { %5024 = vmatprep.mubr.f32.mxu1 %v1775_v47 }
 0x799   : > { %5025 = vmatmul.mubr.f32.vlgmr.msra.gmra.mrb[18].mxu1 %v1776_v48 }
 0x79a   : > { %5077 = vmatpush3.msk.msra.mxu1 %vm1256_vm1, %v5991_v54 }
 0x79b   : > { %v5578_v49 = vpop.eup %5577 }
 0x79c   : > { %v5580_v52 = vpop.eup %5579  ;;  %v1766_v53 = vadd.f32 1.0, %v5578_v49  ;;  %v4463_v49 = vld [vmem:[%s6617_s9 + $0x1] ss:$0 sm:$0xff] }
 0x79d   : > { %v1765_v55 = vadd.f32 1.0, %v5580_v52 }
 0x79e   : > { %5581 = vrcp.f32 %v1766_v53 }
 0x79f   : > { %5583 = vrcp.f32 %v1765_v55 }
 0x7a8   : > { %v5582_v56 = vpop.eup %5581 }
 0x7a9   : > { %v5584_v57 = vpop.eup %5583  ;;  %v1778_v59 = vmul.f32 %v5582_v56, %v1744_v38 }
 0x7aa   : > { %v1777_v17 = vmul.f32 %v5584_v57, %v1739_v40 }
 0x7ac   : > { %5027 = vmatprep.mubr.f32.mxu1 %v1777_v17 }
 0x7ad   : > { %5028 = vmatmul.mubr.f32.gmra.mrb[20].mxu1 %v1778_v59 }
 0x86c   : > { %v5026_v60 = vpop.f32.mrb[18].mxu1 }
 0x86d   : > { %v1881_v62 = vadd.f32 %v5026_v60, %v6034_v50  ;;  %v1861_v54 = vpop.f32.mrb[19].mxu1 }
 0x86e   : > { %v1880_v63 = vadd.f32 %v1861_v54, %v6036_v51 }
 0x86f   : > { %v6142_v0 = vadd.f32 %v4459_v61, %v1881_v62 }
 0x870   : > { %v6144_v18 = vadd.f32 %v4459_v61, %v1880_v63 }
 0x871   : > { %v1902_v16 = vsel %vm708_vm0, %v6142_v0, 0.0 }
 0x872   : > { %1903 = vadd.xlane.f32.xlu1 %v1902_v16  ;;  %v1899_v1 = vsel %vm708_vm0, %v6144_v18, 0.0 }
 0x873   : > { %1900 = vadd.xlane.f32.xlu0 %v1899_v1 }
 0x880   : > { %v5029_v2 = vpop.f32.mrb[20].mxu1 }
 0x881   : > { %v1883_v3 = vadd.f32 %v5029_v2, %v6046_v15  ;;  %v1871_v4 = vpop.f32.mrb[21].mxu1 }
 0x882   : > { %v1882_v50 = vadd.f32 %v1871_v4, %v6044_v58 }
 0x883   : > { %v6152_v5 = vadd.f32 %v4459_v61, %v1883_v3 }
 0x884   : > { %v6154_v51 = vadd.f32 %v4459_v61, %v1882_v50 }
 0x885   : > { %v1908_v6 = vsel %vm708_vm0, %v6152_v5, 0.0 }
 0x886   : > { %1909 = vadd.xlane.f32.xlu1 %v1908_v6  ;;  %v1905_v7 = vsel %vm708_vm0, %v6154_v51, 0.0  ;;  %v4469_v6 = vld [vmem:[%s6619_s11 + $0x1] ss:$0 sm:$0xff] }
 0x887   : > { %1906 = vadd.xlane.f32.xlu0 %v1905_v7 }
 0x8ff   : > { %v1904_v8 = vpop.xlane.xlu1 %1903 }
 0x900   : > { %v1912_v9 = vmul.f32 0.03125, %v1904_v8  ;;  %v1901_v10 = vpop.xlane.xlu0 %1900 }
 0x901   : > { %v1911_v11 = vmul.f32 0.03125, %v1901_v10 }
 0x902   : > { %v1916_v15 = vsub.f32 %v6142_v0, %v1912_v9 }
 0x903   : > { %v1915_v58 = vsub.f32 %v6144_v18, %v1911_v11 }
 0x904   : > { %v1920_v12 = vmul.f32 %v1916_v15, %v1916_v15 }
 0x905   : > { %v1919_v13 = vmul.f32 %v1915_v58, %v1915_v58 }
 0x906   : > { %v1926_v14 = vsel %vm708_vm0, %v1920_v12, 0.0 }
 0x907   : > { %1927 = vadd.xlane.f32.xlu1 %v1926_v14  ;;  %v1923_v19 = vsel %vm708_vm0, %v1919_v13, 0.0 }
 0x908   : > { %1924 = vadd.xlane.f32.xlu0 %v1923_v19 }
 0x913   : > { %v1910_v20 = vpop.xlane.xlu1 %1909 }
 0x914   : > { %v1914_v22 = vmul.f32 0.03125, %v1910_v20  ;;  %v1907_v23 = vpop.xlane.xlu0 %1906 }
 0x915   : > { %v1913_v25 = vmul.f32 0.03125, %v1907_v23 }
 0x916   : > { %v1918_v26 = vsub.f32 %v6152_v5, %v1914_v22 }
 0x917   : > { %v1917_v27 = vsub.f32 %v6154_v51, %v1913_v25 }
 0x918   : > { %v1922_v28 = vmul.f32 %v1918_v26, %v1918_v26 }
 0x919   : > { %v1921_v29 = vmul.f32 %v1917_v27, %v1917_v27 }
 0x91a   : > { %v1932_v30 = vsel %vm708_vm0, %v1922_v28, 0.0 }
 0x91b   : > { %1933 = vadd.xlane.f32.xlu1 %v1932_v30  ;;  %v1929_v31 = vsel %vm708_vm0, %v1921_v29, 0.0 }
 0x91c   : > { %1930 = vadd.xlane.f32.xlu0 %v1929_v31 }
 0x994   : > { %v1928_v38 = vpop.xlane.xlu1 %1927 }
 0x995   : > { %v1936_v39 = vmul.f32 0.03125, %v1928_v38  ;;  %v1925_v40 = vpop.xlane.xlu0 %1924 }
 0x996   : > { %v1935_v41 = vmul.f32 0.03125, %v1925_v40  ;;  %v4508_v40 = vld [vmem:[%s6620_s12 + $0x28] sm:$0xff] }
 0x997   : > { %v1940_v42 = vadd.f32 1e-05, %v1936_v39  ;;  %v4507_v39 = vld [vmem:[%s6620_s12 + $0x20] sm:$0xff] }
 0x998   : > { %v1939_v43 = vadd.f32 1e-05, %v1935_v41  ;;  %v5386_v41 = vpack.c.bf16 %v4508_v40, %v4507_v39 }
 0x999   : > { %5585 = vrsqrt.f32 %v1940_v42 }
 0x99a   : > { %5587 = vrsqrt.f32 %v1939_v43 }
 0x9a3   : > { %v5586_v44 = vpop.eup %5585 }
 0x9a4   : > { %v5588_v46 = vpop.eup %5587  ;;  %v1948_v47 = vmul.f32 %v5586_v44, %v1916_v15 }
 0x9a5   : > { %v1947_v48 = vmul.f32 %v5588_v46, %v1915_v58 }
 0x9a6   : > { %v1958_v52 = vmul.f32 %v4462_v45, %v1948_v47 }
 0x9a7   : > { %v1957_v53 = vmul.f32 %v4462_v45, %v1947_v48 }
 0x9a8   : > { %v1934_v55 = vpop.xlane.xlu1 %1933  ;;  %v1968_v60 = vadd.f32 %v4463_v49, %v1958_v52 }
 0x9a9   : > { %v1938_v56 = vmul.f32 0.03125, %v1934_v55  ;;  %v1931_v57 = vpop.xlane.xlu0 %1930  ;;  %v1967_v17 = vadd.f32 %v4463_v49, %v1957_v53 }
 0x9aa   : > { %v1937_v59 = vmul.f32 0.03125, %v1931_v57 }
 0x9ab   : > { %v1942_v61 = vadd.f32 1e-05, %v1938_v56  ;;  %5038 = vmatprep.mubr.msk.f32.mxu0 %vm708_vm0, %v1967_v17 }
 0x9ac   : > { %v1941_v62 = vadd.f32 1e-05, %v1937_v59  ;;  %5039 = vmatmul.mubr.msk.f32.vlgmr.msra.gmra.mrb[26].mxu0 %vm708_vm0, %v1968_v60 }
 0x9ad   : > { %5589 = vrsqrt.f32 %v1942_v61  ;;  %5381 = vmatpush3.bf16.msra.mxu0 %v5943_v21 }
 0x9ae   : > { %5591 = vrsqrt.f32 %v1941_v62  ;;  %5383 = vmatprep.subr.bf16.mxu0 %v5955_v24 }
 0x9b1   : > { %5385 = vmatpush3.bf16.msra.mxu0 %v5955_v24 }
 0x9b2   : > { %5387 = vmatprep.subr.bf16.mxu0 %v5386_v41 }
 0x9b7   : > { %v5590_v54 = vpop.eup %5589 }
 0x9b8   : > { %v5592_v63 = vpop.eup %5591  ;;  %v1950_v16 = vmul.f32 %v5590_v54, %v1918_v26 }
 0x9b9   : > { %v1949_v1 = vmul.f32 %v5592_v63, %v1917_v27 }
 0x9ba   : > { %v1960_v2 = vmul.f32 %v4462_v45, %v1950_v16 }
 0x9bb   : > { %v1959_v3 = vmul.f32 %v4462_v45, %v1949_v1 }
 0x9bc   : > { %v1970_v50 = vadd.f32 %v4463_v49, %v1960_v2 }
 0x9bd   : > { %v1969_v4 = vadd.f32 %v4463_v49, %v1959_v3 }
 0x9bf   : > { %5041 = vmatprep.mubr.msk.f32.mxu0 %vm708_vm0, %v1969_v4 }
 0x9c0   : > { %5042 = vmatmul.mubr.msk.f32.gmra.mrb[28].mxu0 %vm708_vm0, %v1970_v50 }
 0xa7f   : > { %v5040_v7 = vpop.f32.mrb[26].mxu0 }
 0xa80   : > { %v2068_v8 = vadd.f32 %v5040_v7, %v4469_v6  ;;  %v2062_v9 = vpop.f32.mrb[27].mxu0 }
 0xa81   : > { %v2063_v10 = vadd.f32 %v4469_v6, %v2062_v9 }
 0xa82   : > { %2087 = vrot.lane.b32.xlu1 %v2068_v8, %s6647_s24 }
 0xa83   : > { %2082 = vrot.lane.b32.xlu0 %v2063_v10, %s6647_s24 }
 0xa87   : > { %2591 = vrot.lane.b32.xlu0 %v2063_v10, %s6648_s25 }
 0xa93   : > { %v5043_v11 = vpop.f32.mrb[28].mxu0 }
 0xa94   : > { %v2072_v15 = vpop.f32.mrb[29].mxu0  ;;  %v2078_v12 = vadd.f32 %v5043_v11, %v4469_v6 }
 0xa95   : > { %v2073_v58 = vadd.f32 %v4469_v6, %v2072_v15 }
 0xa97   : > { %2601 = vrot.lane.b32.xlu0 %v2073_v58, %s6648_s25  ;;  %2092 = vrot.lane.b32.xlu1 %v2073_v58, %s6647_s24 }
 0xa9b   : > { %2097 = vrot.lane.b32.xlu1 %v2078_v12, %s6647_s24 }
 0xa9f   : > { %2596 = vrot.lane.b32.xlu1 %v2068_v8, %s6648_s25 }
 0xaa3   : > { %2606 = vrot.lane.b32.xlu1 %v2078_v12, %s6648_s25 }
 0xaf4   : > { %v2088_v13 = vpop.permute.xlu1 %2087 }
 0xaf5   : > { %v2083_v14 = vpop.permute.xlu0 %2082  ;;  %v2090_v20 = vmul.f32 %v2088_v13, %v2063_v10  ;;  %v2102_v28 = vmul.f32 %v2088_v13, %v2068_v8  ;;  %v2106_v32 = vmul.f32 %v2088_v13, %v2073_v58  ;;  %v2110_v36 = vmul.f32 %v2088_v13, %v2078_v12 }
 0xaf6   : > { %v2085_v19 = vmul.f32 %v2083_v14, %v2063_v10  ;;  %v2101_v27 = vmul.f32 %v2083_v14, %v2068_v8  ;;  %v2105_v31 = vmul.f32 %v2083_v14, %v2073_v58  ;;  %v2109_v35 = vmul.f32 %v2083_v14, %v2078_v12 }
 0xaf8   : > { %5052 = vmatprep.mubr.msk.f32.mxu0 %vm708_vm0, %v2085_v19 }
 0xaf9   : > { %5053 = vmatmul.mubr.msk.f32.vlgmr.msra.gmra.mrb[30].mxu0 %vm708_vm0, %v2090_v20 }
 0xafa   : > { %5389 = vmatpush3.bf16.msra.mxu0 %v5386_v41 }
 0xb09   : > { %v2093_v22 = vpop.permute.xlu1 %2092 }
 0xb0a   : > { %v2095_v23 = vmul.f32 %v2093_v22, %v2063_v10  ;;  %v2103_v29 = vmul.f32 %v2093_v22, %v2068_v8  ;;  %v2107_v33 = vmul.f32 %v2093_v22, %v2073_v58  ;;  %v2111_v37 = vmul.f32 %v2093_v22, %v2078_v12 }
 0xb0c   : > { %5055 = vmatprep.mubr.msk.f32.mxu0 %vm708_vm0, %v2095_v23 }
 0xb0d   : > { %v2098_v25 = vpop.permute.xlu1 %2097 }
 0xb0e   : > { %v2100_v26 = vmul.f32 %v2098_v25, %v2063_v10  ;;  %v2104_v30 = vmul.f32 %v2098_v25, %v2068_v8  ;;  %v2108_v34 = vmul.f32 %v2098_v25, %v2073_v58  ;;  %v2112_v38 = vmul.f32 %v2098_v25, %v2078_v12 }
 0xb10   : > { %5056 = vmatmul.mubr.msk.f32.gmra.mrb[32].mxu0 %vm708_vm0, %v2100_v26 }
 0xb11   : > { %5058 = vmatprep.mubr.msk.f32.mxu0 %vm708_vm0, %v2101_v27 }
 0xb14   : > { %5059 = vmatmul.mubr.msk.f32.gmra.mrb[34].mxu0 %vm708_vm0, %v2102_v28 }
 0xb15   : > { %5061 = vmatprep.mubr.msk.f32.mxu0 %vm708_vm0, %v2103_v29 }
 0xb18   : > { %5062 = vmatmul.mubr.msk.f32.gmra.mrb[36].mxu0 %vm708_vm0, %v2104_v30 }
 0xb19   : > { %5064 = vmatprep.mubr.msk.f32.mxu0 %vm708_vm0, %v2105_v31 }
 0xb1c   : > { %5065 = vmatmul.mubr.msk.f32.gmra.mrb[38].mxu0 %vm708_vm0, %v2106_v32 }
 0xb1d   : > { %5067 = vmatprep.mubr.msk.f32.mxu0 %vm708_vm0, %v2107_v33 }
 0xb20   : > { %5068 = vmatmul.mubr.msk.f32.gmra.mrb[40].mxu0 %vm708_vm0, %v2108_v34 }
 0xb21   : > { %5070 = vmatprep.mubr.msk.f32.mxu0 %vm708_vm0, %v2109_v35 }
 0xb24   : > { %5071 = vmatmul.mubr.msk.f32.gmra.mrb[42].mxu0 %vm708_vm0, %v2110_v36 }
 0xb25   : > { %5073 = vmatprep.mubr.msk.f32.mxu0 %vm708_vm0, %v2111_v37 }
 0xb28   : > { %5074 = vmatmul.mubr.msk.f32.gmra.mrb[44].mxu0 %vm708_vm0, %v2112_v38 }
 0xbcc   : > { %v5054_v42 = vpop.f32.mrb[30].mxu0 }
 0xbcd   : > { %v2227_v43 = vpop.f32.mrb[31].mxu0 }
 0xbce   : > { %v2306_v44 = vmax.f32 %v2227_v43, %v5054_v42 }
 0xbe3   : > { %v5057_v45 = vpop.f32.mrb[32].mxu0 }
 0xbe4   : > { %v2237_v46 = vpop.f32.mrb[33].mxu0 }
 0xbe5   : > { %v2307_v47 = vmax.f32 %v2237_v46, %v5057_v45 }
 0xbe7   : > { %v2308_v48 = vmax.f32 %v2306_v44, %v2307_v47  ;;  %v5060_v49 = vpop.f32.mrb[34].mxu0 }
 0xbe8   : > { %v2247_v52 = vpop.f32.mrb[35].mxu0 }
 0xbe9   : > { %v2309_v53 = vsub.f32 %v2227_v43, %v2308_v48  ;;  %v2312_v55 = vsub.f32 %v5054_v42, %v2308_v48  ;;  %v2315_v56 = vsub.f32 %v2237_v46, %v2308_v48  ;;  %v2318_v57 = vsub.f32 %v5057_v45, %v2308_v48 }
 0xbea   : > { %v2329_v17 = vmax.f32 %v2247_v52, %v5060_v49 }
 0xbeb   : > { %v2310_v59 = vmul.f32 1.442695, %v2309_v53  ;;  %v2313_v60 = vmul.f32 1.442695, %v2312_v55  ;;  %v2316_v61 = vmul.f32 1.442695, %v2315_v56 }
 0xbec   : > { %v5063_v62 = vpop.f32.mrb[36].mxu0  ;;  %v2319_v54 = vmul.f32 1.442695, %v2318_v57 }
 0xbed   : > { %5593 = vpow2.f32 %v2310_v59  ;;  %v2257_v63 = vpop.f32.mrb[37].mxu0 }
 0xbee   : > { %5595 = vpow2.f32 %v2313_v60  ;;  %v2330_v16 = vmax.f32 %v2257_v63, %v5063_v62 }
 0xbef   : > { %v5066_v1 = vpop.f32.mrb[38].mxu0  ;;  %5597 = vpow2.f32 %v2316_v61 }
 0xbf0   : > { %v2331_v2 = vmax.f32 %v2329_v17, %v2330_v16  ;;  %v2267_v3 = vpop.f32.mrb[39].mxu0  ;;  %5599 = vpow2.f32 %v2319_v54 }
 0xbf1   : > { %v2352_v4 = vmax.f32 %v2267_v3, %v5066_v1 }
 0xbf2   : > { %v2332_v50 = vsub.f32 %v2247_v52, %v2331_v2  ;;  %v2335_v6 = vsub.f32 %v5060_v49, %v2331_v2  ;;  %v2338_v7 = vsub.f32 %v2257_v63, %v2331_v2  ;;  %v2341_v8 = vsub.f32 %v5063_v62, %v2331_v2 }
 0xbf3   : > { %v5069_v9 = vpop.f32.mrb[40].mxu0 }
 0xbf4   : > { %v2333_v10 = vmul.f32 1.442695, %v2332_v50  ;;  %v2336_v11 = vmul.f32 1.442695, %v2335_v6  ;;  %v2339_v15 = vmul.f32 1.442695, %v2338_v7 }
 0xbf5   : > { %v2277_v58 = vpop.f32.mrb[41].mxu0  ;;  %v2342_v14 = vmul.f32 1.442695, %v2341_v8 }
 0xbf6   : > { %5601 = vpow2.f32 %v2333_v10  ;;  %v2353_v12 = vmax.f32 %v2277_v58, %v5069_v9 }
 0xbf7   : > { %v5594_v13 = vpop.eup %5593  ;;  %5603 = vpow2.f32 %v2336_v11  ;;  %v5072_v19 = vpop.f32.mrb[42].mxu0 }
 0xbf8   : > { %v5596_v20 = vpop.eup %5595  ;;  %v2354_v22 = vmax.f32 %v2352_v4, %v2353_v12  ;;  %v2287_v23 = vpop.f32.mrb[43].mxu0  ;;  %5605 = vpow2.f32 %v2339_v15 }
 0xbf9   : > { %v2321_v25 = vadd.f32 %v5596_v20, %v5594_v13  ;;  %v2375_v26 = vmax.f32 %v2287_v23, %v5072_v19  ;;  %v5598_v27 = vpop.eup %5597  ;;  %5607 = vpow2.f32 %v2342_v14 }
 0xbfa   : > { %v2355_v28 = vsub.f32 %v2267_v3, %v2354_v22  ;;  %v2358_v29 = vsub.f32 %v5066_v1, %v2354_v22  ;;  %v2361_v30 = vsub.f32 %v2277_v58, %v2354_v22  ;;  %v2364_v31 = vsub.f32 %v5069_v9, %v2354_v22  ;;  %v5600_v32 = vpop.eup %5599 }
 0xbfb   : > { %v2322_v33 = vadd.f32 %v5598_v27, %v2321_v25  ;;  %v5075_v34 = vpop.f32.mrb[44].mxu0 }
 0xbfc   : > { %v2356_v35 = vmul.f32 1.442695, %v2355_v28  ;;  %v2359_v36 = vmul.f32 1.442695, %v2358_v29  ;;  %v2297_v38 = vpop.f32.mrb[45].mxu0 }
 0xbfd   : > { %v2323_v37 = vadd.f32 %v5600_v32, %v2322_v33  ;;  %v2362_v39 = vmul.f32 1.442695, %v2361_v30  ;;  %v2376_v40 = vmax.f32 %v2297_v38, %v5075_v34  ;;  %v2365_v42 = vmul.f32 1.442695, %v2364_v31 }
 0xbfe   : > { %5609 = vpow2.f32 %v2356_v35  ;;  %v4510_v35 = vld [vmem:[%s6620_s12 + $0x38] sm:$0xff] }
 0xbff   : > { %5611 = vrcp.f32 %v2323_v37  ;;  %v2377_v43 = vmax.f32 %v2375_v26, %v2376_v40  ;;  %v2597_v37 = vpop.permute.xlu1 %2596 }
 0xc00   : > { %v5602_v41 = vpop.eup %5601  ;;  %5613 = vpow2.f32 %v2359_v36 }
 0xc01   : > { %v5604_v44 = vpop.eup %5603  ;;  %5615 = vpow2.f32 %v2362_v39  ;;  %v2378_v46 = vsub.f32 %v2287_v23, %v2377_v43  ;;  %v2381_v47 = vsub.f32 %v5072_v19, %v2377_v43  ;;  %v2384_v49 = vsub.f32 %v2297_v38, %v2377_v43  ;;  %v2592_v39 = vpop.permute.xlu0 %2591 }
 0xc02   : > { %v2344_v45 = vadd.f32 %v5604_v44, %v5602_v41  ;;  %v5606_v48 = vpop.eup %5605  ;;  %v2387_v52 = vsub.f32 %v5075_v34, %v2377_v43  ;;  %5617 = vpow2.f32 %v2365_v42  ;;  %v4509_v34 = vld [vmem:[%s6620_s12 + $0x30] sm:$0xff] }
 0xc03   : > { %v2379_v55 = vmul.f32 1.442695, %v2378_v46  ;;  %v2382_v56 = vmul.f32 1.442695, %v2381_v47  ;;  %v5608_v57 = vpop.eup %5607  ;;  %v2385_v17 = vmul.f32 1.442695, %v2384_v49  ;;  %v5390_v36 = vpack.c.bf16 %v4510_v35, %v4509_v34 }
 0xc04   : > { %v2345_v53 = vadd.f32 %v5606_v48, %v2344_v45  ;;  %v2388_v60 = vmul.f32 1.442695, %v2387_v52 }
 0xc05   : > { %5619 = vpow2.f32 %v2379_v55  ;;  %5391 = vmatprep.subr.bf16.mxu0 %v5390_v36  ;;  %v2602_v45 = vpop.permute.xlu0 %2601 }
 0xc06   : > { %v2346_v59 = vadd.f32 %v5608_v57, %v2345_v53  ;;  %5621 = vpow2.f32 %v2382_v56  ;;  %5393 = vmatpush3.bf16.msra.mxu0 %v5390_v36 }
 0xc08   : > { %v5610_v61 = vpop.eup %5609  ;;  %5623 = vrcp.f32 %v2346_v59 }
 0xc09   : > { %v5612_v62 = vpop.eup %5611  ;;  %5625 = vpow2.f32 %v2385_v17 }
 0xc0a   : > { %v5614_v54 = vpop.eup %5613  ;;  %v2325_v63 = vmul.f32 %v5612_v62, %v5594_v13  ;;  %v2326_v16 = vmul.f32 %v5612_v62, %v5596_v20  ;;  %v2327_v1 = vmul.f32 %v5612_v62, %v5598_v27  ;;  %5627 = vpow2.f32 %v2388_v60 }
 0xc0b   : > { %v2367_v2 = vadd.f32 %v5614_v54, %v5610_v61  ;;  %v2328_v3 = vmul.f32 %v5612_v62, %v5600_v32  ;;  %v5616_v4 = vpop.eup %5615 }
 0xc0c   : > { %5078 = vmatprep.mubr.msk.f32.mxu1 %vm1207_vm2, %v2325_v63  ;;  %v5618_v6 = vpop.eup %5617 }
 0xc0d   : > { %v2368_v50 = vadd.f32 %v5616_v4, %v2367_v2  ;;  %5079 = vmatmul.mubr.msk.f32.vlgmr.msra.gmra.mrb[22].mxu1 %vm1207_vm2, %v2326_v16 }
 0xc0e   : > { %5081 = vmatprep.mubr.msk.f32.mxu1 %vm1207_vm2, %v2327_v1 }
 0xc0f   : > { %v2369_v7 = vadd.f32 %v5618_v6, %v2368_v50  ;;  %v5620_v8 = vpop.eup %5619 }
 0xc10   : > { %v5622_v9 = vpop.eup %5621 }
 0xc11   : > { %5629 = vrcp.f32 %v2369_v7  ;;  %5082 = vmatmul.mubr.msk.f32.gmra.mrb[24].mxu1 %vm1207_vm2, %v2328_v3  ;;  %v2390_v11 = vadd.f32 %v5622_v9, %v5620_v8 }
 0xc12   : > { %v5624_v10 = vpop.eup %5623 }
 0xc13   : > { %v5626_v15 = vpop.eup %5625  ;;  %v2348_v58 = vmul.f32 %v5624_v10, %v5602_v41  ;;  %v2349_v12 = vmul.f32 %v5624_v10, %v5604_v44  ;;  %v2350_v13 = vmul.f32 %v5624_v10, %v5606_v48  ;;  %v2351_v14 = vmul.f32 %v5624_v10, %v5608_v57  ;;  %v2607_v48 = vpop.permute.xlu1 %2606 }
 0xc14   : > { %v2391_v19 = vadd.f32 %v5626_v15, %v2390_v11  ;;  %v5628_v20 = vpop.eup %5627 }
 0xc15   : > { %5084 = vmatprep.mubr.msk.f32.mxu1 %vm1207_vm2, %v2348_v58 }
 0xc16   : > { %v2392_v22 = vadd.f32 %v5628_v20, %v2391_v19  ;;  %5085 = vmatmul.mubr.msk.f32.gmra.mrb[26].mxu1 %vm1207_vm2, %v2349_v12 }
 0xc17   : > { %5087 = vmatprep.mubr.msk.f32.mxu1 %vm1207_vm2, %v2350_v13 }
 0xc18   : > { %5631 = vrcp.f32 %v2392_v22 }
 0xc1a   : > { %5088 = vmatmul.mubr.msk.f32.gmra.mrb[28].mxu1 %vm1207_vm2, %v2351_v14 }
 0xc1b   : > { %v5630_v23 = vpop.eup %5629 }
 0xc1c   : > { %v2371_v25 = vmul.f32 %v5630_v23, %v5610_v61  ;;  %v2372_v26 = vmul.f32 %v5630_v23, %v5614_v54  ;;  %v2373_v27 = vmul.f32 %v5630_v23, %v5616_v4  ;;  %v2374_v28 = vmul.f32 %v5630_v23, %v5618_v6 }
 0xc1e   : > { %5090 = vmatprep.mubr.msk.f32.mxu1 %vm1207_vm2, %v2371_v25 }
 0xc1f   : > { %5091 = vmatmul.mubr.msk.f32.gmra.mrb[30].mxu1 %vm1207_vm2, %v2372_v26 }
 0xc20   : > { %5093 = vmatprep.mubr.msk.f32.mxu1 %vm1207_vm2, %v2373_v27 }
 0xc22   : > { %v5632_v29 = vpop.eup %5631 }
 0xc23   : > { %5094 = vmatmul.mubr.msk.f32.gmra.mrb[32].mxu1 %vm1207_vm2, %v2374_v28  ;;  %v2394_v30 = vmul.f32 %v5632_v29, %v5620_v8  ;;  %v2395_v31 = vmul.f32 %v5632_v29, %v5622_v9  ;;  %v2396_v32 = vmul.f32 %v5632_v29, %v5626_v15  ;;  %v2397_v33 = vmul.f32 %v5632_v29, %v5628_v20  ;;  %v4516_v28 = vld [vmem:[%s6621_s13 + $0x1] ss:$0 sm:$0xff] }
 0xc25   : > { %5096 = vmatprep.mubr.msk.f32.mxu1 %vm1207_vm2, %v2394_v30 }
 0xc27   : > { %5097 = vmatmul.mubr.msk.f32.gmra.mrb[34].mxu1 %vm1207_vm2, %v2395_v31 }
 0xc28   : > { %5099 = vmatprep.mubr.msk.f32.mxu1 %vm1207_vm2, %v2396_v32 }
 0xc2b   : > { %5100 = vmatmul.mubr.msk.f32.gmra.mrb[36].mxu1 %vm1207_vm2, %v2397_v33 }
 0xce0   : > { %v5080_v38 = vpop.f32.mrb[22].mxu1 }
 0xce1   : > { %v2599_v40 = vmul.f32 %v5080_v38, %v2597_v37  ;;  %v2512_v41 = vpop.f32.mrb[23].mxu1 }
 0xce2   : > { %v2594_v42 = vmul.f32 %v2592_v39, %v2512_v41 }
 0xce4   : > { %v2600_v43 = vadd.f32 %v2599_v40, %v2594_v42  ;;  %v5083_v44 = vpop.f32.mrb[24].mxu1 }
 0xce5   : > { %v2522_v46 = vpop.f32.mrb[25].mxu1  ;;  %v2609_v49 = vmul.f32 %v5083_v44, %v2607_v48 }
 0xce6   : > { %v2604_v47 = vmul.f32 %v2602_v45, %v2522_v46 }
 0xce8   : > { %v2605_v52 = vadd.f32 %v2604_v47, %v2600_v43 }
 0xce9   : > { %v5086_v53 = vpop.f32.mrb[26].mxu1 }
 0xcea   : > { %v2610_v55 = vadd.f32 %v2609_v49, %v2605_v52  ;;  %v2613_v56 = vmul.f32 %v5086_v53, %v2597_v37  ;;  %v2532_v57 = vpop.f32.mrb[27].mxu1 }
 0xceb   : > { %v2611_v17 = vmul.f32 %v2592_v39, %v2532_v57 }
 0xcec   : > { %5110 = vmatprep.mubr.msk.f32.mxu0 %vm708_vm0, %v2610_v55 }
 0xced   : > { %v2614_v59 = vadd.f32 %v2613_v56, %v2611_v17  ;;  %v5089_v60 = vpop.f32.mrb[28].mxu1 }
 0xcee   : > { %v2542_v61 = vpop.f32.mrb[29].mxu1  ;;  %v2617_v54 = vmul.f32 %v5089_v60, %v2607_v48 }
 0xcef   : > { %v2615_v62 = vmul.f32 %v2602_v45, %v2542_v61 }
 0xcf1   : > { %v2616_v63 = vadd.f32 %v2615_v62, %v2614_v59 }
 0xcf2   : > { %v5092_v16 = vpop.f32.mrb[30].mxu1 }
 0xcf3   : > { %v2618_v1 = vadd.f32 %v2617_v54, %v2616_v63  ;;  %v2621_v2 = vmul.f32 %v5092_v16, %v2597_v37  ;;  %v2552_v3 = vpop.f32.mrb[31].mxu1  ;;  %v4521_v54 = vld [vmem:[%s6624_s16 + $0x20] sm:$0xff]  ;;  %v4522_v63 = vld [vmem:[%s6624_s16 + $0x28] sm:$0xff] }
 0xcf4   : > { %v2619_v4 = vmul.f32 %v2592_v39, %v2552_v3  ;;  %v5394_v16 = vpack.c.bf16 %v4522_v63, %v4521_v54  ;;  %v4550_v54 = vld [vmem:[%s6626_s18 + $0xf8] sm:$0xff] }
 0xcf5   : > { %5111 = vmatmul.mubr.msk.f32.vlgmr.msra.gmra.mrb[46].mxu0 %vm708_vm0, %v2618_v1  ;;  %v4523_v1 = vld [vmem:[%s6624_s16 + $0x30] sm:$0xff] }
 0xcf6   : > { %v2622_v50 = vadd.f32 %v2621_v2, %v2619_v4  ;;  %v5095_v6 = vpop.f32.mrb[32].mxu1  ;;  %5395 = vmatprep.subr.bf16.mxu0 %v5394_v16  ;;  %v4524_v2 = vld [vmem:[%s6624_s16 + $0x38] sm:$0xff] }
 0xcf7   : > { %v2562_v7 = vpop.f32.mrb[33].mxu1  ;;  %v2625_v9 = vmul.f32 %v5095_v6, %v2607_v48  ;;  %5397 = vmatpush3.bf16.msra.mxu0 %v5394_v16  ;;  %v5398_v3 = vpack.c.bf16 %v4524_v2, %v4523_v1  ;;  %v5729_v16 = vld [vmem:[%s6613_s5] sm:$0xf] }
 0xcf8   : > { %v2623_v8 = vmul.f32 %v2602_v45, %v2562_v7  ;;  %v4526_v1 = vld [vmem:[%s6625_s17 + $0x1] ss:$0 sm:$0xff] }
 0xcf9   : > { %5399 = vmatprep.subr.bf16.mxu0 %v5398_v3 }
 0xcfa   : > { %v2624_v10 = vadd.f32 %v2623_v8, %v2622_v50  ;;  %v5098_v11 = vpop.f32.mrb[34].mxu1 }
 0xcfb   : > { %v2629_v15 = vmul.f32 %v5098_v11, %v2597_v37  ;;  %v2572_v58 = vpop.f32.mrb[35].mxu1  ;;  %5401 = vmatpush3.bf16.msra.mxu0 %v5398_v3  ;;  %v4519_v11 = vld [vmem:[%s6622_s14 + $0x1] ss:$0 sm:$0xff] }
 0xcfc   : > { %v2626_v12 = vadd.f32 %v2625_v9, %v2624_v10  ;;  %v2627_v13 = vmul.f32 %v2592_v39, %v2572_v58 }
 0xcfe   : > { %v2630_v14 = vadd.f32 %v2629_v15, %v2627_v13  ;;  %v5101_v19 = vpop.f32.mrb[36].mxu1  ;;  %5113 = vmatprep.mubr.msk.f32.mxu0 %vm708_vm0, %v2626_v12 }
 0xcff   : > { %v2582_v20 = vpop.f32.mrb[37].mxu1  ;;  %v2633_v23 = vmul.f32 %v5101_v19, %v2607_v48 }
 0xd00   : > { %v2631_v22 = vmul.f32 %v2602_v45, %v2582_v20 }
 0xd02   : > { %v2632_v25 = vadd.f32 %v2631_v22, %v2630_v14  ;;  %v4520_v14 = vld [vmem:[%s6623_s15 + $0x1] ss:$0 sm:$0xff] }
 0xd04   : > { %v2634_v26 = vadd.f32 %v2633_v23, %v2632_v25 }
 0xd06   : > { %5114 = vmatmul.mubr.msk.f32.gmra.mrb[48].mxu0 %vm708_vm0, %v2634_v26 }
 0xdc8   : > { %v5112_v27 = vpop.f32.mrb[46].mxu0 }
 0xdc9   : > { %v2738_v29 = vadd.f32 %v5112_v27, %v6142_v0  ;;  %v2718_v30 = vpop.f32.mrb[47].mxu0 }
 0xdca   : > { %v2737_v31 = vadd.f32 %v2718_v30, %v6144_v18 }
 0xdcb   : > { %v6258_v32 = vadd.f32 %v4516_v28, %v2738_v29 }
 0xdcc   : > { %v6260_v33 = vadd.f32 %v4516_v28, %v2737_v31 }
 0xdcd   : > { %v2760_v34 = vsel %vm708_vm0, %v6258_v32, 0.0 }
 0xdce   : > { %2761 = vadd.xlane.f32.xlu1 %v2760_v34  ;;  %v2757_v35 = vsel %vm708_vm0, %v6260_v33, 0.0 }
 0xdcf   : > { %2758 = vadd.xlane.f32.xlu0 %v2757_v35 }
 0xdd9   : > { %v5115_v36 = vpop.f32.mrb[48].mxu0 }
 0xdda   : > { %v2728_v37 = vpop.f32.mrb[49].mxu0  ;;  %v2740_v38 = vadd.f32 %v5115_v36, %v6152_v5 }
 0xddb   : > { %v2739_v0 = vadd.f32 %v2728_v37, %v6154_v51 }
 0xddc   : > { %v6270_v18 = vadd.f32 %v4516_v28, %v2740_v38 }
 0xddd   : > { %v6268_v39 = vadd.f32 %v4516_v28, %v2739_v0 }
 0xdde   : > { %v2766_v41 = vsel %vm708_vm0, %v6270_v18, 0.0 }
 0xddf   : > { %v2763_v40 = vsel %vm708_vm0, %v6268_v39, 0.0 }
 0xde0   : > { %2764 = vadd.xlane.f32.xlu0 %v2763_v40  ;;  %v4535_v40 = vld [vmem:[%s6626_s18 + $0x80] sm:$0xff] }
 0xde4   : > { %2767 = vadd.xlane.f32.xlu0 %v2766_v41  ;;  %v4536_v41 = vld [vmem:[%s6626_s18 + $0x88] sm:$0xff] }
 0xe5b   : > { %v2762_v42 = vpop.xlane.xlu1 %2761 }
 0xe5c   : > { %v2770_v43 = vmul.f32 0.03125, %v2762_v42  ;;  %v2759_v44 = vpop.xlane.xlu0 %2758  ;;  %v5402_v42 = vpack.c.bf16 %v4536_v41, %v4535_v40  ;;  %v4552_v41 = vld [vmem:[%s6627_s19 + $0x1] ss:$0 sm:$0xff] }
 0xe5d   : > { %v2769_v45 = vmul.f32 0.03125, %v2759_v44  ;;  %v4538_v44 = vld [vmem:[%s6626_s18 + $0x98] sm:$0xff] }
 0xe5e   : > { %v2774_v5 = vsub.f32 %v6258_v32, %v2770_v43  ;;  %5403 = vmatprep.subr.bf16.mxu1 %v5402_v42  ;;  %v4537_v43 = vld [vmem:[%s6626_s18 + $0x90] sm:$0xff] }
 0xe5f   : > { %v2773_v51 = vsub.f32 %v6260_v33, %v2769_v45  ;;  %5405 = vmatpush3.bf16.msra.mxu1 %v5402_v42  ;;  %v5406_v45 = vpack.c.bf16 %v4538_v44, %v4537_v43 }
 0xe60   : > { %v2778_v46 = vmul.f32 %v2774_v5, %v2774_v5 }
 0xe61   : > { %v2777_v47 = vmul.f32 %v2773_v51, %v2773_v51  ;;  %5407 = vmatprep.subr.bf16.mxu1 %v5406_v45 }
 0xe62   : > { %v2784_v48 = vsel %vm708_vm0, %v2778_v46, 0.0 }
 0xe63   : > { %2785 = vadd.xlane.f32.xlu1 %v2784_v48  ;;  %v2781_v49 = vsel %vm708_vm0, %v2777_v47, 0.0  ;;  %5409 = vmatpush3.bf16.msra.mxu1 %v5406_v45  ;;  %v4541_v47 = vld [vmem:[%s6626_s18 + $0xb0] sm:$0xff]  ;;  %v4542_v48 = vld [vmem:[%s6626_s18 + $0xb8] sm:$0xff] }
 0xe64   : > { %2782 = vadd.xlane.f32.xlu0 %v2781_v49  ;;  %v5414_v49 = vpack.c.bf16 %v4542_v48, %v4541_v47 }
 0xe6d   : > { %v2765_v52 = vpop.xlane.xlu0 %2764 }
 0xe6e   : > { %v2771_v53 = vmul.f32 0.03125, %v2765_v52  ;;  %v4543_v52 = vld [vmem:[%s6626_s18 + $0xc0] sm:$0xff] }
 0xe70   : > { %v2775_v55 = vsub.f32 %v6268_v39, %v2771_v53  ;;  %v4544_v53 = vld [vmem:[%s6626_s18 + $0xc8] sm:$0xff] }
 0xe71   : > { %v2768_v56 = vpop.xlane.xlu0 %2767 }
 0xe72   : > { %v2772_v57 = vmul.f32 0.03125, %v2768_v56  ;;  %v2779_v17 = vmul.f32 %v2775_v55, %v2775_v55  ;;  %v4545_v56 = vld [vmem:[%s6626_s18 + $0xd0] sm:$0xff] }
 0xe74   : > { %v2776_v59 = vsub.f32 %v6270_v18, %v2772_v57  ;;  %v2787_v60 = vsel %vm708_vm0, %v2779_v17, 0.0  ;;  %v4546_v57 = vld [vmem:[%s6626_s18 + $0xd8] sm:$0xff] }
 0xe75   : > { %2788 = vadd.xlane.f32.xlu0 %v2787_v60  ;;  %v5422_v17 = vpack.c.bf16 %v4546_v57, %v4545_v56  ;;  %v4548_v60 = vld [vmem:[%s6626_s18 + $0xe8] sm:$0xff] }
 0xe76   : > { %v2780_v61 = vmul.f32 %v2776_v59, %v2776_v59 }
 0xe78   : > { %v2790_v62 = vsel %vm708_vm0, %v2780_v61, 0.0 }
 0xe79   : > { %2791 = vadd.xlane.f32.xlu1 %v2790_v62  ;;  %v4549_v62 = vld [vmem:[%s6626_s18 + $0xf0] sm:$0xff] }
 0xe7a   : > { %v5430_v63 = vpack.c.bf16 %v4550_v54, %v4549_v62 }
 0xef0   : > { %v2786_v4 = vpop.xlane.xlu1 %2785 }
 0xef1   : > { %v2794_v50 = vmul.f32 0.03125, %v2786_v4  ;;  %v2783_v6 = vpop.xlane.xlu0 %2782 }
 0xef2   : > { %v2793_v7 = vmul.f32 0.03125, %v2783_v6 }
 0xef3   : > { %v2798_v8 = vadd.f32 1e-05, %v2794_v50 }
 0xef4   : > { %v2797_v9 = vadd.f32 1e-05, %v2793_v7 }
 0xef5   : > { %5633 = vrsqrt.f32 %v2798_v8 }
 0xef6   : > { %5635 = vrsqrt.f32 %v2797_v9 }
 0xeff   : > { %v5634_v10 = vpop.eup %5633 }
 0xf00   : > { %v5636_v15 = vpop.eup %5635  ;;  %v2806_v58 = vmul.f32 %v5634_v10, %v2774_v5  ;;  %v4539_v5 = vld [vmem:[%s6626_s18 + $0xa0] sm:$0xff] }
 0xf01   : > { %v2805_v12 = vmul.f32 %v5636_v15, %v2773_v51  ;;  %v4540_v51 = vld [vmem:[%s6626_s18 + $0xa8] sm:$0xff] }
 0xf02   : > { %v2789_v13 = vpop.xlane.xlu0 %2788  ;;  %v2816_v19 = vmul.f32 %v4519_v11, %v2806_v58  ;;  %v5410_v46 = vpack.c.bf16 %v4540_v51, %v4539_v5 }
 0xf03   : > { %v2795_v20 = vmul.f32 0.03125, %v2789_v13  ;;  %v2815_v22 = vmul.f32 %v4519_v11, %v2805_v12 }
 0xf04   : > { %v2826_v27 = vadd.f32 %v4520_v14, %v2816_v19  ;;  %5411 = vmatprep.subr.bf16.mxu1 %v5410_v46 }
 0xf05   : > { %v2799_v23 = vadd.f32 1e-05, %v2795_v20  ;;  %v2825_v25 = vadd.f32 %v4520_v14, %v2815_v22  ;;  %5413 = vmatpush3.bf16.msra.mxu1 %v5410_v46 }
 0xf06   : > { %v2792_v26 = vpop.xlane.xlu1 %2791  ;;  %5415 = vmatprep.subr.bf16.mxu1 %v5414_v49 }
 0xf07   : > { %5637 = vrsqrt.f32 %v2799_v23  ;;  %v2796_v28 = vmul.f32 0.03125, %v2792_v26  ;;  %5124 = vmatprep.mubr.msk.f32.mxu0 %vm708_vm0, %v2825_v25 }
 0xf08   : > { %5125 = vmatmul.mubr.msk.f32.vlgmr.msra.gmra.mrb[50].mxu0 %vm708_vm0, %v2826_v27 }
 0xf09   : > { %v2800_v29 = vadd.f32 1e-05, %v2796_v28  ;;  %5417 = vmatpush3.bf16.msra.mxu1 %v5414_v49 }
 0xf0b   : > { %5639 = vrsqrt.f32 %v2800_v29 }
 0xf11   : > { %v5638_v30 = vpop.eup %5637 }
 0xf12   : > { %v2807_v31 = vmul.f32 %v5638_v30, %v2775_v55  ;;  %v5418_v55 = vpack.c.bf16 %v4544_v53, %v4543_v52 }
 0xf14   : > { %v2817_v34 = vmul.f32 %v4519_v11, %v2807_v31  ;;  %5419 = vmatprep.subr.bf16.mxu1 %v5418_v55 }
 0xf15   : > { %v5640_v35 = vpop.eup %5639  ;;  %5421 = vmatpush3.bf16.msra.mxu1 %v5418_v55 }
 0xf16   : > { %v2827_v36 = vadd.f32 %v4520_v14, %v2817_v34  ;;  %v2808_v37 = vmul.f32 %v5640_v35, %v2776_v59  ;;  %5423 = vmatprep.subr.bf16.mxu1 %v5422_v17  ;;  %v4547_v59 = vld [vmem:[%s6626_s18 + $0xe0] sm:$0xff] }
 0xf17   : > { %v5426_v61 = vpack.c.bf16 %v4548_v60, %v4547_v59 }
 0xf18   : > { %5127 = vmatprep.mubr.msk.f32.mxu0 %vm708_vm0, %v2827_v36  ;;  %v2818_v38 = vmul.f32 %v4519_v11, %v2808_v37 }
 0xf19   : > { %5425 = vmatpush3.bf16.msra.mxu1 %v5422_v17 }
 0xf1a   : > { %v2828_v0 = vadd.f32 %v4520_v14, %v2818_v38  ;;  %5427 = vmatprep.subr.bf16.mxu1 %v5426_v61 }
 0xf1c   : > { %5128 = vmatmul.mubr.msk.f32.gmra.mrb[52].mxu0 %vm708_vm0, %v2828_v0 }
 0xf1d   : > { %5429 = vmatpush3.bf16.msra.mxu1 %v5426_v61 }
 0xf1e   : > { %5431 = vmatprep.subr.bf16.mxu1 %v5430_v63 }
 0xf21   : > { %5433 = vmatpush3.bf16.msra.mxu1 %v5430_v63 }
 0xf22   : > { %5214 = vmatprep.subr.msk.mxu1 %vm1256_vm1, %v5729_v16 }
 0xfdb   : > { %v5126_v2 = vpop.f32.mrb[50].mxu0 }
 0xfdc   : > { %v2926_v3 = vadd.f32 %v5126_v2, %v4526_v1  ;;  %v2920_v4 = vpop.f32.mrb[51].mxu0 }
 0xfdd   : > { %v2921_v50 = vadd.f32 %v4526_v1, %v2920_v4 }
 0xfde   : > { %v4532_v6 = vmul.f32 -1.702, %v2926_v3 }
 0xfdf   : > { %v4531_v7 = vmul.f32 -1.702, %v2921_v50 }
 0xfe0   : > { %v2949_v8 = vmul.f32 1.442695, %v4532_v6 }
 0xfe1   : > { %v2947_v9 = vmul.f32 1.442695, %v4531_v7 }
 0xfe2   : > { %5641 = vpow2.f32 %v2949_v8 }
 0xfe3   : > { %5643 = vpow2.f32 %v2947_v9  ;;  %v4557_v9 = vld [vmem:[%s6618_s10 + $0x40] sm:$0xff] }
 0xfec   : > { %v5642_v10 = vpop.eup %5641 }
 0xfed   : > { %v5644_v11 = vpop.eup %5643  ;;  %v2956_v15 = vadd.f32 1.0, %v5642_v10  ;;  %v4558_v10 = vld [vmem:[%s6618_s10 + $0x48] sm:$0xff] }
 0xfee   : > { %v2955_v58 = vadd.f32 1.0, %v5644_v11  ;;  %v5434_v11 = vpack.c.bf16 %v4558_v10, %v4557_v9 }
 0xfef   : > { %5645 = vrcp.f32 %v2956_v15  ;;  %v5129_v12 = vpop.f32.mrb[52].mxu0  ;;  %v4559_v15 = vld [vmem:[%s6618_s10 + $0x50] sm:$0xff] }
 0xff0   : > { %5647 = vrcp.f32 %v2955_v58  ;;  %v2936_v13 = vadd.f32 %v5129_v12, %v4526_v1  ;;  %v2930_v14 = vpop.f32.mrb[53].mxu0  ;;  %5435 = vmatprep.subr.bf16.mxu0 %v5434_v11  ;;  %v4560_v58 = vld [vmem:[%s6618_s10 + $0x58] sm:$0xff] }
 0xff1   : > { %v2931_v19 = vadd.f32 %v4526_v1, %v2930_v14  ;;  %5437 = vmatpush3.bf16.msra.mxu0 %v5434_v11  ;;  %v5438_v12 = vpack.c.bf16 %v4560_v58, %v4559_v15 }
 0xff2   : > { %v4534_v20 = vmul.f32 -1.702, %v2936_v13 }
 0xff3   : > { %v4533_v22 = vmul.f32 -1.702, %v2931_v19  ;;  %5439 = vmatprep.subr.bf16.mxu0 %v5438_v12 }
 0xff4   : > { %v2953_v23 = vmul.f32 1.442695, %v4534_v20 }
 0xff5   : > { %v2951_v25 = vmul.f32 1.442695, %v4533_v22  ;;  %5441 = vmatpush3.bf16.msra.mxu0 %v5438_v12  ;;  %v4600_v12 = vld [vmem:[%s6620_s12 + $0x40] sm:$0xff] }
 0xff6   : > { %5649 = vpow2.f32 %v2953_v23  ;;  %5443 = vmatprep.subr.bf16.mxu0 %v5943_v21 }
 0xff7   : > { %5651 = vpow2.f32 %v2951_v25 }
 0xff9   : > { %v5646_v26 = vpop.eup %5645 }
 0xffa   : > { %v5648_v27 = vpop.eup %5647  ;;  %v2968_v29 = vmul.f32 %v5646_v26, %v2926_v3  ;;  %v4555_v26 = vld [vmem:[%s6616_s8 + $0x2] ss:$0 sm:$0xff] }
 0xffb   : > { %v2967_v28 = vmul.f32 %v5648_v27, %v2921_v50 }
 0xffd   : > { %5162 = vmatprep.mubr.f32.mxu1 %v2967_v28 }
 0xffe   : > { %5163 = vmatmul.mubr.f32.vlgmr.msra.gmra.mrb[38].mxu1 %v2968_v29 }
 0xfff   : > { %5215 = vmatpush3.msk.msra.mxu1 %vm1256_vm1, %v5729_v16 }
0x1000   : > { %v5650_v30 = vpop.eup %5649 }
0x1001   : > { %v5652_v31 = vpop.eup %5651  ;;  %v2958_v34 = vadd.f32 1.0, %v5650_v30  ;;  %v4556_v30 = vld [vmem:[%s6617_s9 + $0x2] ss:$0 sm:$0xff] }
0x1002   : > { %v2957_v35 = vadd.f32 1.0, %v5652_v31 }
0x1003   : > { %5653 = vrcp.f32 %v2958_v34 }
0x1004   : > { %5655 = vrcp.f32 %v2957_v35 }
0x100d   : > { %v5654_v36 = vpop.eup %5653 }
0x100e   : > { %v5656_v37 = vpop.eup %5655  ;;  %v2970_v0 = vmul.f32 %v5654_v36, %v2936_v13 }
0x100f   : > { %v2969_v38 = vmul.f32 %v5656_v37, %v2931_v19 }
0x1011   : > { %5165 = vmatprep.mubr.f32.mxu1 %v2969_v38 }
0x1012   : > { %5166 = vmatmul.mubr.f32.gmra.mrb[40].mxu1 %v2970_v0 }
0x10d1   : > { %v5164_v40 = vpop.f32.mrb[38].mxu1 }
0x10d2   : > { %v3074_v42 = vadd.f32 %v5164_v40, %v6258_v32  ;;  %v3054_v43 = vpop.f32.mrb[39].mxu1 }
0x10d3   : > { %v3073_v44 = vadd.f32 %v3054_v43, %v6260_v33 }
0x10d4   : > { %v6367_v45 = vadd.f32 %v4552_v41, %v3074_v42 }
0x10d5   : > { %v6369_v5 = vadd.f32 %v4552_v41, %v3073_v44 }
0x10d6   : > { %v3096_v51 = vsel %vm708_vm0, %v6367_v45, 0.0 }
0x10d7   : > { %3097 = vadd.xlane.f32.xlu1 %v3096_v51  ;;  %v3093_v46 = vsel %vm708_vm0, %v6369_v5, 0.0 }
0x10d8   : > { %3094 = vadd.xlane.f32.xlu0 %v3093_v46 }
0x10e5   : > { %v5167_v47 = vpop.f32.mrb[40].mxu1 }
0x10e6   : > { %v3076_v48 = vadd.f32 %v5167_v47, %v6270_v18  ;;  %v3064_v49 = vpop.f32.mrb[41].mxu1 }
0x10e7   : > { %v3075_v32 = vadd.f32 %v3064_v49, %v6268_v39 }
0x10e8   : > { %v6377_v52 = vadd.f32 %v4552_v41, %v3076_v48 }
0x10e9   : > { %v6379_v33 = vadd.f32 %v4552_v41, %v3075_v32 }
0x10ea   : > { %v3102_v53 = vsel %vm708_vm0, %v6377_v52, 0.0 }
0x10eb   : > { %3103 = vadd.xlane.f32.xlu1 %v3102_v53  ;;  %v3099_v55 = vsel %vm708_vm0, %v6379_v33, 0.0 }
0x10ec   : > { %3100 = vadd.xlane.f32.xlu0 %v3099_v55 }
0x1164   : > { %v3098_v56 = vpop.xlane.xlu1 %3097 }
0x1165   : > { %v3106_v57 = vmul.f32 0.03125, %v3098_v56  ;;  %v3095_v17 = vpop.xlane.xlu0 %3094 }
0x1166   : > { %v3105_v59 = vmul.f32 0.03125, %v3095_v17 }
0x1167   : > { %v3110_v18 = vsub.f32 %v6367_v45, %v3106_v57 }
0x1168   : > { %v3109_v39 = vsub.f32 %v6369_v5, %v3105_v59 }
0x1169   : > { %v3114_v60 = vmul.f32 %v3110_v18, %v3110_v18 }
0x116a   : > { %v3113_v61 = vmul.f32 %v3109_v39, %v3109_v39 }
0x116b   : > { %v3120_v62 = vsel %vm708_vm0, %v3114_v60, 0.0 }
0x116c   : > { %3121 = vadd.xlane.f32.xlu1 %v3120_v62  ;;  %v3117_v54 = vsel %vm708_vm0, %v3113_v61, 0.0 }
0x116d   : > { %3118 = vadd.xlane.f32.xlu0 %v3117_v54 }
0x1178   : > { %v3104_v63 = vpop.xlane.xlu1 %3103 }
0x1179   : > { %v3108_v16 = vmul.f32 0.03125, %v3104_v63  ;;  %v3101_v1 = vpop.xlane.xlu0 %3100 }
0x117a   : > { %v3107_v2 = vmul.f32 0.03125, %v3101_v1 }
0x117b   : > { %v3112_v3 = vsub.f32 %v6377_v52, %v3108_v16 }
0x117c   : > { %v3111_v4 = vsub.f32 %v6379_v33, %v3107_v2 }
0x117d   : > { %v3116_v50 = vmul.f32 %v3112_v3, %v3112_v3 }
0x117e   : > { %v3115_v6 = vmul.f32 %v3111_v4, %v3111_v4 }
0x117f   : > { %v3126_v7 = vsel %vm708_vm0, %v3116_v50, 0.0 }
0x1180   : > { %3127 = vadd.xlane.f32.xlu1 %v3126_v7  ;;  %v3123_v8 = vsel %vm708_vm0, %v3115_v6, 0.0 }
0x1181   : > { %3124 = vadd.xlane.f32.xlu0 %v3123_v8 }
0x11f9   : > { %v3122_v13 = vpop.xlane.xlu1 %3121 }
0x11fa   : > { %v3130_v14 = vmul.f32 0.03125, %v3122_v13  ;;  %v3119_v19 = vpop.xlane.xlu0 %3118  ;;  %v4601_v13 = vld [vmem:[%s6620_s12 + $0x48] sm:$0xff] }
0x11fb   : > { %v3129_v20 = vmul.f32 0.03125, %v3119_v19 }
0x11fc   : > { %v3134_v22 = vadd.f32 1e-05, %v3130_v14  ;;  %v6452_v14 = vpack.c.bf16 %v4601_v13, %v4600_v12 }
0x11fd   : > { %v3133_v23 = vadd.f32 1e-05, %v3129_v20 }
0x11fe   : > { %5657 = vrsqrt.f32 %v3134_v22  ;;  %5451 = vmatprep.subr.bf16.mxu1 %v6452_v14 }
0x11ff   : > { %5659 = vrsqrt.f32 %v3133_v23 }
0x1208   : > { %v5658_v25 = vpop.eup %5657 }
0x1209   : > { %v5660_v27 = vpop.eup %5659  ;;  %v3142_v28 = vmul.f32 %v5658_v25, %v3110_v18 }
0x120a   : > { %v3141_v29 = vmul.f32 %v5660_v27, %v3109_v39 }
0x120b   : > { %v3152_v31 = vmul.f32 %v4555_v26, %v3142_v28 }
0x120c   : > { %v3151_v34 = vmul.f32 %v4555_v26, %v3141_v29 }
0x120d   : > { %v3128_v35 = vpop.xlane.xlu1 %3127  ;;  %v3162_v40 = vadd.f32 %v4556_v30, %v3152_v31 }
0x120e   : > { %v3132_v36 = vmul.f32 0.03125, %v3128_v35  ;;  %v3125_v37 = vpop.xlane.xlu0 %3124  ;;  %v3161_v38 = vadd.f32 %v4556_v30, %v3151_v34 }
0x120f   : > { %v3131_v0 = vmul.f32 0.03125, %v3125_v37 }
0x1210   : > { %v3136_v41 = vadd.f32 1e-05, %v3132_v36  ;;  %5176 = vmatprep.mubr.msk.f32.mxu0 %vm708_vm0, %v3161_v38 }
0x1211   : > { %v3135_v42 = vadd.f32 1e-05, %v3131_v0  ;;  %5177 = vmatmul.mubr.msk.f32.vlgmr.msra.gmra.mrb[54].mxu0 %vm708_vm0, %v3162_v40 }
0x1212   : > { %5661 = vrsqrt.f32 %v3136_v41  ;;  %5445 = vmatpush3.bf16.msra.mxu0 %v5943_v21  ;;  %v4562_v21 = vld [vmem:[%s6619_s11 + $0x2] ss:$0 sm:$0xff] }
0x1213   : > { %5663 = vrsqrt.f32 %v3135_v42  ;;  %5447 = vmatprep.subr.bf16.mxu0 %v5955_v24 }
0x1216   : > { %5449 = vmatpush3.bf16.msra.mxu0 %v5955_v24 }
0x121c   : > { %v5662_v43 = vpop.eup %5661 }
0x121d   : > { %v5664_v44 = vpop.eup %5663  ;;  %v3144_v51 = vmul.f32 %v5662_v43, %v3112_v3 }
0x121e   : > { %v3143_v46 = vmul.f32 %v5664_v44, %v3111_v4 }
0x121f   : > { %v3154_v47 = vmul.f32 %v4555_v26, %v3144_v51 }
0x1220   : > { %v3153_v48 = vmul.f32 %v4555_v26, %v3143_v46 }
0x1221   : > { %v3164_v32 = vadd.f32 %v4556_v30, %v3154_v47 }
0x1222   : > { %v3163_v49 = vadd.f32 %v4556_v30, %v3153_v48 }
0x1224   : > { %5179 = vmatprep.mubr.msk.f32.mxu0 %vm708_vm0, %v3163_v49 }
0x1225   : > { %5180 = vmatmul.mubr.msk.f32.gmra.mrb[56].mxu0 %vm708_vm0, %v3164_v32 }
0x12e4   : > { %v5178_v53 = vpop.f32.mrb[54].mxu0 }
0x12e5   : > { %v3262_v55 = vadd.f32 %v5178_v53, %v4562_v21  ;;  %v3256_v56 = vpop.f32.mrb[55].mxu0 }
0x12e6   : > { %v3257_v24 = vadd.f32 %v4562_v21, %v3256_v56 }
0x12e7   : > { %3281 = vrot.lane.b32.xlu1 %v3262_v55, %s6647_s24 }
0x12e8   : > { %3276 = vrot.lane.b32.xlu0 %v3257_v24, %s6647_s24 }
0x12ec   : > { %3785 = vrot.lane.b32.xlu0 %v3257_v24, %s6648_s25 }
0x12f8   : > { %v5181_v57 = vpop.f32.mrb[56].mxu0 }
0x12f9   : > { %v3266_v17 = vpop.f32.mrb[57].mxu0  ;;  %v3272_v18 = vadd.f32 %v5181_v57, %v4562_v21 }
0x12fa   : > { %v3267_v59 = vadd.f32 %v4562_v21, %v3266_v17 }
0x12fc   : > { %3795 = vrot.lane.b32.xlu0 %v3267_v59, %s6648_s25  ;;  %3286 = vrot.lane.b32.xlu1 %v3267_v59, %s6647_s24 }
0x1300   : > { %3291 = vrot.lane.b32.xlu1 %v3272_v18, %s6647_s24 }
0x1304   : > { %3790 = vrot.lane.b32.xlu1 %v3262_v55, %s6648_s25 }
0x1308   : > { %3800 = vrot.lane.b32.xlu1 %v3272_v18, %s6648_s25  ;;  %s675_s25 = scalar_lea.vmem %s6628_s20, %s5861_s2 }
0x1359   : > { %v3282_v39 = vpop.permute.xlu1 %3281 }
0x135a   : > { %v3277_v60 = vpop.permute.xlu0 %3276  ;;  %v3284_v62 = vmul.f32 %v3282_v39, %v3257_v24  ;;  %v3296_v3 = vmul.f32 %v3282_v39, %v3262_v55  ;;  %v3300_v7 = vmul.f32 %v3282_v39, %v3267_v59  ;;  %v3304_v11 = vmul.f32 %v3282_v39, %v3272_v18 }
0x135b   : > { %v3279_v61 = vmul.f32 %v3277_v60, %v3257_v24  ;;  %v3295_v2 = vmul.f32 %v3277_v60, %v3262_v55  ;;  %v3299_v6 = vmul.f32 %v3277_v60, %v3267_v59  ;;  %v3303_v10 = vmul.f32 %v3277_v60, %v3272_v18 }
0x135d   : > { %5190 = vmatprep.mubr.msk.f32.mxu0 %vm708_vm0, %v3279_v61 }
0x135e   : > { %5191 = vmatmul.mubr.msk.f32.vlgmr.msra.gmra.mrb[58].mxu0 %vm708_vm0, %v3284_v62 }
0x136e   : > { %v3287_v54 = vpop.permute.xlu1 %3286 }
0x136f   : > { %v3289_v63 = vmul.f32 %v3287_v54, %v3257_v24  ;;  %v3297_v4 = vmul.f32 %v3287_v54, %v3262_v55  ;;  %v3301_v8 = vmul.f32 %v3287_v54, %v3267_v59  ;;  %v3305_v15 = vmul.f32 %v3287_v54, %v3272_v18 }
0x1371   : > { %5193 = vmatprep.mubr.msk.f32.mxu0 %vm708_vm0, %v3289_v63 }
0x1372   : > { %v3292_v16 = vpop.permute.xlu1 %3291 }
0x1373   : > { %v3294_v1 = vmul.f32 %v3292_v16, %v3257_v24  ;;  %v3298_v50 = vmul.f32 %v3292_v16, %v3262_v55  ;;  %v3302_v9 = vmul.f32 %v3292_v16, %v3267_v59  ;;  %v3306_v58 = vmul.f32 %v3292_v16, %v3272_v18 }
0x1375   : > { %5194 = vmatmul.mubr.msk.f32.gmra.mrb[60].mxu0 %vm708_vm0, %v3294_v1 }
0x1376   : > { %5196 = vmatprep.mubr.msk.f32.mxu0 %vm708_vm0, %v3295_v2 }
0x1379   : > { %5197 = vmatmul.mubr.msk.f32.gmra.mrb[62].mxu0 %vm708_vm0, %v3296_v3 }
0x137a   : > { %5199 = vmatprep.mubr.msk.f32.mxu0 %vm708_vm0, %v3297_v4 }
0x137d   : > { %5200 = vmatmul.mubr.msk.f32.gmra.mrb[64].mxu0 %vm708_vm0, %v3298_v50 }
0x137e   : > { %5202 = vmatprep.mubr.msk.f32.mxu0 %vm708_vm0, %v3299_v6 }
0x1381   : > { %5203 = vmatmul.mubr.msk.f32.gmra.mrb[66].mxu0 %vm708_vm0, %v3300_v7 }
0x1382   : > { %5205 = vmatprep.mubr.msk.f32.mxu0 %vm708_vm0, %v3301_v8 }
0x1385   : > { %5206 = vmatmul.mubr.msk.f32.gmra.mrb[68].mxu0 %vm708_vm0, %v3302_v9 }
0x1386   : > { %5208 = vmatprep.mubr.msk.f32.mxu0 %vm708_vm0, %v3303_v10 }
0x1389   : > { %5209 = vmatmul.mubr.msk.f32.gmra.mrb[70].mxu0 %vm708_vm0, %v3304_v11 }
0x138a   : > { %5211 = vmatprep.mubr.msk.f32.mxu0 %vm708_vm0, %v3305_v15 }
0x138d   : > { %5212 = vmatmul.mubr.msk.f32.gmra.mrb[72].mxu0 %vm708_vm0, %v3306_v58 }
0x1431   : > { %v5192_v19 = vpop.f32.mrb[58].mxu0 }
0x1432   : > { %v3421_v20 = vpop.f32.mrb[59].mxu0 }
0x1433   : > { %v3500_v22 = vmax.f32 %v3421_v20, %v5192_v19 }
0x1448   : > { %v5195_v23 = vpop.f32.mrb[60].mxu0 }
0x1449   : > { %v3431_v25 = vpop.f32.mrb[61].mxu0 }
0x144a   : > { %v3501_v26 = vmax.f32 %v3431_v25, %v5195_v23 }
0x144c   : > { %v3502_v27 = vmax.f32 %v3500_v22, %v3501_v26  ;;  %v5198_v28 = vpop.f32.mrb[62].mxu0 }
0x144d   : > { %v3441_v29 = vpop.f32.mrb[63].mxu0 }
0x144e   : > { %v3503_v30 = vsub.f32 %v3421_v20, %v3502_v27  ;;  %v3506_v31 = vsub.f32 %v5192_v19, %v3502_v27  ;;  %v3509_v34 = vsub.f32 %v3431_v25, %v3502_v27  ;;  %v3512_v35 = vsub.f32 %v5195_v23, %v3502_v27 }
0x144f   : > { %v3523_v36 = vmax.f32 %v3441_v29, %v5198_v28 }
0x1450   : > { %v3504_v37 = vmul.f32 1.442695, %v3503_v30  ;;  %v3507_v38 = vmul.f32 1.442695, %v3506_v31  ;;  %v3510_v0 = vmul.f32 1.442695, %v3509_v34 }
0x1451   : > { %v5201_v40 = vpop.f32.mrb[64].mxu0  ;;  %v3513_v41 = vmul.f32 1.442695, %v3512_v35 }
0x1452   : > { %5665 = vpow2.f32 %v3504_v37  ;;  %v3451_v42 = vpop.f32.mrb[65].mxu0 }
0x1453   : > { %5667 = vpow2.f32 %v3507_v38  ;;  %v3524_v43 = vmax.f32 %v3451_v42, %v5201_v40 }
0x1454   : > { %v5204_v44 = vpop.f32.mrb[66].mxu0  ;;  %5669 = vpow2.f32 %v3510_v0 }
0x1455   : > { %v3525_v51 = vmax.f32 %v3523_v36, %v3524_v43  ;;  %v3461_v46 = vpop.f32.mrb[67].mxu0  ;;  %5671 = vpow2.f32 %v3513_v41 }
0x1456   : > { %v3546_v47 = vmax.f32 %v3461_v46, %v5204_v44 }
0x1457   : > { %v3526_v48 = vsub.f32 %v3441_v29, %v3525_v51  ;;  %v3529_v49 = vsub.f32 %v5198_v28, %v3525_v51  ;;  %v3532_v32 = vsub.f32 %v3451_v42, %v3525_v51  ;;  %v3535_v21 = vsub.f32 %v5201_v40, %v3525_v51 }
0x1458   : > { %v5207_v53 = vpop.f32.mrb[68].mxu0 }
0x1459   : > { %v3527_v55 = vmul.f32 1.442695, %v3526_v48  ;;  %v3530_v56 = vmul.f32 1.442695, %v3529_v49  ;;  %v3533_v24 = vmul.f32 1.442695, %v3532_v32 }
0x145a   : > { %v3471_v57 = vpop.f32.mrb[69].mxu0  ;;  %v3536_v18 = vmul.f32 1.442695, %v3535_v21 }
0x145b   : > { %5673 = vpow2.f32 %v3527_v55  ;;  %v3547_v17 = vmax.f32 %v3471_v57, %v5207_v53 }
0x145c   : > { %v5666_v59 = vpop.eup %5665  ;;  %5675 = vpow2.f32 %v3530_v56  ;;  %v5210_v39 = vpop.f32.mrb[70].mxu0 }
0x145d   : > { %v5668_v60 = vpop.eup %5667  ;;  %v3548_v61 = vmax.f32 %v3546_v47, %v3547_v17  ;;  %v3481_v62 = vpop.f32.mrb[71].mxu0  ;;  %5677 = vpow2.f32 %v3533_v24 }
0x145e   : > { %v3515_v54 = vadd.f32 %v5668_v60, %v5666_v59  ;;  %v3569_v63 = vmax.f32 %v3481_v62, %v5210_v39  ;;  %v5670_v16 = vpop.eup %5669  ;;  %5679 = vpow2.f32 %v3536_v18 }
0x145f   : > { %v3549_v1 = vsub.f32 %v3461_v46, %v3548_v61  ;;  %v3552_v2 = vsub.f32 %v5204_v44, %v3548_v61  ;;  %v3555_v3 = vsub.f32 %v3471_v57, %v3548_v61  ;;  %v3558_v4 = vsub.f32 %v5207_v53, %v3548_v61  ;;  %v5672_v50 = vpop.eup %5671 }
0x1460   : > { %v3516_v6 = vadd.f32 %v5670_v16, %v3515_v54  ;;  %v5213_v7 = vpop.f32.mrb[72].mxu0 }
0x1461   : > { %v3550_v8 = vmul.f32 1.442695, %v3549_v1  ;;  %v3553_v9 = vmul.f32 1.442695, %v3552_v2  ;;  %v3491_v11 = vpop.f32.mrb[73].mxu0 }
0x1462   : > { %v3517_v10 = vadd.f32 %v5672_v50, %v3516_v6  ;;  %v3556_v15 = vmul.f32 1.442695, %v3555_v3  ;;  %v3570_v58 = vmax.f32 %v3491_v11, %v5213_v7  ;;  %v3559_v13 = vmul.f32 1.442695, %v3558_v4  ;;  %v4603_v6 = vld [vmem:[%s6620_s12 + $0x58] sm:$0xff] }
0x1463   : > { %5681 = vpow2.f32 %v3550_v8  ;;  %v3791_v8 = vpop.permute.xlu1 %3790 }
0x1464   : > { %5683 = vrcp.f32 %v3517_v10  ;;  %v3571_v19 = vmax.f32 %v3569_v63, %v3570_v58  ;;  %v3786_v10 = vpop.permute.xlu0 %3785 }
0x1465   : > { %v5674_v12 = vpop.eup %5673  ;;  %5685 = vpow2.f32 %v3553_v9 }
0x1466   : > { %v5676_v20 = vpop.eup %5675  ;;  %5687 = vpow2.f32 %v3556_v15  ;;  %v3572_v23 = vsub.f32 %v3481_v62, %v3571_v19  ;;  %v3575_v25 = vsub.f32 %v5210_v39, %v3571_v19  ;;  %v3578_v27 = vsub.f32 %v3491_v11, %v3571_v19 }
0x1467   : > { %v3538_v22 = vadd.f32 %v5676_v20, %v5674_v12  ;;  %v5678_v26 = vpop.eup %5677  ;;  %v3581_v28 = vsub.f32 %v5213_v7, %v3571_v19  ;;  %5689 = vpow2.f32 %v3559_v13 }
0x1468   : > { %v3573_v30 = vmul.f32 1.442695, %v3572_v23  ;;  %v3576_v31 = vmul.f32 1.442695, %v3575_v25  ;;  %v5680_v34 = vpop.eup %5679  ;;  %v3579_v35 = vmul.f32 1.442695, %v3578_v27  ;;  %v3796_v19 = vpop.permute.xlu0 %3795 }
0x1469   : > { %v3539_v29 = vadd.f32 %v5678_v26, %v3538_v22  ;;  %v3582_v37 = vmul.f32 1.442695, %v3581_v28  ;;  %v3801_v23 = vpop.permute.xlu1 %3800 }
0x146a   : > { %5691 = vpow2.f32 %v3573_v30 }
0x146b   : > { %v3540_v36 = vadd.f32 %v5680_v34, %v3539_v29  ;;  %5693 = vpow2.f32 %v3576_v31 }
0x146d   : > { %v5682_v38 = vpop.eup %5681  ;;  %5695 = vrcp.f32 %v3540_v36 }
0x146e   : > { %v5684_v0 = vpop.eup %5683  ;;  %5697 = vpow2.f32 %v3579_v35 }
0x146f   : > { %v5686_v40 = vpop.eup %5685  ;;  %v3519_v41 = vmul.f32 %v5684_v0, %v5666_v59  ;;  %v3520_v42 = vmul.f32 %v5684_v0, %v5668_v60  ;;  %v3521_v43 = vmul.f32 %v5684_v0, %v5670_v16  ;;  %5699 = vpow2.f32 %v3582_v37 }
0x1470   : > { %v3561_v44 = vadd.f32 %v5686_v40, %v5682_v38  ;;  %v3522_v51 = vmul.f32 %v5684_v0, %v5672_v50  ;;  %v5688_v46 = vpop.eup %5687  ;;  %v4602_v50 = vld [vmem:[%s6620_s12 + $0x50] sm:$0xff] }
0x1471   : > { %5216 = vmatprep.mubr.msk.f32.mxu1 %vm1207_vm2, %v3519_v41  ;;  %v5690_v48 = vpop.eup %5689  ;;  %v5454_v7 = vpack.c.bf16 %v4603_v6, %v4602_v50 }
0x1472   : > { %v3562_v47 = vadd.f32 %v5688_v46, %v3561_v44  ;;  %5217 = vmatmul.mubr.msk.f32.vlgmr.msra.gmra.mrb[42].mxu1 %vm1207_vm2, %v3520_v42 }
0x1473   : > { %5219 = vmatprep.mubr.msk.f32.mxu1 %vm1207_vm2, %v3521_v43  ;;  %5453 = vmatpush3.bf16.msra.mxu1 %v6452_v14 }
0x1474   : > { %v3563_v49 = vadd.f32 %v5690_v48, %v3562_v47  ;;  %v5692_v32 = vpop.eup %5691  ;;  %5455 = vmatprep.subr.bf16.mxu1 %v5454_v7 }
0x1475   : > { %v5694_v21 = vpop.eup %5693 }
0x1476   : > { %5701 = vrcp.f32 %v3563_v49  ;;  %5220 = vmatmul.mubr.msk.f32.gmra.mrb[44].mxu1 %vm1207_vm2, %v3522_v51  ;;  %v3584_v55 = vadd.f32 %v5694_v21, %v5692_v32 }
0x1477   : > { %v5696_v53 = vpop.eup %5695  ;;  %5457 = vmatpush3.bf16.msra.mxu1 %v5454_v7 }
0x1478   : > { %v5698_v56 = vpop.eup %5697  ;;  %v3542_v24 = vmul.f32 %v5696_v53, %v5674_v12  ;;  %v3543_v57 = vmul.f32 %v5696_v53, %v5676_v20  ;;  %v3544_v17 = vmul.f32 %v5696_v53, %v5678_v26  ;;  %v3545_v59 = vmul.f32 %v5696_v53, %v5680_v34 }
0x1479   : > { %v3585_v18 = vadd.f32 %v5698_v56, %v3584_v55  ;;  %v5700_v39 = vpop.eup %5699 }
0x147a   : > { %5222 = vmatprep.mubr.msk.f32.mxu1 %vm1207_vm2, %v3542_v24 }
0x147b   : > { %v3586_v60 = vadd.f32 %v5700_v39, %v3585_v18  ;;  %5223 = vmatmul.mubr.msk.f32.gmra.mrb[46].mxu1 %vm1207_vm2, %v3543_v57 }
0x147c   : > { %5225 = vmatprep.mubr.msk.f32.mxu1 %vm1207_vm2, %v3544_v17 }
0x147d   : > { %5703 = vrcp.f32 %v3586_v60 }
0x147f   : > { %5226 = vmatmul.mubr.msk.f32.gmra.mrb[48].mxu1 %vm1207_vm2, %v3545_v59 }
0x1480   : > { %v5702_v14 = vpop.eup %5701 }
0x1481   : > { %v3565_v61 = vmul.f32 %v5702_v14, %v5682_v38  ;;  %v3566_v62 = vmul.f32 %v5702_v14, %v5686_v40  ;;  %v3567_v54 = vmul.f32 %v5702_v14, %v5688_v46  ;;  %v3568_v63 = vmul.f32 %v5702_v14, %v5690_v48 }
0x1483   : > { %5228 = vmatprep.mubr.msk.f32.mxu1 %vm1207_vm2, %v3565_v61 }
0x1484   : > { %5229 = vmatmul.mubr.msk.f32.gmra.mrb[50].mxu1 %vm1207_vm2, %v3566_v62  ;;  %v4609_v62 = vld [vmem:[%s6621_s13 + $0x2] ss:$0 sm:$0xff] }
0x1485   : > { %5231 = vmatprep.mubr.msk.f32.mxu1 %vm1207_vm2, %v3567_v54 }
0x1487   : > { %v5704_v16 = vpop.eup %5703 }
0x1488   : > { %5232 = vmatmul.mubr.msk.f32.gmra.mrb[52].mxu1 %vm1207_vm2, %v3568_v63  ;;  %v3588_v1 = vmul.f32 %v5704_v16, %v5692_v32  ;;  %v3589_v2 = vmul.f32 %v5704_v16, %v5694_v21  ;;  %v3590_v3 = vmul.f32 %v5704_v16, %v5698_v56  ;;  %v3591_v4 = vmul.f32 %v5704_v16, %v5700_v39 }
0x148a   : > { %5234 = vmatprep.mubr.msk.f32.mxu1 %vm1207_vm2, %v3588_v1 }
0x148c   : > { %5235 = vmatmul.mubr.msk.f32.gmra.mrb[54].mxu1 %vm1207_vm2, %v3589_v2 }
0x148d   : > { %5237 = vmatprep.mubr.msk.f32.mxu1 %vm1207_vm2, %v3590_v3 }
0x1490   : > { %5238 = vmatmul.mubr.msk.f32.gmra.mrb[56].mxu1 %vm1207_vm2, %v3591_v4 }
0x1545   : > { %v5218_v9 = vpop.f32.mrb[42].mxu1 }
0x1546   : > { %v3793_v11 = vmul.f32 %v5218_v9, %v3791_v8  ;;  %v3706_v15 = vpop.f32.mrb[43].mxu1 }
0x1547   : > { %v3788_v58 = vmul.f32 %v3786_v10, %v3706_v15 }
0x1549   : > { %v3794_v12 = vadd.f32 %v3793_v11, %v3788_v58  ;;  %v5221_v13 = vpop.f32.mrb[44].mxu1 }
0x154a   : > { %v3716_v20 = vpop.f32.mrb[45].mxu1  ;;  %v3803_v25 = vmul.f32 %v5221_v13, %v3801_v23 }
0x154b   : > { %v3798_v22 = vmul.f32 %v3796_v19, %v3716_v20 }
0x154d   : > { %v3799_v26 = vadd.f32 %v3798_v22, %v3794_v12 }
0x154e   : > { %v5224_v27 = vpop.f32.mrb[46].mxu1 }
0x154f   : > { %v3804_v28 = vadd.f32 %v3803_v25, %v3799_v26  ;;  %v3807_v29 = vmul.f32 %v5224_v27, %v3791_v8  ;;  %v3726_v30 = vpop.f32.mrb[47].mxu1 }
0x1550   : > { %v3805_v31 = vmul.f32 %v3786_v10, %v3726_v30 }
0x1551   : > { %5248 = vmatprep.mubr.msk.f32.mxu1 %vm708_vm0, %v3804_v28 }
0x1552   : > { %v3808_v34 = vadd.f32 %v3807_v29, %v3805_v31  ;;  %v5227_v35 = vpop.f32.mrb[48].mxu1 }
0x1553   : > { %v3736_v36 = vpop.f32.mrb[49].mxu1  ;;  %v3811_v38 = vmul.f32 %v5227_v35, %v3801_v23 }
0x1554   : > { %v3809_v37 = vmul.f32 %v3796_v19, %v3736_v36  ;;  %v4614_v36 = vld [vmem:[%s6624_s16 + $0x40] sm:$0xff] }
0x1556   : > { %v3810_v0 = vadd.f32 %v3809_v37, %v3808_v34  ;;  %v4615_v37 = vld [vmem:[%s6624_s16 + $0x48] sm:$0xff] }
0x1557   : > { %v5230_v40 = vpop.f32.mrb[50].mxu1 }
0x1558   : > { %v3812_v41 = vadd.f32 %v3811_v38, %v3810_v0  ;;  %v3815_v42 = vmul.f32 %v5230_v40, %v3791_v8  ;;  %v3746_v43 = vpop.f32.mrb[51].mxu1  ;;  %v5458_v38 = vpack.c.bf16 %v4615_v37, %v4614_v36  ;;  %v4616_v0 = vld [vmem:[%s6624_s16 + $0x50] sm:$0xff]  ;;  %v4617_v40 = vld [vmem:[%s6624_s16 + $0x58] sm:$0xff]  ;;  %v4619_v36 = vld [vmem:[%s6625_s17 + $0x2] ss:$0 sm:$0xff] }
0x1559   : > { %v3813_v44 = vmul.f32 %v3786_v10, %v3746_v43 }
0x155a   : > { %5249 = vmatmul.mubr.msk.f32.vlgmr.msra.gmra.mrb[58].mxu1 %vm708_vm0, %v3812_v41  ;;  %5459 = vmatprep.subr.bf16.mxu1 %v5458_v38  ;;  %v5462_v41 = vpack.c.bf16 %v4617_v40, %v4616_v0 }
0x155b   : > { %v3816_v51 = vadd.f32 %v3815_v42, %v3813_v44  ;;  %v5233_v46 = vpop.f32.mrb[52].mxu1  ;;  %5461 = vmatpush3.bf16.msra.mxu1 %v5458_v38 }
0x155c   : > { %v3756_v47 = vpop.f32.mrb[53].mxu1  ;;  %v3819_v49 = vmul.f32 %v5233_v46, %v3801_v23  ;;  %5463 = vmatprep.subr.bf16.mxu1 %v5462_v41 }
0x155d   : > { %v3817_v48 = vmul.f32 %v3796_v19, %v3756_v47 }
0x155f   : > { %v3818_v32 = vadd.f32 %v3817_v48, %v3816_v51  ;;  %v5236_v21 = vpop.f32.mrb[54].mxu1  ;;  %5465 = vmatpush3.bf16.msra.mxu1 %v5462_v41 }
0x1560   : > { %v3823_v53 = vmul.f32 %v5236_v21, %v3791_v8  ;;  %v3766_v55 = vpop.f32.mrb[55].mxu1 }
0x1561   : > { %v3820_v56 = vadd.f32 %v3819_v49, %v3818_v32  ;;  %v3821_v24 = vmul.f32 %v3786_v10, %v3766_v55  ;;  %v4612_v49 = vld [vmem:[%s6622_s14 + $0x2] ss:$0 sm:$0xff] }
0x1563   : > { %v3824_v57 = vadd.f32 %v3823_v53, %v3821_v24  ;;  %v5239_v17 = vpop.f32.mrb[56].mxu1  ;;  %5251 = vmatprep.mubr.msk.f32.mxu1 %vm708_vm0, %v3820_v56  ;;  %v4613_v56 = vld [vmem:[%s6623_s15 + $0x2] ss:$0 sm:$0xff] }
0x1564   : > { %v3776_v59 = vpop.f32.mrb[57].mxu1  ;;  %v3827_v39 = vmul.f32 %v5239_v17, %v3801_v23 }
0x1565   : > { %v3825_v18 = vmul.f32 %v3796_v19, %v3776_v59 }
0x1567   : > { %v3826_v60 = vadd.f32 %v3825_v18, %v3824_v57 }
0x1569   : > { %v3828_v14 = vadd.f32 %v3827_v39, %v3826_v60 }
0x156b   : > { %5252 = vmatmul.mubr.msk.f32.gmra.mrb[60].mxu1 %vm708_vm0, %v3828_v14 }
0x162d   : > { %v5250_v61 = vpop.f32.mrb[58].mxu1 }
0x162e   : > { %v3932_v54 = vadd.f32 %v5250_v61, %v6367_v45  ;;  %v3912_v63 = vpop.f32.mrb[59].mxu1 }
0x162f   : > { %v3931_v16 = vadd.f32 %v3912_v63, %v6369_v5 }
0x1630   : > { %v6487_v1 = vadd.f32 %v4609_v62, %v3932_v54 }
0x1631   : > { %v6489_v2 = vadd.f32 %v4609_v62, %v3931_v16 }
0x1632   : > { %v3954_v3 = vsel %vm708_vm0, %v6487_v1, 0.0 }
0x1633   : > { %3955 = vadd.xlane.f32.xlu1 %v3954_v3  ;;  %v3951_v4 = vsel %vm708_vm0, %v6489_v2, 0.0 }
0x1634   : > { %3952 = vadd.xlane.f32.xlu0 %v3951_v4 }
0x163e   : > { %v5253_v50 = vpop.f32.mrb[60].mxu1 }
0x163f   : > { %v3922_v6 = vpop.f32.mrb[61].mxu1  ;;  %v3934_v7 = vadd.f32 %v5253_v50, %v6377_v52 }
0x1640   : > { %v3933_v45 = vadd.f32 %v3922_v6, %v6379_v33 }
0x1641   : > { %v6499_v5 = vadd.f32 %v4609_v62, %v3934_v7  ;;  %v4628_v7 = vld [vmem:[%s6626_s18 + $0x100] sm:$0xff] }
0x1642   : > { %v6497_v8 = vadd.f32 %v4609_v62, %v3933_v45  ;;  %v4629_v45 = vld [vmem:[%s6626_s18 + $0x108] sm:$0xff] }
0x1643   : > { %v3960_v10 = vsel %vm708_vm0, %v6499_v5, 0.0 }
0x1644   : > { %v3957_v9 = vsel %vm708_vm0, %v6497_v8, 0.0 }
0x1645   : > { %3958 = vadd.xlane.f32.xlu0 %v3957_v9  ;;  %v5466_v9 = vpack.c.bf16 %v4629_v45, %v4628_v7 }
0x1647   : > { %5467 = vmatprep.subr.bf16.mxu0 %v5466_v9 }
0x1648   : > { %5469 = vmatpush3.bf16.msra.mxu0 %v5466_v9 }
0x1649   : > { %3961 = vadd.xlane.f32.xlu0 %v3960_v10  ;;  %v4630_v10 = vld [vmem:[%s6626_s18 + $0x110] sm:$0xff] }
0x16c0   : > { %v3956_v11 = vpop.xlane.xlu1 %3955 }
0x16c1   : > { %v3964_v15 = vmul.f32 0.03125, %v3956_v11  ;;  %v3953_v58 = vpop.xlane.xlu0 %3952  ;;  %v4631_v11 = vld [vmem:[%s6626_s18 + $0x118] sm:$0xff] }
0x16c2   : > { %v3963_v12 = vmul.f32 0.03125, %v3953_v58  ;;  %v4632_v58 = vld [vmem:[%s6626_s18 + $0x120] sm:$0xff] }
0x16c3   : > { %v3968_v52 = vsub.f32 %v6487_v1, %v3964_v15  ;;  %v5470_v15 = vpack.c.bf16 %v4631_v11, %v4630_v10  ;;  %v5730_v11 = vld [vmem:[%s5881_s23] sm:$0xff] }
0x16c4   : > { %v3967_v33 = vsub.f32 %v6489_v2, %v3963_v12  ;;  %v4633_v12 = vld [vmem:[%s6626_s18 + $0x128] sm:$0xff] }
0x16c5   : > { %v3972_v13 = vmul.f32 %v3968_v52, %v3968_v52  ;;  %5471 = vmatprep.subr.bf16.mxu0 %v5470_v15 }
0x16c6   : > { %v3971_v19 = vmul.f32 %v3967_v33, %v3967_v33  ;;  %5473 = vmatpush3.bf16.msra.mxu0 %v5470_v15 }
0x16c7   : > { %v3978_v20 = vsel %vm708_vm0, %v3972_v13, 0.0  ;;  %v4635_v13 = vld [vmem:[%s6626_s18 + $0x138] sm:$0xff] }
0x16c8   : > { %3979 = vadd.xlane.f32.xlu1 %v3978_v20  ;;  %v3975_v22 = vsel %vm708_vm0, %v3971_v19, 0.0  ;;  %v4636_v20 = vld [vmem:[%s6626_s18 + $0x140] sm:$0xff] }
0x16c9   : > { %3976 = vadd.xlane.f32.xlu0 %v3975_v22  ;;  %v4637_v22 = vld [vmem:[%s6626_s18 + $0x148] sm:$0xff] }
0x16d2   : > { %v3959_v23 = vpop.xlane.xlu0 %3958 }
0x16d3   : > { %v3965_v25 = vmul.f32 0.03125, %v3959_v23  ;;  %v5482_v23 = vpack.c.bf16 %v4637_v22, %v4636_v20 }
0x16d5   : > { %v3969_v26 = vsub.f32 %v6497_v8, %v3965_v25  ;;  %v4638_v25 = vld [vmem:[%s6626_s18 + $0x150] sm:$0xff] }
0x16d6   : > { %v3962_v27 = vpop.xlane.xlu0 %3961 }
0x16d7   : > { %v3966_v28 = vmul.f32 0.03125, %v3962_v27  ;;  %v3973_v29 = vmul.f32 %v3969_v26, %v3969_v26 }
0x16d9   : > { %v3970_v30 = vsub.f32 %v6499_v5, %v3966_v28  ;;  %v3981_v31 = vsel %vm708_vm0, %v3973_v29, 0.0  ;;  %v4640_v28 = vld [vmem:[%s6626_s18 + $0x160] sm:$0xff]  ;;  %v4641_v29 = vld [vmem:[%s6626_s18 + $0x168] sm:$0xff] }
0x16da   : > { %3982 = vadd.xlane.f32.xlu0 %v3981_v31  ;;  %v4642_v31 = vld [vmem:[%s6626_s18 + $0x170] sm:$0xff] }
0x16db   : > { %v3974_v34 = vmul.f32 %v3970_v30, %v3970_v30 }
0x16dd   : > { %v3984_v35 = vsel %vm708_vm0, %v3974_v34, 0.0  ;;  %v4643_v34 = vld [vmem:[%s6626_s18 + $0x178] sm:$0xff] }
0x16de   : > { %3985 = vadd.xlane.f32.xlu1 %v3984_v35  ;;  %v5494_v35 = vpack.c.bf16 %v4643_v34, %v4642_v31 }
0x1755   : > { %v3980_v42 = vpop.xlane.xlu1 %3979 }
0x1756   : > { %v3988_v43 = vmul.f32 0.03125, %v3980_v42  ;;  %v3977_v44 = vpop.xlane.xlu0 %3976 }
0x1757   : > { %v3987_v51 = vmul.f32 0.03125, %v3977_v44 }
0x1758   : > { %v3992_v46 = vadd.f32 1e-05, %v3988_v43 }
0x1759   : > { %v3991_v47 = vadd.f32 1e-05, %v3987_v51 }
0x175a   : > { %5705 = vrsqrt.f32 %v3992_v46 }
0x175b   : > { %5707 = vrsqrt.f32 %v3991_v47 }
0x1764   : > { %v5706_v48 = vpop.eup %5705 }
0x1765   : > { %v5708_v32 = vpop.eup %5707  ;;  %v4000_v21 = vmul.f32 %v5706_v48, %v3968_v52  ;;  %v5474_v52 = vpack.c.bf16 %v4633_v12, %v4632_v58  ;;  %v5731_v58 = vld [vmem:[%s5867_s27] sm:$0xff] }
0x1766   : > { %v3999_v53 = vmul.f32 %v5708_v32, %v3967_v33  ;;  %v4634_v33 = vld [vmem:[%s6626_s18 + $0x130] sm:$0xff] }
0x1767   : > { %v3983_v55 = vpop.xlane.xlu0 %3982  ;;  %v4010_v24 = vmul.f32 %v4612_v49, %v4000_v21  ;;  %5475 = vmatprep.subr.bf16.mxu0 %v5474_v52  ;;  %v5478_v19 = vpack.c.bf16 %v4635_v13, %v4634_v33 }
0x1768   : > { %v3989_v57 = vmul.f32 0.03125, %v3983_v55  ;;  %v4009_v17 = vmul.f32 %v4612_v49, %v3999_v53  ;;  %5477 = vmatpush3.bf16.msra.mxu0 %v5474_v52 }
0x1769   : > { %v4020_v60 = vadd.f32 %v4613_v56, %v4010_v24  ;;  %5479 = vmatprep.subr.bf16.mxu0 %v5478_v19 }
0x176a   : > { %v3993_v59 = vadd.f32 1e-05, %v3989_v57  ;;  %v4019_v18 = vadd.f32 %v4613_v56, %v4009_v17 }
0x176b   : > { %v3986_v39 = vpop.xlane.xlu1 %3985 }
0x176c   : > { %5709 = vrsqrt.f32 %v3993_v59  ;;  %v3990_v14 = vmul.f32 0.03125, %v3986_v39  ;;  %5262 = vmatprep.mubr.msk.f32.mxu1 %vm708_vm0, %v4019_v18  ;;  %5481 = vmatpush3.bf16.msra.mxu0 %v5478_v19 }
0x176d   : > { %5263 = vmatmul.mubr.msk.f32.vlgmr.msra.gmra.mrb[62].mxu1 %vm708_vm0, %v4020_v60  ;;  %5483 = vmatprep.subr.bf16.mxu0 %v5482_v23 }
0x176e   : > { %v3994_v61 = vadd.f32 1e-05, %v3990_v14 }
0x1770   : > { %5711 = vrsqrt.f32 %v3994_v61  ;;  %5485 = vmatpush3.bf16.msra.mxu0 %v5482_v23  ;;  %v5732_v23 = vld [vmem:[%s5887_s26] sm:$0xff] }
0x1776   : > { %v5710_v62 = vpop.eup %5709 }
0x1777   : > { %v4001_v54 = vmul.f32 %v5710_v62, %v3969_v26  ;;  %v4639_v26 = vld [vmem:[%s6626_s18 + $0x158] sm:$0xff] }
0x1778   : > { %v5486_v27 = vpack.c.bf16 %v4639_v26, %v4638_v25 }
0x1779   : > { %v4011_v63 = vmul.f32 %v4612_v49, %v4001_v54 }
0x177a   : > { %v5712_v16 = vpop.eup %5711  ;;  %5487 = vmatprep.subr.bf16.mxu0 %v5486_v27 }
0x177b   : > { %v4021_v3 = vadd.f32 %v4613_v56, %v4011_v63  ;;  %v4002_v4 = vmul.f32 %v5712_v16, %v3970_v30  ;;  %5489 = vmatpush3.bf16.msra.mxu0 %v5486_v27  ;;  %v5490_v30 = vpack.c.bf16 %v4641_v29, %v4640_v28  ;;  %v4646_v28 = vld [vmem:[%s6615_s7] ss:$0 sm:$0xff] }
0x177d   : > { %5265 = vmatprep.mubr.msk.f32.mxu1 %vm708_vm0, %v4021_v3  ;;  %v4012_v50 = vmul.f32 %v4612_v49, %v4002_v4  ;;  %5491 = vmatprep.subr.bf16.mxu0 %v5490_v30 }
0x177f   : > { %v4022_v6 = vadd.f32 %v4613_v56, %v4012_v50  ;;  %5493 = vmatpush3.bf16.msra.mxu0 %v5490_v30  ;;  %v4645_v50 = vld [vmem:[%s6627_s19 + $0x2] ss:$0 sm:$0xff] }
0x1780   : > { %5495 = vmatprep.subr.bf16.mxu0 %v5494_v35 }
0x1781   : > { %5266 = vmatmul.mubr.msk.f32.gmra.mrb[64].mxu1 %vm708_vm0, %v4022_v6 }
0x1783   : > { %5497 = vmatpush3.bf16.msra.mxu0 %v5494_v35 }
0x1840   : > { %v5264_v37 = vpop.f32.mrb[62].mxu1 }
0x1841   : > { %v4120_v38 = vadd.f32 %v5264_v37, %v4619_v36  ;;  %v4114_v0 = vpop.f32.mrb[63].mxu1 }
0x1842   : > { %v4115_v40 = vadd.f32 %v4619_v36, %v4114_v0 }
0x1843   : > { %v4625_v41 = vmul.f32 -1.702, %v4120_v38 }
0x1844   : > { %v4624_v42 = vmul.f32 -1.702, %v4115_v40 }
0x1845   : > { %v4143_v43 = vmul.f32 1.442695, %v4625_v41 }
0x1846   : > { %v4141_v44 = vmul.f32 1.442695, %v4624_v42 }
0x1847   : > { %5713 = vpow2.f32 %v4143_v43 }
0x1848   : > { %5715 = vpow2.f32 %v4141_v44 }
0x1851   : > { %v5714_v51 = vpop.eup %5713 }
0x1852   : > { %v5716_v46 = vpop.eup %5715  ;;  %v4150_v47 = vadd.f32 1.0, %v5714_v51 }
0x1853   : > { %v4149_v48 = vadd.f32 1.0, %v5716_v46 }
0x1854   : > { %5717 = vrcp.f32 %v4150_v47  ;;  %v5267_v49 = vpop.f32.mrb[64].mxu1 }
0x1855   : > { %5719 = vrcp.f32 %v4149_v48  ;;  %v4130_v32 = vadd.f32 %v5267_v49, %v4619_v36  ;;  %v4124_v21 = vpop.f32.mrb[65].mxu1 }
0x1856   : > { %v4125_v53 = vadd.f32 %v4619_v36, %v4124_v21 }
0x1857   : > { %v4627_v55 = vmul.f32 -1.702, %v4130_v32 }
0x1858   : > { %v4626_v56 = vmul.f32 -1.702, %v4125_v53 }
0x1859   : > { %v4147_v24 = vmul.f32 1.442695, %v4627_v55 }
0x185a   : > { %v4145_v57 = vmul.f32 1.442695, %v4626_v56 }
0x185b   : > { %5721 = vpow2.f32 %v4147_v24 }
0x185c   : > { %5723 = vpow2.f32 %v4145_v57 }
0x185e   : > { %v5718_v17 = vpop.eup %5717 }
0x185f   : > { %v5720_v59 = vpop.eup %5719  ;;  %v4162_v39 = vmul.f32 %v5718_v17, %v4120_v38 }
0x1860   : > { %v4161_v18 = vmul.f32 %v5720_v59, %v4115_v40 }
0x1862   : > { %5300 = vmatprep.mubr.f32.mxu0 %v4161_v18 }
0x1863   : > { %5301 = vmatmul.mubr.f32.vlgmr.msra.gmra.mrb[74].mxu0 %v4162_v39 }
0x1865   : > { %v5722_v60 = vpop.eup %5721 }
0x1866   : > { %v5724_v14 = vpop.eup %5723  ;;  %v4152_v61 = vadd.f32 1.0, %v5722_v60 }
0x1867   : > { %v4151_v62 = vadd.f32 1.0, %v5724_v14 }
0x1868   : > { %5725 = vrcp.f32 %v4152_v61 }
0x1869   : > { %5727 = vrcp.f32 %v4151_v62 }
0x1872   : > { %v5726_v54 = vpop.eup %5725 }
0x1873   : > { %v5728_v63 = vpop.eup %5727  ;;  %v4164_v3 = vmul.f32 %v5726_v54, %v4130_v32 }
0x1874   : > { %v4163_v16 = vmul.f32 %v5728_v63, %v4125_v53 }
0x1876   : > { %5303 = vmatprep.mubr.f32.mxu0 %v4163_v16 }
0x1877   : > { %5304 = vmatmul.mubr.f32.gmra.mrb[76].mxu0 %v4164_v3 }
0x1936   : > { %v5302_v4 = vpop.f32.mrb[74].mxu0 }
0x1937   : > { %v4268_v6 = vadd.f32 %v5302_v4, %v6487_v1  ;;  %v4248_v7 = vpop.f32.mrb[75].mxu0 }
0x1938   : > { %v4267_v45 = vadd.f32 %v4248_v7, %v6489_v2  ;;  %v5733_v2 = vld [vmem:[%s5873_s30] sm:$0xff] }
0x1939   : > { %v4280_v9 = vadd.f32 %v4645_v50, %v4268_v6 }
0x193a   : > { %v4279_v10 = vadd.f32 %v4645_v50, %v4267_v45 }
0x193b   : > { %v4284_v15 = vadd.f32 %v5730_v11, %v4280_v9 }
0x193c   : > { %v4283_v12 = vadd.f32 %v5731_v58, %v4279_v10 }
0x193e   : > { %v4287_v52 = vmul.f32 %v4284_v15, %v4283_v12 }
0x194a   : > { %v5305_v33 = vpop.f32.mrb[76].mxu0 }
0x194b   : > { %v4270_v13 = vadd.f32 %v5305_v33, %v6499_v5  ;;  %v4258_v19 = vpop.f32.mrb[77].mxu0  ;;  %v4295_v5 = vsub.f32 %v4287_v52, %v4646_v28 }
0x194c   : > { %v4269_v20 = vadd.f32 %v4258_v19, %v6497_v8 }
0x194d   : > { %v4282_v1 = vadd.f32 %v4645_v50, %v4270_v13 }
0x194e   : > { %v4281_v22 = vadd.f32 %v4645_v50, %v4269_v20 }
0x194f   : > { %v4286_v25 = vadd.f32 %v5732_v23, %v4282_v1 }
0x1950   : > { %v4285_v26 = vadd.f32 %v5733_v2, %v4281_v22 }
0x1952   : > { %v4296_v27 = vmul.f32 %v4286_v25, %v4285_v26 }
0x1954   : > { %4298 = vrot.lane.b32.xlu0 %v4296_v27, %s5744_s0 }
0x19c6   : > { %v4299_v8 = vpop.permute.xlu0 %4298 }
0x19c7   : > { %v4301_v29 = vsel %vm708_vm0, %v4295_v5, %v4299_v8 }
0x19c8   : > { %4303 = vst.msk [vmem:[%s675_s25] sm:$0xff] %vm4302_vm3, %v4301_v29 }
0x19c9 PF: > { %s30_s1 = sadd.s32 1, %s5740_s1  }
0x19ca   : > { %p27_p4 = scmp.ge.s32.totalorder %s30_s1, 4  }
0x19cc   :  { %29 = sbr.rel (!%p27_p4) target bundleno = 7 (0x7), region = 163 }

</bundles_post_ra>
